<compile_context>
chip_gen: v5e
topology: v5e:2x2
jax: 0.10.0
libtpu: 0.0.40
codegen_flags: <defaults>
</compile_context>

<pallas_src>
import functools
import math

import numpy as np
import jax
import jax.numpy as jnp
from jax import lax
from jax.experimental import pallas as pl
from jax.experimental.pallas import tpu as pltpu


# --------------------------- small synthetic Llama4-vision config ---------------------------
CFG = dict(
    num_channels=3,
    image_size=16,
    patch_size=4,
    hidden_size=32,
    num_attention_heads=4,
    num_hidden_layers=2,
    intermediate_size=128,          # == hidden_size / pixel_shuffle_ratio**2 (as in real Llama4)
    pixel_shuffle_ratio=0.5,
    projector_input_dim=64,
    projector_output_dim=64,
    vision_output_dim=64,
    text_hidden_size=48,
    rope_theta=10000.0,
    norm_eps=1e-5,
)


# ----------------------------------- small helpers ------------------------------------------
def _mxu_dot(a, b):
    """MXU matmul: bf16 operands (weights arrive pre-cast), f32 accumulation."""
    return jnp.dot(a.astype(jnp.bfloat16), b.astype(jnp.bfloat16),
                   preferred_element_type=jnp.float32)


def _ln(x, g, b, eps):
    x = x.astype(jnp.float32)
    mu = jnp.mean(x, axis=-1, keepdims=True)
    xc = x - mu
    var = jnp.mean(xc * xc, axis=-1, keepdims=True)
    return xc * lax.rsqrt(var + eps) * g + b


@functools.lru_cache(maxsize=None)
def _single_buffering_supported():
    """Probe once whether pl.Buffered(1) (single-buffered resident inputs) lowers & runs."""
    if not hasattr(pl, "Buffered"):
        return False
    try:
        def _probe(w_ref, o_ref):
            o_ref[...] = w_ref[...] + 1.0

        w = jnp.zeros((8, 128), jnp.float32)
        out = pl.pallas_call(
            _probe,
            out_shape=jax.ShapeDtypeStruct((16, 128), jnp.float32),
            grid=(2,),
            in_specs=[pl.BlockSpec((8, 128), lambda i: (0, 0),
                                   pipeline_mode=pl.Buffered(1))],
            out_specs=pl.BlockSpec((8, 128), lambda i: (i, 0)),
        )(w)
        out = jax.block_until_ready(out)
        return bool(jnp.allclose(out, 1.0))
    except Exception:
        return False


def _resident_spec(arr):
    """Whole-array VMEM block, constant block index across the grid (stays resident).
    Single-buffered when supported, halving resident-weight VMEM (matters on v7x)."""
    nd = arr.ndim
    idx = lambda *_: (0,) * nd
    if _single_buffering_supported():
        return pl.BlockSpec(arr.shape, idx, pipeline_mode=pl.Buffered(1))
    return pl.BlockSpec(arr.shape, idx)


def _vmem_budget(*arrays, activation_bytes=0):
    """Explicit scoped-VMEM limit sized to the resident set with headroom."""
    total = int(activation_bytes)
    for a in arrays:
        total += int(np.prod(a.shape)) * int(np.dtype(a.dtype).itemsize)
    return int(min(max(2 * total + (8 << 20), 32 << 20), 64 << 20))


# ----------------------------------- Pallas kernels -----------------------------------------
def _embed_kernel(x_ref, pw_ref, pos_ref, cls_ref, g_ref, b_ref, o_ref, *, eps):
    """Patch linear (no bias) + pos emb + layernorm_pre; class-token row written separately
    (no in-kernel concat of the (S, D) block)."""
    g = g_ref[...]
    b = b_ref[...]
    L = pos_ref.shape[0]
    emb = _mxu_dot(x_ref[0], pw_ref[...]) + pos_ref[...]             # (L, D)
    o_ref[0, :L, :] = _ln(emb, g, b, eps).astype(o_ref.dtype)
    o_ref[0, L:, :] = _ln(cls_ref[...], g, b, eps).astype(o_ref.dtype)   # cls appended last


def pallas_embed(x_patches, prep, eps):
    B, L, K = x_patches.shape
    D = prep["pos_patch"].shape[1]
    S = L + 1
    weights = (prep["patch_w"], prep["pos_patch"], prep["cls_row"],
               prep["ln_pre_g"], prep["ln_pre_b"])
    return pl.pallas_call(
        functools.partial(_embed_kernel, eps=eps),
        out_shape=jax.ShapeDtypeStruct((B, S, D), jnp.float32),
        grid=(B,),
        in_specs=[pl.BlockSpec((1, L, K), lambda i: (i, 0, 0))]
                 + [_resident_spec(w) for w in weights],
        out_specs=pl.BlockSpec((1, S, D), lambda i: (i, 0, 0)),
        compiler_params=pltpu.CompilerParams(
            dimension_semantics=("parallel",),
            vmem_limit_bytes=_vmem_budget(*weights,
                                          activation_bytes=4 * (L * K + S * D))),
    )(x_patches, *weights)


def _encoder_layer_kernel(h_ref, cos_ref, sin_ref,
                          ln1_g_ref, ln1_b_ref, wqkv_ref, bqkv_ref, wo3_ref, bo_ref,
                          ln2_g_ref, ln2_b_ref, fc1_w_ref, fc1_b_ref, fc2_w_ref, fc2_b_ref,
                          post_g_ref, post_b_ref, o_ref,
                          *, num_heads, head_dim, eps, num_patches, fuse_post_ln):
    """One full Llama4 vision encoder layer for one batch element, entirely in VMEM."""
    D = num_heads * head_dim
    half = head_dim // 2
    scale = head_dim ** -0.5
    h = h_ref[0].astype(jnp.float32)                                 # (S, D) residual stream
    S = h.shape[0]

    # --- self-attention block -----------------------------------------------------------
    hn = _ln(h, ln1_g_ref[...], ln1_b_ref[...], eps)
    qkv = _mxu_dot(hn, wqkv_ref[...]) + bqkv_ref[...]                # (S, 3D) fused QKV

    def heads(x2d):                                  # (S, D) -> (nH, S, hd); lane slices only
        return jnp.concatenate(
            [x2d[:, hh * head_dim:(hh + 1) * head_dim][None] for hh in range(num_heads)],
            axis=0)

    q = heads(qkv[:, 0:D])
    k = heads(qkv[:, D:2 * D])
    v = heads(qkv[:, 2 * D:3 * D])

    # rotary: the interleaved-pair -> split permutation is folded into the Q/K weight columns
    # offline, so here it is just x*cos + rotate_half(x)*sin on the VPU (no DxD rot matmul).
    cos = cos_ref[...][None]                                         # (1, S, hd)
    sin = sin_ref[...][None]

    def rope(x):
        x_rot = jnp.concatenate([-x[..., half:], x[..., :half]], axis=-1)
        return x * cos + x_rot * sin

    qb = (rope(q) * scale).astype(jnp.bfloat16)                      # casts hoisted out of loops
    kb = rope(k).astype(jnp.bfloat16)
    vb = v.astype(jnp.bfloat16)

    # batched per-head attention: one MXU dot_general over all heads at once
    s = lax.dot_general(qb, kb, (((2,), (2,)), ((0,), (0,))),
                        preferred_element_type=jnp.float32)          # (nH, S, S)
    m = jnp.max(s, axis=-1, keepdims=True)
    p = jnp.exp(s - m)
    l = jnp.sum(p, axis=-1, keepdims=True)
    pv = lax.dot_general(p.astype(jnp.bfloat16), vb, (((2,), (1,)), ((0,), (0,))),
                         preferred_element_type=jnp.float32)         # (nH, S, hd)
    pv = (pv * pl.reciprocal(l, approx=True)).astype(jnp.bfloat16)

    # O-projection folded into the head loop (accumulate; no concat of per-head outputs)
    wo = wo3_ref[...]                                                # (nH, hd, D) bf16
    attn = jnp.zeros((S, D), jnp.float32)
    for hh in range(num_heads):
        attn = attn + jnp.dot(pv[hh], wo[hh], preferred_element_type=jnp.float32)
    h = h + attn + bo_ref[...]                                       # fused residual add

    # --- MLP block ------------------------------------------------------------------------
    hn2 = _ln(h, ln2_g_ref[...], ln2_b_ref[...], eps)
    # TODO(synk): PyTorch nn.GELU default is the exact erf form; tanh approximation is used
    # here for a Mosaic-safe lowering (difference ~1e-3).
    m1 = jax.nn.gelu(_mxu_dot(hn2, fc1_w_ref[...]) + fc1_b_ref[...], approximate=True)
    # TODO(synk): at real Llama4 sizes on v7x, tile fc1/fc2 over the intermediate dim with an
    # extra grid axis + f32 accumulator scratch instead of keeping both weights resident.
    h = h + _mxu_dot(m1, fc2_w_ref[...]) + fc2_b_ref[...]            # fused residual add

    if fuse_post_ln:
        # last layer: drop the class token (appended last) and apply layernorm_post here,
        # saving one HBM round trip of the activations + one kernel launch.
        o_ref[0] = _ln(h[:num_patches, :], post_g_ref[...], post_b_ref[...],
                       eps).astype(o_ref.dtype)
    else:
        o_ref[0] = h.astype(o_ref.dtype)


def pallas_encoder_layer(h, lp, cos, sin, post_g, post_b, *, num_heads, eps,
                         num_patches, fuse_post_ln):
    B, S, D = h.shape
    head_dim = D // num_heads
    weights = (cos, sin,
               lp["ln1_g"], lp["ln1_b"], lp["wqkv"], lp["bqkv"], lp["wo3"], lp["bo"],
               lp["ln2_g"], lp["ln2_b"], lp["fc1_w"], lp["fc1_b"], lp["fc2_w"], lp["fc2_b"],
               post_g, post_b)
    out_rows = num_patches if fuse_post_ln else S
    act_bytes = 4 * (6 * S * D + num_heads * S * S + S * lp["fc1_w"].shape[1])
    return pl.pallas_call(
        functools.partial(_encoder_layer_kernel, num_heads=num_heads, head_dim=head_dim,
                          eps=eps, num_patches=num_patches, fuse_post_ln=fuse_post_ln),
        out_shape=jax.ShapeDtypeStruct((B, out_rows, D), jnp.float32),
        grid=(B,),
        in_specs=[pl.BlockSpec((1, S, D), lambda i: (i, 0, 0))]
                 + [_resident_spec(w) for w in weights],
        out_specs=pl.BlockSpec((1, out_rows, D), lambda i: (i, 0, 0)),
        # "parallel" over batch shards the grid across the 2 TCs on v7x; on v5e/v6e the grid
        # is a serial loop either way and the resident weights are fetched only once.
        compiler_params=pltpu.CompilerParams(
            dimension_semantics=("parallel",),
            vmem_limit_bytes=_vmem_budget(*weights, activation_bytes=act_bytes)),
    )(h, *weights)


def _adapter_kernel(x_ref, w1_ref, w2_ref, w3_ref, o_ref):
    """Vision adapter MLP2 (fc1->gelu->fc2->gelu, no biases) + multi_modal_projector."""
    a = jax.nn.gelu(_mxu_dot(x_ref[...], w1_ref[...]), approximate=True)
    a = jax.nn.gelu(_mxu_dot(a, w2_ref[...]), approximate=True)
    o_ref[...] = _mxu_dot(a, w3_ref[...]).astype(o_ref.dtype)


def pallas_adapter_project(x, w1, w2, w3):
    M, K = x.shape
    N = w3.shape[1]
    tm = min(M, 512)                      # row tiling for real token counts; grid=1 at toy size
    weights = (w1, w2, w3)
    act_bytes = 4 * tm * (K + int(w1.shape[1]) + int(w2.shape[1]) + N)
    return pl.pallas_call(
        _adapter_kernel,
        out_shape=jax.ShapeDtypeStruct((M, N), jnp.float32),
        grid=(pl.cdiv(M, tm),),
        in_specs=[pl.BlockSpec((tm, K), lambda i: (i, 0))]
                 + [_resident_spec(w) for w in weights],
        out_specs=pl.BlockSpec((tm, N), lambda i: (i, 0)),
        compiler_params=pltpu.CompilerParams(
            dimension_semantics=("parallel",),
            vmem_limit_bytes=_vmem_budget(*weights, activation_bytes=act_bytes)),
    )(x.astype(jnp.float32), *weights)


# --------------------------------------- JAX glue --------------------------------------------
def vision_rope_cos_sin(cfg):
    """Llama4 2-D vision rotary phases (cos/sin of the complex freqs_ci), per pair."""
    idx = cfg["image_size"] // cfg["patch_size"]
    head_dim = cfg["hidden_size"] // cfg["num_attention_heads"]
    img_idx = jnp.arange(idx * idx, dtype=jnp.int32).reshape(idx * idx, 1)
    img_idx = jnp.concatenate([img_idx, img_idx[:1]], axis=0)
    img_idx = img_idx.at[-1, -1].set(-2)                       # class-token id
    freq_x = img_idx % idx
    freq_y = img_idx // idx
    freq_dim = head_dim // 2
    rope_freq = 1.0 / (cfg["rope_theta"] ** (
        jnp.arange(0, freq_dim, 2, dtype=jnp.float32)[: freq_dim // 2] / freq_dim))
    fx = jnp.repeat((freq_x + 1)[..., None].astype(jnp.float32) * rope_freq[None, None, :],
                    2, axis=-1)
    fy = jnp.repeat((freq_y + 1)[..., None].astype(jnp.float32) * rope_freq[None, None, :],
                    2, axis=-1)
    freqs = jnp.concatenate([fx, fy], axis=-1)[..., ::2]
    freqs = jnp.where(img_idx.reshape(-1, 1, 1) < 0, 0.0, freqs)
    return jnp.cos(freqs), jnp.sin(freqs)                      # each (S, 1, head_dim//2)


def rotary_tables_split(cfg):
    """cos/sin tables laid out for the split (rotate_half) head layout: (S, head_dim)."""
    cos, sin = vision_rope_cos_sin(cfg)                        # (S, 1, head_dim//2)
    c = cos[:, 0, :]
    s = sin[:, 0, :]
    return (jnp.concatenate([c, c], axis=-1).astype(jnp.float32),
            jnp.concatenate([s, s], axis=-1).astype(jnp.float32))


def pixel_shuffle(x, ratio):
    """Exact port of Llama4 pixel_shuffle (contiguous-view semantics preserved)."""
    B, N, C = x.shape
    ps = int(math.isqrt(N))
    x = x.reshape(B, ps, ps, -1)
    x = x.reshape(B, ps, int(ps * ratio), int(C / ratio))
    x = jnp.transpose(x, (0, 2, 1, 3))
    x = x.reshape(B, int(ps * ratio), int(ps * ratio), int(C / (ratio * ratio)))
    x = jnp.transpose(x, (0, 2, 1, 3))
    return x.reshape(B, -1, x.shape[-1])


def init_params(key, cfg):
    """Raw (PyTorch-layout) parameters of the synthetic Llama4 vision tower."""
    D = cfg["hidden_size"]
    I = cfg["intermediate_size"]
    C = cfg["num_channels"]
    p = cfg["patch_size"]
    nps = cfg["image_size"] // p
    S = nps * nps + 1
    kit = iter(jax.random.split(key, 128))

    def nrm(shape, scale=0.05):
        return scale * jax.random.normal(next(kit), shape, jnp.float32)

    def ln_pair():
        return 1.0 + nrm((D,), 0.01), nrm((D,), 0.01)

    layers = []
    for _ in range(cfg["num_hidden_layers"]):
        g1, b1 = ln_pair()
        g2, b2 = ln_pair()
        layers.append(dict(
            ln1_g=g1, ln1_b=b1,
            wq=nrm((D, D)), bq=nrm((D,), 0.01),
            wk=nrm((D, D)), bk=nrm((D,), 0.01),
            wv=nrm((D, D)), bv=nrm((D,), 0.01),
            wo=nrm((D, D)), bo=nrm((D,), 0.01),
            ln2_g=g2, ln2_b=b2,
            fc1_w=nrm((D, I)), fc1_b=nrm((I,), 0.01),
            fc2_w=nrm((I, D)), fc2_b=nrm((D,), 0.01),
        ))

    g_pre, b_pre = ln_pair()
    g_post, b_post = ln_pair()
    return dict(
        patch_w=nrm((C * p * p, D)),                 # Llama4UnfoldConvolution linear (no bias)
        class_embedding=nrm((D,)),
        pos_embedding=nrm((S, D)),
        ln_pre_g=g_pre, ln_pre_b=b_pre,
        layers=layers,
        ln_post_g=g_post, ln_post_b=b_post,
        adp_fc1_w=nrm((I, cfg["projector_input_dim"])),                       # MLP2.fc1 (no bias)
        adp_fc2_w=nrm((cfg["projector_output_dim"], cfg["projector_output_dim"])),  # MLP2.fc2
        mm_proj_w=nrm((cfg["vision_output_dim"], cfg["text_hidden_size"])),   # multi_modal_projector
    )


def prepare_params(params, cfg):
    """One-time parameter prep: fuse QKV, fold the rotary pair permutation into Q/K columns,
    regroup wo per head, reshape biases, and cast all matmul weights to bf16."""
    D = cfg["hidden_size"]
    I = cfg["intermediate_size"]
    nH = cfg["num_attention_heads"]
    hd = D // nH
    nps = cfg["image_size"] // cfg["patch_size"]
    L = nps * nps

    # per-head permutation: interleaved rotary pairs [x0,y0,x1,y1,...] -> split [x.., y..].
    head_perm = np.concatenate([np.arange(0, hd, 2), np.arange(1, hd, 2)])
    perm = np.concatenate([head_perm + h * hd for h in range(nH)])

    def bf16(w):
        return w.astype(jnp.bfloat16)

    layers = []
    for lp in params["layers"]:
        wq = lp["wq"][:, perm]
        wk = lp["wk"][:, perm]
        bq = lp["bq"][perm]
        bk = lp["bk"][perm]
        layers.append(dict(
            ln1_g=lp["ln1_g"].reshape(1, D), ln1_b=lp["ln1_b"].reshape(1, D),
            wqkv=bf16(jnp.concatenate([wq, wk, lp["wv"]], axis=1)),            # (D, 3D)
            bqkv=jnp.concatenate([bq, bk, lp["bv"]]).reshape(1, 3 * D).astype(jnp.float32),
            wo3=bf16(lp["wo"].reshape(nH, hd, D)),                             # per-head rows
            bo=lp["bo"].reshape(1, D),
            ln2_g=lp["ln2_g"].reshape(1, D), ln2_b=lp["ln2_b"].reshape(1, D),
            fc1_w=bf16(lp["fc1_w"]), fc1_b=lp["fc1_b"].reshape(1, I),
            fc2_w=bf16(lp["fc2_w"]), fc2_b=lp["fc2_b"].reshape(1, D),
        ))

    cos_t, sin_t = rotary_tables_split(cfg)
    pos = params["pos_embedding"].astype(jnp.float32)
    return dict(
        patch_w=bf16(params["patch_w"]),
        pos_patch=pos[:L],
        cls_row=(params["class_embedding"][None, :] + pos[L:]).astype(jnp.float32),
        ln_pre_g=params["ln_pre_g"].reshape(1, D), ln_pre_b=params["ln_pre_b"].reshape(1, D),
        layers=layers,
        ln_post_g=params["ln_post_g"].reshape(1, D),
        ln_post_b=params["ln_post_b"].reshape(1, D),
        cos=cos_t, sin=sin_t,
        adp_fc1_w=bf16(params["adp_fc1_w"]),
        adp_fc2_w=bf16(params["adp_fc2_w"]),
        mm_proj_w=bf16(params["mm_proj_w"]),
    )


def llama4_encoder_forward(prep, pixel_values, cfg):
    B, C, H, W = pixel_values.shape
    p = cfg["patch_size"]
    nH = cfg["num_attention_heads"]
    nps = H // p
    L = nps * nps
    eps = cfg["norm_eps"]

    # --- patch extraction: nn.Unfold(kernel=stride=patch) ordering [C, kh, kw]
    x = pixel_values.reshape(B, C, nps, p, nps, p)
    x = jnp.transpose(x, (0, 2, 4, 1, 3, 5)).reshape(B, L, C * p * p)

    # --- fused: patch Linear + class token (appended last) + pos emb + layernorm_pre
    h = pallas_embed(x.astype(jnp.float32), prep, eps)

    # --- vision encoder layers: one fused pallas_call per layer; the last layer also drops
    #     the class token and applies layernorm_post in its epilogue.
    n_layers = len(prep["layers"])
    assert n_layers >= 1
    for li, lp in enumerate(prep["layers"]):
        h = pallas_encoder_layer(
            h, lp, prep["cos"], prep["sin"], prep["ln_post_g"], prep["ln_post_b"],
            num_heads=nH, eps=eps, num_patches=L, fuse_post_ln=(li == n_layers - 1))

    # h: (B, L, D), already layernorm_post'ed with the class token removed.
    ps = pixel_shuffle(h, cfg["pixel_shuffle_ratio"])
    # TODO(synk): vision_feature_layer / vision_feature_select_strategy are read but unused by
    # Llama4.get_image_features (it always returns last_hidden_state); nothing to translate.
    return pallas_adapter_project(
        ps.reshape(-1, ps.shape[-1]),
        prep["adp_fc1_w"], prep["adp_fc2_w"], prep["mm_proj_w"])


if __name__ == "__main__":
    key = jax.random.PRNGKey(0)
    kp, kx = jax.random.split(key)
    raw_params = init_params(kp, CFG)
    prep = prepare_params(raw_params, CFG)
    pixel_values = jax.random.normal(
        kx, (2, CFG["num_channels"], CFG["image_size"], CFG["image_size"]), jnp.float32)

    _single_buffering_supported()          # run the pl.Buffered(1) probe outside any trace

    fwd = jax.jit(functools.partial(llama4_encoder_forward, cfg=CFG))
    out = jax.block_until_ready(fwd(prep, pixel_values))

    # (batch * shuffled_tokens_per_image, text_hidden) = (2 * 4, 48)
    assert out.shape == (8, CFG["text_hidden_size"]), out.shape
    assert bool(jnp.all(jnp.isfinite(out)))
    print("KERNEL_OK")
</pallas_src>

<mosaic_0001>
module attributes {stable_mosaic.version = 11 : i64} {
  func.func @_probe(%arg0: i32, %arg1: memref<8x128xf32, #tpu.memory_space<vmem>>, %arg2: memref<8x128xf32, #tpu.memory_space<vmem>>) attributes {dimension_semantics = [#tpu.dimension_semantics<arbitrary>], iteration_bounds = array<i64: 2>, scalar_prefetch = 0 : i64, scratch_operands = 0 : i64, tpu.core_type = #tpu.core_type<tc>, window_params = [{pipeline_mode = #tpu.pipeline_mode<synchronous>, transform_indices = @transform_0, window_bounds = array<i64: 8, 128>}, {transform_indices = @transform_1, window_bounds = array<i64: 8, 128>}]} {
    %c0 = arith.constant 0 : index
    %c0_0 = arith.constant 0 : index
    %0 = vector.load %arg1[%c0, %c0_0] : memref<8x128xf32, #tpu.memory_space<vmem>>, vector<8x128xf32>
    %cst = arith.constant 1.000000e+00 : f32
    %1 = vector.broadcast %cst : f32 to vector<8x128xf32>
    %2 = arith.addf %0, %1 : vector<8x128xf32>
    %c0_1 = arith.constant 0 : index
    %c0_2 = arith.constant 0 : index
    %3 = vector.load %arg2[%c0_1, %c0_2] : memref<8x128xf32, #tpu.memory_space<vmem>>, vector<8x128xf32>
    tpu.vector_store %arg2[%c0_1, %c0_2], %2 {strides = array<i32>} : memref<8x128xf32, #tpu.memory_space<vmem>>, vector<8x128xf32>,
    return
  }
  func.func @transform_0(%arg0: i32) -> (i32, i32) {
    %c0_i32 = arith.constant 0 : i32
    %c0_i32_0 = arith.constant 0 : i32
    %c0_i32_1 = arith.constant 0 : i32
    return %c0_i32, %c0_i32_0 : i32, i32
  }
  func.func @transform_1(%arg0: i32) -> (i32, i32) {
    %c0_i32 = arith.constant 0 : i32
    %c0_i32_0 = arith.constant 0 : i32
    return %arg0, %c0_i32 : i32, i32
  }
}

module attributes {stable_mosaic.version = 11 : i64} {
  func.func @_encoder_layer_kernel(%arg0: i32, %arg1: memref<1x17x32xf32, #tpu.memory_space<vmem>>, %arg2: memref<17x8xf32, #tpu.memory_space<vmem>>, %arg3: memref<17x8xf32, #tpu.memory_space<vmem>>, %arg4: memref<1x32xf32, #tpu.memory_space<vmem>>, %arg5: memref<1x32xf32, #tpu.memory_space<vmem>>, %arg6: memref<32x96xbf16, #tpu.memory_space<vmem>>, %arg7: memref<1x96xf32, #tpu.memory_space<vmem>>, %arg8: memref<4x8x32xbf16, #tpu.memory_space<vmem>>, %arg9: memref<1x32xf32, #tpu.memory_space<vmem>>, %arg10: memref<1x32xf32, #tpu.memory_space<vmem>>, %arg11: memref<1x32xf32, #tpu.memory_space<vmem>>, %arg12: memref<32x128xbf16, #tpu.memory_space<vmem>>, %arg13: memref<1x128xf32, #tpu.memory_space<vmem>>, %arg14: memref<128x32xbf16, #tpu.memory_space<vmem>>, %arg15: memref<1x32xf32, #tpu.memory_space<vmem>>, %arg16: memref<1x32xf32, #tpu.memory_space<vmem>>, %arg17: memref<1x32xf32, #tpu.memory_space<vmem>>, %arg18: memref<1x16x32xf32, #tpu.memory_space<vmem>>) attributes {dimension_semantics = [#tpu.dimension_semantics<parallel>], iteration_bounds = array<i64: 2>, scalar_prefetch = 0 : i64, scratch_operands = 0 : i64, tpu.core_type = #tpu.core_type<tc>, window_params = [{transform_indices = @transform_0, window_bounds = array<i64: 1, 17, 32>}, {pipeline_mode = #tpu.pipeline_mode<synchronous>, transform_indices = @transform_1, window_bounds = array<i64: 17, 8>}, {pipeline_mode = #tpu.pipeline_mode<synchronous>, transform_indices = @transform_2, window_bounds = array<i64: 17, 8>}, {pipeline_mode = #tpu.pipeline_mode<synchronous>, transform_indices = @transform_3, window_bounds = array<i64: 1, 32>}, {pipeline_mode = #tpu.pipeline_mode<synchronous>, transform_indices = @transform_4, window_bounds = array<i64: 1, 32>}, {pipeline_mode = #tpu.pipeline_mode<synchronous>, transform_indices = @transform_5, window_bounds = array<i64: 32, 96>}, {pipeline_mode = #tpu.pipeline_mode<synchronous>, transform_indices = @transform_6, window_bounds = array<i64: 1, 96>}, {pipeline_mode = #tpu.pipeline_mode<synchronous>, transform_indices = @transform_7, window_bounds = array<i64: 4, 8, 32>}, {pipeline_mode = #tpu.pipeline_mode<synchronous>, transform_indices = @transform_8, window_bounds = array<i64: 1, 32>}, {pipeline_mode = #tpu.pipeline_mode<synchronous>, transform_indices = @transform_9, window_bounds = array<i64: 1, 32>}, {pipeline_mode = #tpu.pipeline_mode<synchronous>, transform_indices = @transform_10, window_bounds = array<i64: 1, 32>}, {pipeline_mode = #tpu.pipeline_mode<synchronous>, transform_indices = @transform_11, window_bounds = array<i64: 32, 128>}, {pipeline_mode = #tpu.pipeline_mode<synchronous>, transform_indices = @transform_12, window_bounds = array<i64: 1, 128>}, {pipeline_mode = #tpu.pipeline_mode<synchronous>, transform_indices = @transform_13, window_bounds = array<i64: 128, 32>}, {pipeline_mode = #tpu.pipeline_mode<synchronous>, transform_indices = @transform_14, window_bounds = array<i64: 1, 32>}, {pipeline_mode = #tpu.pipeline_mode<synchronous>, transform_indices = @transform_15, window_bounds = array<i64: 1, 32>}, {pipeline_mode = #tpu.pipeline_mode<synchronous>, transform_indices = @transform_16, window_bounds = array<i64: 1, 32>}, {transform_indices = @transform_17, window_bounds = array<i64: 1, 16, 32>}]} {
    %c0 = arith.constant 0 : index
    %c0_0 = arith.constant 0 : index
    %c0_1 = arith.constant 0 : index
    %0 = vector.load %arg1[%c0, %c0_0, %c0_1] : memref<1x17x32xf32, #tpu.memory_space<vmem>>, vector<1x17x32xf32>
    %1 = vector.shape_cast %0 : vector<1x17x32xf32> to vector<17x32xf32>
    %c0_2 = arith.constant 0 : index
    %c0_3 = arith.constant 0 : index
    %2 = vector.load %arg4[%c0_2, %c0_3] : memref<1x32xf32, #tpu.memory_space<vmem>>, vector<1x32xf32>
    %c0_4 = arith.constant 0 : index
    %c0_5 = arith.constant 0 : index
    %3 = vector.load %arg5[%c0_4, %c0_5] : memref<1x32xf32, #tpu.memory_space<vmem>>, vector<1x32xf32>
    %cst = arith.constant dense<0.000000e+00> : vector<17xf32>
    %4 = vector.multi_reduction <add>, %1, %cst [1] : vector<17x32xf32> to vector<17xf32>
    %5 = vector.shape_cast %4 : vector<17xf32> to vector<17x1xf32>
    %cst_6 = arith.constant 3.200000e+01 : f32
    %6 = vector.broadcast %cst_6 : f32 to vector<17x1xf32>
    %7 = arith.divf %5, %6 : vector<17x1xf32>
    %8 = vector.broadcast %7 : vector<17x1xf32> to vector<17x32xf32>
    %9 = arith.subf %1, %8 : vector<17x32xf32>
    %10 = arith.mulf %9, %9 : vector<17x32xf32>
    %cst_7 = arith.constant dense<0.000000e+00> : vector<17xf32>
    %11 = vector.multi_reduction <add>, %10, %cst_7 [1] : vector<17x32xf32> to vector<17xf32>
    %12 = vector.shape_cast %11 : vector<17xf32> to vector<17x1xf32>
    %cst_8 = arith.constant 3.200000e+01 : f32
    %13 = vector.broadcast %cst_8 : f32 to vector<17x1xf32>
    %14 = arith.divf %12, %13 : vector<17x1xf32>
    %cst_9 = arith.constant 9.99999974E-6 : f32
    %15 = vector.broadcast %cst_9 : f32 to vector<17x1xf32>
    %16 = arith.addf %14, %15 : vector<17x1xf32>
    %17 = math.rsqrt %16 : vector<17x1xf32>
    %18 = vector.broadcast %17 : vector<17x1xf32> to vector<17x32xf32>
    %19 = arith.mulf %9, %18 : vector<17x32xf32>
    %20 = vector.broadcast %2 : vector<1x32xf32> to vector<17x32xf32>
    %21 = arith.mulf %19, %20 : vector<17x32xf32>
    %22 = vector.broadcast %3 : vector<1x32xf32> to vector<17x32xf32>
    %23 = arith.addf %21, %22 : vector<17x32xf32>
    %c0_10 = arith.constant 0 : index
    %c0_11 = arith.constant 0 : index
    %24 = vector.load %arg6[%c0_10, %c0_11] : memref<32x96xbf16, #tpu.memory_space<vmem>>, vector<32x96xbf16>
    %25 = arith.truncf %23 : vector<17x32xf32> to vector<17x32xbf16>
    %cst_12 = arith.constant dense<0.000000e+00> : vector<17x96xf32>
    %26 = tpu.matmul %25, %24, %cst_12 {dimension_numbers = #tpu.dot_dimension_numbers<[1], [0], [0], [1], [0, 0, 1, 1], [], []>} : vector<17x32xbf16>, vector<32x96xbf16>, vector<17x96xf32> -> vector<17x96xf32>
    %c0_13 = arith.constant 0 : index
    %c0_14 = arith.constant 0 : index
    %27 = vector.load %arg7[%c0_13, %c0_14] : memref<1x96xf32, #tpu.memory_space<vmem>>, vector<1x96xf32>
    %28 = vector.broadcast %27 : vector<1x96xf32> to vector<17x96xf32>
    %29 = arith.addf %26, %28 : vector<17x96xf32>
    %30 = vector.extract_strided_slice %29 {offsets = [0, 0], sizes = [17, 32], strides = [1, 1]} : vector<17x96xf32> to vector<17x32xf32>
    %31 = vector.extract_strided_slice %30 {offsets = [0, 0], sizes = [17, 8], strides = [1, 1]} : vector<17x32xf32> to vector<17x8xf32>
    %32 = vector.shape_cast %31 : vector<17x8xf32> to vector<1x17x8xf32>
    %33 = vector.extract_strided_slice %30 {offsets = [0, 8], sizes = [17, 8], strides = [1, 1]} : vector<17x32xf32> to vector<17x8xf32>
    %34 = vector.shape_cast %33 : vector<17x8xf32> to vector<1x17x8xf32>
    %35 = vector.extract_strided_slice %30 {offsets = [0, 16], sizes = [17, 8], strides = [1, 1]} : vector<17x32xf32> to vector<17x8xf32>
    %36 = vector.shape_cast %35 : vector<17x8xf32> to vector<1x17x8xf32>
    %37 = vector.extract_strided_slice %30 {offsets = [0, 24], sizes = [17, 8], strides = [1, 1]} : vector<17x32xf32> to vector<17x8xf32>
    %38 = vector.shape_cast %37 : vector<17x8xf32> to vector<1x17x8xf32>
    %39 = tpu.concatenate %32, %34, %36, %38 in 0 : vector<1x17x8xf32>, vector<1x17x8xf32>, vector<1x17x8xf32>, vector<1x17x8xf32> -> vector<4x17x8xf32>
    %40 = vector.extract_strided_slice %29 {offsets = [0, 32], sizes = [17, 32], strides = [1, 1]} : vector<17x96xf32> to vector<17x32xf32>
    %41 = vector.extract_strided_slice %40 {offsets = [0, 0], sizes = [17, 8], strides = [1, 1]} : vector<17x32xf32> to vector<17x8xf32>
    %42 = vector.shape_cast %41 : vector<17x8xf32> to vector<1x17x8xf32>
    %43 = vector.extract_strided_slice %40 {offsets = [0, 8], sizes = [17, 8], strides = [1, 1]} : vector<17x32xf32> to vector<17x8xf32>
    %44 = vector.shape_cast %43 : vector<17x8xf32> to vector<1x17x8xf32>
    %45 = vector.extract_strided_slice %40 {offsets = [0, 16], sizes = [17, 8], strides = [1, 1]} : vector<17x32xf32> to vector<17x8xf32>
    %46 = vector.shape_cast %45 : vector<17x8xf32> to vector<1x17x8xf32>
    %47 = vector.extract_strided_slice %40 {offsets = [0, 24], sizes = [17, 8], strides = [1, 1]} : vector<17x32xf32> to vector<17x8xf32>
    %48 = vector.shape_cast %47 : vector<17x8xf32> to vector<1x17x8xf32>
    %49 = tpu.concatenate %42, %44, %46, %48 in 0 : vector<1x17x8xf32>, vector<1x17x8xf32>, vector<1x17x8xf32>, vector<1x17x8xf32> -> vector<4x17x8xf32>
    %50 = vector.extract_strided_slice %29 {offsets = [0, 64], sizes = [17, 32], strides = [1, 1]} : vector<17x96xf32> to vector<17x32xf32>
    %51 = vector.extract_strided_slice %50 {offsets = [0, 0], sizes = [17, 8], strides = [1, 1]} : vector<17x32xf32> to vector<17x8xf32>
    %52 = vector.shape_cast %51 : vector<17x8xf32> to vector<1x17x8xf32>
    %53 = vector.extract_strided_slice %50 {offsets = [0, 8], sizes = [17, 8], strides = [1, 1]} : vector<17x32xf32> to vector<17x8xf32>
    %54 = vector.shape_cast %53 : vector<17x8xf32> to vector<1x17x8xf32>
    %55 = vector.extract_strided_slice %50 {offsets = [0, 16], sizes = [17, 8], strides = [1, 1]} : vector<17x32xf32> to vector<17x8xf32>
    %56 = vector.shape_cast %55 : vector<17x8xf32> to vector<1x17x8xf32>
    %57 = vector.extract_strided_slice %50 {offsets = [0, 24], sizes = [17, 8], strides = [1, 1]} : vector<17x32xf32> to vector<17x8xf32>
    %58 = vector.shape_cast %57 : vector<17x8xf32> to vector<1x17x8xf32>
    %59 = tpu.concatenate %52, %54, %56, %58 in 0 : vector<1x17x8xf32>, vector<1x17x8xf32>, vector<1x17x8xf32>, vector<1x17x8xf32> -> vector<4x17x8xf32>
    %c0_15 = arith.constant 0 : index
    %c0_16 = arith.constant 0 : index
    %60 = vector.load %arg2[%c0_15, %c0_16] : memref<17x8xf32, #tpu.memory_space<vmem>>, vector<17x8xf32>
    %61 = vector.shape_cast %60 : vector<17x8xf32> to vector<1x17x8xf32>
    %c0_17 = arith.constant 0 : index
    %c0_18 = arith.constant 0 : index
    %62 = vector.load %arg3[%c0_17, %c0_18] : memref<17x8xf32, #tpu.memory_space<vmem>>, vector<17x8xf32>
    %63 = vector.shape_cast %62 : vector<17x8xf32> to vector<1x17x8xf32>
    %64 = vector.extract_strided_slice %39 {offsets = [0, 0, 4], sizes = [4, 17, 4], strides = [1, 1, 1]} : vector<4x17x8xf32> to vector<4x17x4xf32>
    %cst_19 = arith.constant 0.000000e+00 : f32
    %65 = vector.broadcast %cst_19 : f32 to vector<4x17x4xf32>
    %66 = arith.subf %65, %64 : vector<4x17x4xf32>
    %67 = vector.extract_strided_slice %39 {offsets = [0, 0, 0], sizes = [4, 17, 4], strides = [1, 1, 1]} : vector<4x17x8xf32> to vector<4x17x4xf32>
    %68 = tpu.concatenate %66, %67 in 2 : vector<4x17x4xf32>, vector<4x17x4xf32> -> vector<4x17x8xf32>
    %69 = vector.broadcast %61 : vector<1x17x8xf32> to vector<4x17x8xf32>
    %70 = arith.mulf %39, %69 : vector<4x17x8xf32>
    %71 = vector.broadcast %63 : vector<1x17x8xf32> to vector<4x17x8xf32>
    %72 = arith.mulf %68, %71 : vector<4x17x8xf32>
    %73 = arith.addf %70, %72 : vector<4x17x8xf32>
    %cst_20 = arith.constant 0.353553385 : f32
    %74 = vector.broadcast %cst_20 : f32 to vector<4x17x8xf32>
    %75 = arith.mulf %73, %74 : vector<4x17x8xf32>
    %76 = arith.truncf %75 : vector<4x17x8xf32> to vector<4x17x8xbf16>
    %77 = vector.extract_strided_slice %49 {offsets = [0, 0, 4], sizes = [4, 17, 4], strides = [1, 1, 1]} : vector<4x17x8xf32> to vector<4x17x4xf32>
    %cst_21 = arith.constant 0.000000e+00 : f32
    %78 = vector.broadcast %cst_21 : f32 to vector<4x17x4xf32>
    %79 = arith.subf %78, %77 : vector<4x17x4xf32>
    %80 = vector.extract_strided_slice %49 {offsets = [0, 0, 0], sizes = [4, 17, 4], strides = [1, 1, 1]} : vector<4x17x8xf32> to vector<4x17x4xf32>
    %81 = tpu.concatenate %79, %80 in 2 : vector<4x17x4xf32>, vector<4x17x4xf32> -> vector<4x17x8xf32>
    %82 = vector.broadcast %61 : vector<1x17x8xf32> to vector<4x17x8xf32>
    %83 = arith.mulf %49, %82 : vector<4x17x8xf32>
    %84 = vector.broadcast %63 : vector<1x17x8xf32> to vector<4x17x8xf32>
    %85 = arith.mulf %81, %84 : vector<4x17x8xf32>
    %86 = arith.addf %83, %85 : vector<4x17x8xf32>
    %87 = arith.truncf %86 : vector<4x17x8xf32> to vector<4x17x8xbf16>
    %88 = arith.truncf %59 : vector<4x17x8xf32> to vector<4x17x8xbf16>
    %cst_22 = arith.constant dense<0.000000e+00> : vector<4x17x17xf32>
    %89 = tpu.matmul %76, %87, %cst_22 {dimension_numbers = #tpu.dot_dimension_numbers<[2], [2], [1], [1], [0, 0, 0, 1, 1, 1], [0], [0]>} : vector<4x17x8xbf16>, vector<4x17x8xbf16>, vector<4x17x17xf32> -> vector<4x17x17xf32>
    %cst_23 = arith.constant dense<0xFF800000> : vector<4x17xf32>
    %90 = vector.multi_reduction <maximumf>, %89, %cst_23 [2] : vector<4x17x17xf32> to vector<4x17xf32>
    %91 = vector.shape_cast %90 : vector<4x17xf32> to vector<4x17x1xf32>
    %92 = vector.broadcast %91 : vector<4x17x1xf32> to vector<4x17x17xf32>
    %93 = arith.subf %89, %92 : vector<4x17x17xf32>
    %94 = math.exp %93 : vector<4x17x17xf32>
    %cst_24 = arith.constant dense<0.000000e+00> : vector<4x17xf32>
    %95 = vector.multi_reduction <add>, %94, %cst_24 [2] : vector<4x17x17xf32> to vector<4x17xf32>
    %96 = vector.shape_cast %95 : vector<4x17xf32> to vector<4x17x1xf32>
    %97 = arith.truncf %94 : vector<4x17x17xf32> to vector<4x17x17xbf16>
    %cst_25 = arith.constant dense<0.000000e+00> : vector<4x17x8xf32>
    %98 = tpu.matmul %97, %88, %cst_25 {dimension_numbers = #tpu.dot_dimension_numbers<[2], [1], [1], [2], [0, 0, 0, 1, 1, 2], [0], [0]>} : vector<4x17x17xbf16>, vector<4x17x8xbf16>, vector<4x17x8xf32> -> vector<4x17x8xf32>
    %99 = tpu.reciprocal %96 {approx = true} : vector<4x17x1xf32> -> vector<4x17x1xf32>
    %100 = vector.broadcast %99 : vector<4x17x1xf32> to vector<4x17x8xf32>
    %101 = arith.mulf %98, %100 : vector<4x17x8xf32>
    %102 = arith.truncf %101 : vector<4x17x8xf32> to vector<4x17x8xbf16>
    %c0_26 = arith.constant 0 : index
    %c0_27 = arith.constant 0 : index
    %c0_28 = arith.constant 0 : index
    %103 = vector.load %arg8[%c0_26, %c0_27, %c0_28] : memref<4x8x32xbf16, #tpu.memory_space<vmem>>, vector<4x8x32xbf16>
    %cst_29 = arith.constant 0.000000e+00 : f32
    %104 = vector.broadcast %cst_29 : f32 to vector<17x32xf32>
    %105 = vector.extract_strided_slice %102 {offsets = [0, 0, 0], sizes = [1, 17, 8], strides = [1, 1, 1]} : vector<4x17x8xbf16> to vector<1x17x8xbf16>
    %106 = vector.shape_cast %105 : vector<1x17x8xbf16> to vector<17x8xbf16>
    %107 = vector.extract_strided_slice %103 {offsets = [0, 0, 0], sizes = [1, 8, 32], strides = [1, 1, 1]} : vector<4x8x32xbf16> to vector<1x8x32xbf16>
    %108 = vector.shape_cast %107 : vector<1x8x32xbf16> to vector<8x32xbf16>
    %cst_30 = arith.constant dense<0.000000e+00> : vector<17x32xf32>
    %109 = tpu.matmul %106, %108, %cst_30 {dimension_numbers = #tpu.dot_dimension_numbers<[1], [0], [0], [1], [0, 0, 1, 1], [], []>} : vector<17x8xbf16>, vector<8x32xbf16>, vector<17x32xf32> -> vector<17x32xf32>
    %110 = arith.addf %104, %109 : vector<17x32xf32>
    %111 = vector.extract_strided_slice %102 {offsets = [1, 0, 0], sizes = [1, 17, 8], strides = [1, 1, 1]} : vector<4x17x8xbf16> to vector<1x17x8xbf16>
    %112 = vector.shape_cast %111 : vector<1x17x8xbf16> to vector<17x8xbf16>
    %113 = vector.extract_strided_slice %103 {offsets = [1, 0, 0], sizes = [1, 8, 32], strides = [1, 1, 1]} : vector<4x8x32xbf16> to vector<1x8x32xbf16>
    %114 = vector.shape_cast %113 : vector<1x8x32xbf16> to vector<8x32xbf16>
    %cst_31 = arith.constant dense<0.000000e+00> : vector<17x32xf32>
    %115 = tpu.matmul %112, %114, %cst_31 {dimension_numbers = #tpu.dot_dimension_numbers<[1], [0], [0], [1], [0, 0, 1, 1], [], []>} : vector<17x8xbf16>, vector<8x32xbf16>, vector<17x32xf32> -> vector<17x32xf32>
    %116 = arith.addf %110, %115 : vector<17x32xf32>
    %117 = vector.extract_strided_slice %102 {offsets = [2, 0, 0], sizes = [1, 17, 8], strides = [1, 1, 1]} : vector<4x17x8xbf16> to vector<1x17x8xbf16>
    %118 = vector.shape_cast %117 : vector<1x17x8xbf16> to vector<17x8xbf16>
    %119 = vector.extract_strided_slice %103 {offsets = [2, 0, 0], sizes = [1, 8, 32], strides = [1, 1, 1]} : vector<4x8x32xbf16> to vector<1x8x32xbf16>
    %120 = vector.shape_cast %119 : vector<1x8x32xbf16> to vector<8x32xbf16>
    %cst_32 = arith.constant dense<0.000000e+00> : vector<17x32xf32>
    %121 = tpu.matmul %118, %120, %cst_32 {dimension_numbers = #tpu.dot_dimension_numbers<[1], [0], [0], [1], [0, 0, 1, 1], [], []>} : vector<17x8xbf16>, vector<8x32xbf16>, vector<17x32xf32> -> vector<17x32xf32>
    %122 = arith.addf %116, %121 : vector<17x32xf32>
    %123 = vector.extract_strided_slice %102 {offsets = [3, 0, 0], sizes = [1, 17, 8], strides = [1, 1, 1]} : vector<4x17x8xbf16> to vector<1x17x8xbf16>
    %124 = vector.shape_cast %123 : vector<1x17x8xbf16> to vector<17x8xbf16>
    %125 = vector.extract_strided_slice %103 {offsets = [3, 0, 0], sizes = [1, 8, 32], strides = [1, 1, 1]} : vector<4x8x32xbf16> to vector<1x8x32xbf16>
    %126 = vector.shape_cast %125 : vector<1x8x32xbf16> to vector<8x32xbf16>
    %cst_33 = arith.constant dense<0.000000e+00> : vector<17x32xf32>
    %127 = tpu.matmul %124, %126, %cst_33 {dimension_numbers = #tpu.dot_dimension_numbers<[1], [0], [0], [1], [0, 0, 1, 1], [], []>} : vector<17x8xbf16>, vector<8x32xbf16>, vector<17x32xf32> -> vector<17x32xf32>
    %128 = arith.addf %122, %127 : vector<17x32xf32>
    %129 = arith.addf %1, %128 : vector<17x32xf32>
    %c0_34 = arith.constant 0 : index
    %c0_35 = arith.constant 0 : index
    %130 = vector.load %arg9[%c0_34, %c0_35] : memref<1x32xf32, #tpu.memory_space<vmem>>, vector<1x32xf32>
    %131 = vector.broadcast %130 : vector<1x32xf32> to vector<17x32xf32>
    %132 = arith.addf %129, %131 : vector<17x32xf32>
    %c0_36 = arith.constant 0 : index
    %c0_37 = arith.constant 0 : index
    %133 = vector.load %arg10[%c0_36, %c0_37] : memref<1x32xf32, #tpu.memory_space<vmem>>, vector<1x32xf32>
    %c0_38 = arith.constant 0 : index
    %c0_39 = arith.constant 0 : index
    %134 = vector.load %arg11[%c0_38, %c0_39] : memref<1x32xf32, #tpu.memory_space<vmem>>, vector<1x32xf32>
    %cst_40 = arith.constant dense<0.000000e+00> : vector<17xf32>
    %135 = vector.multi_reduction <add>, %132, %cst_40 [1] : vector<17x32xf32> to vector<17xf32>
    %136 = vector.shape_cast %135 : vector<17xf32> to vector<17x1xf32>
    %cst_41 = arith.constant 3.200000e+01 : f32
    %137 = vector.broadcast %cst_41 : f32 to vector<17x1xf32>
    %138 = arith.divf %136, %137 : vector<17x1xf32>
    %139 = vector.broadcast %138 : vector<17x1xf32> to vector<17x32xf32>
    %140 = arith.subf %132, %139 : vector<17x32xf32>
    %141 = arith.mulf %140, %140 : vector<17x32xf32>
    %cst_42 = arith.constant dense<0.000000e+00> : vector<17xf32>
    %142 = vector.multi_reduction <add>, %141, %cst_42 [1] : vector<17x32xf32> to vector<17xf32>
    %143 = vector.shape_cast %142 : vector<17xf32> to vector<17x1xf32>
    %cst_43 = arith.constant 3.200000e+01 : f32
    %144 = vector.broadcast %cst_43 : f32 to vector<17x1xf32>
    %145 = arith.divf %143, %144 : vector<17x1xf32>
    %cst_44 = arith.constant 9.99999974E-6 : f32
    %146 = vector.broadcast %cst_44 : f32 to vector<17x1xf32>
    %147 = arith.addf %145, %146 : vector<17x1xf32>
    %148 = math.rsqrt %147 : vector<17x1xf32>
    %149 = vector.broadcast %148 : vector<17x1xf32> to vector<17x32xf32>
    %150 = arith.mulf %140, %149 : vector<17x32xf32>
    %151 = vector.broadcast %133 : vector<1x32xf32> to vector<17x32xf32>
    %152 = arith.mulf %150, %151 : vector<17x32xf32>
    %153 = vector.broadcast %134 : vector<1x32xf32> to vector<17x32xf32>
    %154 = arith.addf %152, %153 : vector<17x32xf32>
    %c0_45 = arith.constant 0 : index
    %c0_46 = arith.constant 0 : index
    %155 = vector.load %arg12[%c0_45, %c0_46] : memref<32x128xbf16, #tpu.memory_space<vmem>>, vector<32x128xbf16>
    %156 = arith.truncf %154 : vector<17x32xf32> to vector<17x32xbf16>
    %cst_47 = arith.constant dense<0.000000e+00> : vector<17x128xf32>
    %157 = tpu.matmul %156, %155, %cst_47 {dimension_numbers = #tpu.dot_dimension_numbers<[1], [0], [0], [1], [0, 0, 1, 1], [], []>} : vector<17x32xbf16>, vector<32x128xbf16>, vector<17x128xf32> -> vector<17x128xf32>
    %c0_48 = arith.constant 0 : index
    %c0_49 = arith.constant 0 : index
    %158 = vector.load %arg13[%c0_48, %c0_49] : memref<1x128xf32, #tpu.memory_space<vmem>>, vector<1x128xf32>
    %159 = vector.broadcast %158 : vector<1x128xf32> to vector<17x128xf32>
    %160 = arith.addf %157, %159 : vector<17x128xf32>
    %161 = arith.mulf %160, %160 : vector<17x128xf32>
    %162 = arith.mulf %160, %161 : vector<17x128xf32>
    %cst_50 = arith.constant 4.471500e-02 : f32
    %163 = vector.broadcast %cst_50 : f32 to vector<17x128xf32>
    %164 = arith.mulf %163, %162 : vector<17x128xf32>
    %165 = arith.addf %160, %164 : vector<17x128xf32>
    %cst_51 = arith.constant 0.797884583 : f32
    %166 = vector.broadcast %cst_51 : f32 to vector<17x128xf32>
    %167 = arith.mulf %166, %165 : vector<17x128xf32>
    %168 = math.tanh %167 : vector<17x128xf32>
    %cst_52 = arith.constant 1.000000e+00 : f32
    %169 = vector.broadcast %cst_52 : f32 to vector<17x128xf32>
    %170 = arith.addf %169, %168 : vector<17x128xf32>
    %cst_53 = arith.constant 5.000000e-01 : f32
    %171 = vector.broadcast %cst_53 : f32 to vector<17x128xf32>
    %172 = arith.mulf %171, %170 : vector<17x128xf32>
    %173 = arith.mulf %160, %172 : vector<17x128xf32>
    %c0_54 = arith.constant 0 : index
    %c0_55 = arith.constant 0 : index
    %174 = vector.load %arg14[%c0_54, %c0_55] : memref<128x32xbf16, #tpu.memory_space<vmem>>, vector<128x32xbf16>
    %175 = arith.truncf %173 : vector<17x128xf32> to vector<17x128xbf16>
    %cst_56 = arith.constant dense<0.000000e+00> : vector<17x32xf32>
    %176 = tpu.matmul %175, %174, %cst_56 {dimension_numbers = #tpu.dot_dimension_numbers<[1], [0], [0], [1], [0, 0, 1, 1], [], []>} : vector<17x128xbf16>, vector<128x32xbf16>, vector<17x32xf32> -> vector<17x32xf32>
    %177 = arith.addf %132, %176 : vector<17x32xf32>
    %c0_57 = arith.constant 0 : index
    %c0_58 = arith.constant 0 : index
    %178 = vector.load %arg15[%c0_57, %c0_58] : memref<1x32xf32, #tpu.memory_space<vmem>>, vector<1x32xf32>
    %179 = vector.broadcast %178 : vector<1x32xf32> to vector<17x32xf32>
    %180 = arith.addf %177, %179 : vector<17x32xf32>
    %181 = vector.extract_strided_slice %180 {offsets = [0, 0], sizes = [16, 32], strides = [1, 1]} : vector<17x32xf32> to vector<16x32xf32>
    %c0_59 = arith.constant 0 : index
    %c0_60 = arith.constant 0 : index
    %182 = vector.load %arg16[%c0_59, %c0_60] : memref<1x32xf32, #tpu.memory_space<vmem>>, vector<1x32xf32>
    %c0_61 = arith.constant 0 : index
    %c0_62 = arith.constant 0 : index
    %183 = vector.load %arg17[%c0_61, %c0_62] : memref<1x32xf32, #tpu.memory_space<vmem>>, vector<1x32xf32>
    %cst_63 = arith.constant dense<0.000000e+00> : vector<16xf32>
    %184 = vector.multi_reduction <add>, %181, %cst_63 [1] : vector<16x32xf32> to vector<16xf32>
    %185 = vector.shape_cast %184 : vector<16xf32> to vector<16x1xf32>
    %cst_64 = arith.constant 3.200000e+01 : f32
    %186 = vector.broadcast %cst_64 : f32 to vector<16x1xf32>
    %187 = arith.divf %185, %186 : vector<16x1xf32>
    %188 = vector.broadcast %187 : vector<16x1xf32> to vector<16x32xf32>
    %189 = arith.subf %181, %188 : vector<16x32xf32>
    %190 = arith.mulf %189, %189 : vector<16x32xf32>
    %cst_65 = arith.constant dense<0.000000e+00> : vector<16xf32>
    %191 = vector.multi_reduction <add>, %190, %cst_65 [1] : vector<16x32xf32> to vector<16xf32>
    %192 = vector.shape_cast %191 : vector<16xf32> to vector<16x1xf32>
    %cst_66 = arith.constant 3.200000e+01 : f32
    %193 = vector.broadcast %cst_66 : f32 to vector<16x1xf32>
    %194 = arith.divf %192, %193 : vector<16x1xf32>
    %cst_67 = arith.constant 9.99999974E-6 : f32
    %195 = vector.broadcast %cst_67 : f32 to vector<16x1xf32>
    %196 = arith.addf %194, %195 : vector<16x1xf32>
    %197 = math.rsqrt %196 : vector<16x1xf32>
    %198 = vector.broadcast %197 : vector<16x1xf32> to vector<16x32xf32>
    %199 = arith.mulf %189, %198 : vector<16x32xf32>
    %200 = vector.broadcast %182 : vector<1x32xf32> to vector<16x32xf32>
    %201 = arith.mulf %199, %200 : vector<16x32xf32>
    %202 = vector.broadcast %183 : vector<1x32xf32> to vector<16x32xf32>
    %203 = arith.addf %201, %202 : vector<16x32xf32>
    %c0_68 = arith.constant 0 : index
    %c0_69 = arith.constant 0 : index
    %c0_70 = arith.constant 0 : index
    %204 = vector.load %arg18[%c0_68, %c0_69, %c0_70] : memref<1x16x32xf32, #tpu.memory_space<vmem>>, vector<1x16x32xf32>
    %205 = vector.shape_cast %204 : vector<1x16x32xf32> to vector<16x32xf32>
    %206 = vector.shape_cast %203 : vector<16x32xf32> to vector<1x16x32xf32>
    tpu.vector_store %arg18[%c0_68, %c0_69, %c0_70], %206 {strides = array<i32>} : memref<1x16x32xf32, #tpu.memory_space<vmem>>, vector<1x16x32xf32>,
    return
  }
  func.func @transform_0(%arg0: i32) -> (i32, i32, i32) {
    %c0_i32 = arith.constant 0 : i32
    %c0_i32_0 = arith.constant 0 : i32
    %c0_i32_1 = arith.constant 0 : i32
    return %arg0, %c0_i32, %c0_i32_0 : i32, i32, i32
  }
  func.func @transform_1(%arg0: i32) -> (i32, i32) {
    %c0_i32 = arith.constant 0 : i32
    %c0_i32_0 = arith.constant 0 : i32
    %c0_i32_1 = arith.constant 0 : i32
    return %c0_i32, %c0_i32_0 : i32, i32
  }
  func.func @transform_2(%arg0: i32) -> (i32, i32) {
    %c0_i32 = arith.constant 0 : i32
    %c0_i32_0 = arith.constant 0 : i32
    %c0_i32_1 = arith.constant 0 : i32
    return %c0_i32, %c0_i32_0 : i32, i32
  }
  func.func @transform_3(%arg0: i32) -> (i32, i32) {
    %c0_i32 = arith.constant 0 : i32
    %c0_i32_0 = arith.constant 0 : i32
    %c0_i32_1 = arith.constant 0 : i32
    return %c0_i32, %c0_i32_0 : i32, i32
  }
  func.func @transform_4(%arg0: i32) -> (i32, i32) {
    %c0_i32 = arith.constant 0 : i32
    %c0_i32_0 = arith.constant 0 : i32
    %c0_i32_1 = arith.constant 0 : i32
    return %c0_i32, %c0_i32_0 : i32, i32
  }
  func.func @transform_5(%arg0: i32) -> (i32, i32) {
    %c0_i32 = arith.constant 0 : i32
    %c0_i32_0 = arith.constant 0 : i32
    %c0_i32_1 = arith.constant 0 : i32
    return %c0_i32, %c0_i32_0 : i32, i32
  }
  func.func @transform_6(%arg0: i32) -> (i32, i32) {
    %c0_i32 = arith.constant 0 : i32
    %c0_i32_0 = arith.constant 0 : i32
    %c0_i32_1 = arith.constant 0 : i32
    return %c0_i32, %c0_i32_0 : i32, i32
  }
  func.func @transform_7(%arg0: i32) -> (i32, i32, i32) {
    %c0_i32 = arith.constant 0 : i32
    %c0_i32_0 = arith.constant 0 : i32
    %c0_i32_1 = arith.constant 0 : i32
    %c0_i32_2 = arith.constant 0 : i32
    return %c0_i32, %c0_i32_0, %c0_i32_1 : i32, i32, i32
  }
  func.func @transform_8(%arg0: i32) -> (i32, i32) {
    %c0_i32 = arith.constant 0 : i32
    %c0_i32_0 = arith.constant 0 : i32
    %c0_i32_1 = arith.constant 0 : i32
    return %c0_i32, %c0_i32_0 : i32, i32
  }
  func.func @transform_9(%arg0: i32) -> (i32, i32) {
    %c0_i32 = arith.constant 0 : i32
    %c0_i32_0 = arith.constant 0 : i32
    %c0_i32_1 = arith.constant 0 : i32
    return %c0_i32, %c0_i32_0 : i32, i32
  }
  func.func @transform_10(%arg0: i32) -> (i32, i32) {
    %c0_i32 = arith.constant 0 : i32
    %c0_i32_0 = arith.constant 0 : i32
    %c0_i32_1 = arith.constant 0 : i32
    return %c0_i32, %c0_i32_0 : i32, i32
  }
  func.func @transform_11(%arg0: i32) -> (i32, i32) {
    %c0_i32 = arith.constant 0 : i32
    %c0_i32_0 = arith.constant 0 : i32
    %c0_i32_1 = arith.constant 0 : i32
    return %c0_i32, %c0_i32_0 : i32, i32
  }
  func.func @transform_12(%arg0: i32) -> (i32, i32) {
    %c0_i32 = arith.constant 0 : i32
    %c0_i32_0 = arith.constant 0 : i32
    %c0_i32_1 = arith.constant 0 : i32
    return %c0_i32, %c0_i32_0 : i32, i32
  }
  func.func @transform_13(%arg0: i32) -> (i32, i32) {
    %c0_i32 = arith.constant 0 : i32
    %c0_i32_0 = arith.constant 0 : i32
    %c0_i32_1 = arith.constant 0 : i32
    return %c0_i32, %c0_i32_0 : i32, i32
  }
  func.func @transform_14(%arg0: i32) -> (i32, i32) {
    %c0_i32 = arith.constant 0 : i32
    %c0_i32_0 = arith.constant 0 : i32
    %c0_i32_1 = arith.constant 0 : i32
    return %c0_i32, %c0_i32_0 : i32, i32
  }
  func.func @transform_15(%arg0: i32) -> (i32, i32) {
    %c0_i32 = arith.constant 0 : i32
    %c0_i32_0 = arith.constant 0 : i32
    %c0_i32_1 = arith.constant 0 : i32
    return %c0_i32, %c0_i32_0 : i32, i32
  }
  func.func @transform_16(%arg0: i32) -> (i32, i32) {
    %c0_i32 = arith.constant 0 : i32
    %c0_i32_0 = arith.constant 0 : i32
    %c0_i32_1 = arith.constant 0 : i32
    return %c0_i32, %c0_i32_0 : i32, i32
  }
  func.func @transform_17(%arg0: i32) -> (i32, i32, i32) {
    %c0_i32 = arith.constant 0 : i32
    %c0_i32_0 = arith.constant 0 : i32
    %c0_i32_1 = arith.constant 0 : i32
    return %arg0, %c0_i32, %c0_i32_0 : i32, i32, i32
  }
}

module attributes {stable_mosaic.version = 11 : i64} {
  func.func @_embed_kernel(%arg0: i32, %arg1: memref<1x16x48xf32, #tpu.memory_space<vmem>>, %arg2: memref<48x32xbf16, #tpu.memory_space<vmem>>, %arg3: memref<16x32xf32, #tpu.memory_space<vmem>>, %arg4: memref<1x32xf32, #tpu.memory_space<vmem>>, %arg5: memref<1x32xf32, #tpu.memory_space<vmem>>, %arg6: memref<1x32xf32, #tpu.memory_space<vmem>>, %arg7: memref<1x17x32xf32, #tpu.memory_space<vmem>>) attributes {dimension_semantics = [#tpu.dimension_semantics<parallel>], iteration_bounds = array<i64: 2>, scalar_prefetch = 0 : i64, scratch_operands = 0 : i64, tpu.core_type = #tpu.core_type<tc>, window_params = [{transform_indices = @transform_0, window_bounds = array<i64: 1, 16, 48>}, {pipeline_mode = #tpu.pipeline_mode<synchronous>, transform_indices = @transform_1, window_bounds = array<i64: 48, 32>}, {pipeline_mode = #tpu.pipeline_mode<synchronous>, transform_indices = @transform_2, window_bounds = array<i64: 16, 32>}, {pipeline_mode = #tpu.pipeline_mode<synchronous>, transform_indices = @transform_3, window_bounds = array<i64: 1, 32>}, {pipeline_mode = #tpu.pipeline_mode<synchronous>, transform_indices = @transform_4, window_bounds = array<i64: 1, 32>}, {pipeline_mode = #tpu.pipeline_mode<synchronous>, transform_indices = @transform_5, window_bounds = array<i64: 1, 32>}, {transform_indices = @transform_6, window_bounds = array<i64: 1, 17, 32>}]} {
    %c0 = arith.constant 0 : index
    %c0_0 = arith.constant 0 : index
    %0 = vector.load %arg5[%c0, %c0_0] : memref<1x32xf32, #tpu.memory_space<vmem>>, vector<1x32xf32>
    %c0_1 = arith.constant 0 : index
    %c0_2 = arith.constant 0 : index
    %1 = vector.load %arg6[%c0_1, %c0_2] : memref<1x32xf32, #tpu.memory_space<vmem>>, vector<1x32xf32>
    %c0_3 = arith.constant 0 : index
    %c0_4 = arith.constant 0 : index
    %c0_5 = arith.constant 0 : index
    %2 = vector.load %arg1[%c0_3, %c0_4, %c0_5] : memref<1x16x48xf32, #tpu.memory_space<vmem>>, vector<1x16x48xf32>
    %3 = vector.shape_cast %2 : vector<1x16x48xf32> to vector<16x48xf32>
    %c0_6 = arith.constant 0 : index
    %c0_7 = arith.constant 0 : index
    %4 = vector.load %arg2[%c0_6, %c0_7] : memref<48x32xbf16, #tpu.memory_space<vmem>>, vector<48x32xbf16>
    %5 = arith.truncf %3 : vector<16x48xf32> to vector<16x48xbf16>
    %cst = arith.constant dense<0.000000e+00> : vector<16x32xf32>
    %6 = tpu.matmul %5, %4, %cst {dimension_numbers = #tpu.dot_dimension_numbers<[1], [0], [0], [1], [0, 0, 1, 1], [], []>} : vector<16x48xbf16>, vector<48x32xbf16>, vector<16x32xf32> -> vector<16x32xf32>
    %c0_8 = arith.constant 0 : index
    %c0_9 = arith.constant 0 : index
    %7 = vector.load %arg3[%c0_8, %c0_9] : memref<16x32xf32, #tpu.memory_space<vmem>>, vector<16x32xf32>
    %8 = arith.addf %6, %7 : vector<16x32xf32>
    %cst_10 = arith.constant dense<0.000000e+00> : vector<16xf32>
    %9 = vector.multi_reduction <add>, %8, %cst_10 [1] : vector<16x32xf32> to vector<16xf32>
    %10 = vector.shape_cast %9 : vector<16xf32> to vector<16x1xf32>
    %cst_11 = arith.constant 3.200000e+01 : f32
    %11 = vector.broadcast %cst_11 : f32 to vector<16x1xf32>
    %12 = arith.divf %10, %11 : vector<16x1xf32>
    %13 = vector.broadcast %12 : vector<16x1xf32> to vector<16x32xf32>
    %14 = arith.subf %8, %13 : vector<16x32xf32>
    %15 = arith.mulf %14, %14 : vector<16x32xf32>
    %cst_12 = arith.constant dense<0.000000e+00> : vector<16xf32>
    %16 = vector.multi_reduction <add>, %15, %cst_12 [1] : vector<16x32xf32> to vector<16xf32>
    %17 = vector.shape_cast %16 : vector<16xf32> to vector<16x1xf32>
    %cst_13 = arith.constant 3.200000e+01 : f32
    %18 = vector.broadcast %cst_13 : f32 to vector<16x1xf32>
    %19 = arith.divf %17, %18 : vector<16x1xf32>
    %cst_14 = arith.constant 9.99999974E-6 : f32
    %20 = vector.broadcast %cst_14 : f32 to vector<16x1xf32>
    %21 = arith.addf %19, %20 : vector<16x1xf32>
    %22 = math.rsqrt %21 : vector<16x1xf32>
    %23 = vector.broadcast %22 : vector<16x1xf32> to vector<16x32xf32>
    %24 = arith.mulf %14, %23 : vector<16x32xf32>
    %25 = vector.broadcast %0 : vector<1x32xf32> to vector<16x32xf32>
    %26 = arith.mulf %24, %25 : vector<16x32xf32>
    %27 = vector.broadcast %1 : vector<1x32xf32> to vector<16x32xf32>
    %28 = arith.addf %26, %27 : vector<16x32xf32>
    %c0_15 = arith.constant 0 : index
    %c0_16 = arith.constant 0 : index
    %c0_17 = arith.constant 0 : index
    %29 = vector.load %arg7[%c0_15, %c0_16, %c0_17] : memref<1x17x32xf32, #tpu.memory_space<vmem>>, vector<1x16x32xf32>
    %30 = vector.shape_cast %29 : vector<1x16x32xf32> to vector<16x32xf32>
    %31 = vector.shape_cast %28 : vector<16x32xf32> to vector<1x16x32xf32>
    tpu.vector_store %arg7[%c0_15, %c0_16, %c0_17], %31 {strides = array<i32>} : memref<1x17x32xf32, #tpu.memory_space<vmem>>, vector<1x16x32xf32>,
    %c0_18 = arith.constant 0 : index
    %c0_19 = arith.constant 0 : index
    %32 = vector.load %arg4[%c0_18, %c0_19] : memref<1x32xf32, #tpu.memory_space<vmem>>, vector<1x32xf32>
    %cst_20 = arith.constant dense<0.000000e+00> : vector<1xf32>
    %33 = vector.multi_reduction <add>, %32, %cst_20 [1] : vector<1x32xf32> to vector<1xf32>
    %34 = vector.shape_cast %33 : vector<1xf32> to vector<1x1xf32>
    %cst_21 = arith.constant 3.200000e+01 : f32
    %35 = vector.broadcast %cst_21 : f32 to vector<1x1xf32>
    %36 = arith.divf %34, %35 : vector<1x1xf32>
    %37 = vector.broadcast %36 : vector<1x1xf32> to vector<1x32xf32>
    %38 = arith.subf %32, %37 : vector<1x32xf32>
    %39 = arith.mulf %38, %38 : vector<1x32xf32>
    %cst_22 = arith.constant dense<0.000000e+00> : vector<1xf32>
    %40 = vector.multi_reduction <add>, %39, %cst_22 [1] : vector<1x32xf32> to vector<1xf32>
    %41 = vector.shape_cast %40 : vector<1xf32> to vector<1x1xf32>
    %cst_23 = arith.constant 3.200000e+01 : f32
    %42 = vector.broadcast %cst_23 : f32 to vector<1x1xf32>
    %43 = arith.divf %41, %42 : vector<1x1xf32>
    %cst_24 = arith.constant 9.99999974E-6 : f32
    %44 = vector.broadcast %cst_24 : f32 to vector<1x1xf32>
    %45 = arith.addf %43, %44 : vector<1x1xf32>
    %46 = math.rsqrt %45 : vector<1x1xf32>
    %47 = vector.broadcast %46 : vector<1x1xf32> to vector<1x32xf32>
    %48 = arith.mulf %38, %47 : vector<1x32xf32>
    %49 = arith.mulf %48, %0 : vector<1x32xf32>
    %50 = arith.addf %49, %1 : vector<1x32xf32>
    %c0_25 = arith.constant 0 : index
    %c16 = arith.constant 16 : index
    %c0_26 = arith.constant 0 : index
    %51 = vector.load %arg7[%c0_25, %c16, %c0_26] : memref<1x17x32xf32, #tpu.memory_space<vmem>>, vector<1x1x32xf32>
    %52 = vector.shape_cast %51 : vector<1x1x32xf32> to vector<1x32xf32>
    %53 = vector.shape_cast %50 : vector<1x32xf32> to vector<1x1x32xf32>
    tpu.vector_store %arg7[%c0_25, %c16, %c0_26], %53 {strides = array<i32>} : memref<1x17x32xf32, #tpu.memory_space<vmem>>, vector<1x1x32xf32>,
    return
  }
  func.func @transform_0(%arg0: i32) -> (i32, i32, i32) {
    %c0_i32 = arith.constant 0 : i32
    %c0_i32_0 = arith.constant 0 : i32
    %c0_i32_1 = arith.constant 0 : i32
    return %arg0, %c0_i32, %c0_i32_0 : i32, i32, i32
  }
  func.func @transform_1(%arg0: i32) -> (i32, i32) {
    %c0_i32 = arith.constant 0 : i32
    %c0_i32_0 = arith.constant 0 : i32
    %c0_i32_1 = arith.constant 0 : i32
    return %c0_i32, %c0_i32_0 : i32, i32
  }
  func.func @transform_2(%arg0: i32) -> (i32, i32) {
    %c0_i32 = arith.constant 0 : i32
    %c0_i32_0 = arith.constant 0 : i32
    %c0_i32_1 = arith.constant 0 : i32
    return %c0_i32, %c0_i32_0 : i32, i32
  }
  func.func @transform_3(%arg0: i32) -> (i32, i32) {
    %c0_i32 = arith.constant 0 : i32
    %c0_i32_0 = arith.constant 0 : i32
    %c0_i32_1 = arith.constant 0 : i32
    return %c0_i32, %c0_i32_0 : i32, i32
  }
  func.func @transform_4(%arg0: i32) -> (i32, i32) {
    %c0_i32 = arith.constant 0 : i32
    %c0_i32_0 = arith.constant 0 : i32
    %c0_i32_1 = arith.constant 0 : i32
    return %c0_i32, %c0_i32_0 : i32, i32
  }
  func.func @transform_5(%arg0: i32) -> (i32, i32) {
    %c0_i32 = arith.constant 0 : i32
    %c0_i32_0 = arith.constant 0 : i32
    %c0_i32_1 = arith.constant 0 : i32
    return %c0_i32, %c0_i32_0 : i32, i32
  }
  func.func @transform_6(%arg0: i32) -> (i32, i32, i32) {
    %c0_i32 = arith.constant 0 : i32
    %c0_i32_0 = arith.constant 0 : i32
    %c0_i32_1 = arith.constant 0 : i32
    return %arg0, %c0_i32, %c0_i32_0 : i32, i32, i32
  }
}

module attributes {stable_mosaic.version = 11 : i64} {
  func.func @_encoder_layer_kernel(%arg0: i32, %arg1: memref<1x17x32xf32, #tpu.memory_space<vmem>>, %arg2: memref<17x8xf32, #tpu.memory_space<vmem>>, %arg3: memref<17x8xf32, #tpu.memory_space<vmem>>, %arg4: memref<1x32xf32, #tpu.memory_space<vmem>>, %arg5: memref<1x32xf32, #tpu.memory_space<vmem>>, %arg6: memref<32x96xbf16, #tpu.memory_space<vmem>>, %arg7: memref<1x96xf32, #tpu.memory_space<vmem>>, %arg8: memref<4x8x32xbf16, #tpu.memory_space<vmem>>, %arg9: memref<1x32xf32, #tpu.memory_space<vmem>>, %arg10: memref<1x32xf32, #tpu.memory_space<vmem>>, %arg11: memref<1x32xf32, #tpu.memory_space<vmem>>, %arg12: memref<32x128xbf16, #tpu.memory_space<vmem>>, %arg13: memref<1x128xf32, #tpu.memory_space<vmem>>, %arg14: memref<128x32xbf16, #tpu.memory_space<vmem>>, %arg15: memref<1x32xf32, #tpu.memory_space<vmem>>, %arg16: memref<1x32xf32, #tpu.memory_space<vmem>>, %arg17: memref<1x32xf32, #tpu.memory_space<vmem>>, %arg18: memref<1x17x32xf32, #tpu.memory_space<vmem>>) attributes {dimension_semantics = [#tpu.dimension_semantics<parallel>], iteration_bounds = array<i64: 2>, scalar_prefetch = 0 : i64, scratch_operands = 0 : i64, tpu.core_type = #tpu.core_type<tc>, window_params = [{transform_indices = @transform_0, window_bounds = array<i64: 1, 17, 32>}, {pipeline_mode = #tpu.pipeline_mode<synchronous>, transform_indices = @transform_1, window_bounds = array<i64: 17, 8>}, {pipeline_mode = #tpu.pipeline_mode<synchronous>, transform_indices = @transform_2, window_bounds = array<i64: 17, 8>}, {pipeline_mode = #tpu.pipeline_mode<synchronous>, transform_indices = @transform_3, window_bounds = array<i64: 1, 32>}, {pipeline_mode = #tpu.pipeline_mode<synchronous>, transform_indices = @transform_4, window_bounds = array<i64: 1, 32>}, {pipeline_mode = #tpu.pipeline_mode<synchronous>, transform_indices = @transform_5, window_bounds = array<i64: 32, 96>}, {pipeline_mode = #tpu.pipeline_mode<synchronous>, transform_indices = @transform_6, window_bounds = array<i64: 1, 96>}, {pipeline_mode = #tpu.pipeline_mode<synchronous>, transform_indices = @transform_7, window_bounds = array<i64: 4, 8, 32>}, {pipeline_mode = #tpu.pipeline_mode<synchronous>, transform_indices = @transform_8, window_bounds = array<i64: 1, 32>}, {pipeline_mode = #tpu.pipeline_mode<synchronous>, transform_indices = @transform_9, window_bounds = array<i64: 1, 32>}, {pipeline_mode = #tpu.pipeline_mode<synchronous>, transform_indices = @transform_10, window_bounds = array<i64: 1, 32>}, {pipeline_mode = #tpu.pipeline_mode<synchronous>, transform_indices = @transform_11, window_bounds = array<i64: 32, 128>}, {pipeline_mode = #tpu.pipeline_mode<synchronous>, transform_indices = @transform_12, window_bounds = array<i64: 1, 128>}, {pipeline_mode = #tpu.pipeline_mode<synchronous>, transform_indices = @transform_13, window_bounds = array<i64: 128, 32>}, {pipeline_mode = #tpu.pipeline_mode<synchronous>, transform_indices = @transform_14, window_bounds = array<i64: 1, 32>}, {pipeline_mode = #tpu.pipeline_mode<synchronous>, transform_indices = @transform_15, window_bounds = array<i64: 1, 32>}, {pipeline_mode = #tpu.pipeline_mode<synchronous>, transform_indices = @transform_16, window_bounds = array<i64: 1, 32>}, {transform_indices = @transform_17, window_bounds = array<i64: 1, 17, 32>}]} {
    %c0 = arith.constant 0 : index
    %c0_0 = arith.constant 0 : index
    %c0_1 = arith.constant 0 : index
    %0 = vector.load %arg1[%c0, %c0_0, %c0_1] : memref<1x17x32xf32, #tpu.memory_space<vmem>>, vector<1x17x32xf32>
    %1 = vector.shape_cast %0 : vector<1x17x32xf32> to vector<17x32xf32>
    %c0_2 = arith.constant 0 : index
    %c0_3 = arith.constant 0 : index
    %2 = vector.load %arg4[%c0_2, %c0_3] : memref<1x32xf32, #tpu.memory_space<vmem>>, vector<1x32xf32>
    %c0_4 = arith.constant 0 : index
    %c0_5 = arith.constant 0 : index
    %3 = vector.load %arg5[%c0_4, %c0_5] : memref<1x32xf32, #tpu.memory_space<vmem>>, vector<1x32xf32>
    %cst = arith.constant dense<0.000000e+00> : vector<17xf32>
    %4 = vector.multi_reduction <add>, %1, %cst [1] : vector<17x32xf32> to vector<17xf32>
    %5 = vector.shape_cast %4 : vector<17xf32> to vector<17x1xf32>
    %cst_6 = arith.constant 3.200000e+01 : f32
    %6 = vector.broadcast %cst_6 : f32 to vector<17x1xf32>
    %7 = arith.divf %5, %6 : vector<17x1xf32>
    %8 = vector.broadcast %7 : vector<17x1xf32> to vector<17x32xf32>
    %9 = arith.subf %1, %8 : vector<17x32xf32>
    %10 = arith.mulf %9, %9 : vector<17x32xf32>
    %cst_7 = arith.constant dense<0.000000e+00> : vector<17xf32>
    %11 = vector.multi_reduction <add>, %10, %cst_7 [1] : vector<17x32xf32> to vector<17xf32>
    %12 = vector.shape_cast %11 : vector<17xf32> to vector<17x1xf32>
    %cst_8 = arith.constant 3.200000e+01 : f32
    %13 = vector.broadcast %cst_8 : f32 to vector<17x1xf32>
    %14 = arith.divf %12, %13 : vector<17x1xf32>
    %cst_9 = arith.constant 9.99999974E-6 : f32
    %15 = vector.broadcast %cst_9 : f32 to vector<17x1xf32>
    %16 = arith.addf %14, %15 : vector<17x1xf32>
    %17 = math.rsqrt %16 : vector<17x1xf32>
    %18 = vector.broadcast %17 : vector<17x1xf32> to vector<17x32xf32>
    %19 = arith.mulf %9, %18 : vector<17x32xf32>
    %20 = vector.broadcast %2 : vector<1x32xf32> to vector<17x32xf32>
    %21 = arith.mulf %19, %20 : vector<17x32xf32>
    %22 = vector.broadcast %3 : vector<1x32xf32> to vector<17x32xf32>
    %23 = arith.addf %21, %22 : vector<17x32xf32>
    %c0_10 = arith.constant 0 : index
    %c0_11 = arith.constant 0 : index
    %24 = vector.load %arg6[%c0_10, %c0_11] : memref<32x96xbf16, #tpu.memory_space<vmem>>, vector<32x96xbf16>
    %25 = arith.truncf %23 : vector<17x32xf32> to vector<17x32xbf16>
    %cst_12 = arith.constant dense<0.000000e+00> : vector<17x96xf32>
    %26 = tpu.matmul %25, %24, %cst_12 {dimension_numbers = #tpu.dot_dimension_numbers<[1], [0], [0], [1], [0, 0, 1, 1], [], []>} : vector<17x32xbf16>, vector<32x96xbf16>, vector<17x96xf32> -> vector<17x96xf32>
    %c0_13 = arith.constant 0 : index
    %c0_14 = arith.constant 0 : index
    %27 = vector.load %arg7[%c0_13, %c0_14] : memref<1x96xf32, #tpu.memory_space<vmem>>, vector<1x96xf32>
    %28 = vector.broadcast %27 : vector<1x96xf32> to vector<17x96xf32>
    %29 = arith.addf %26, %28 : vector<17x96xf32>
    %30 = vector.extract_strided_slice %29 {offsets = [0, 0], sizes = [17, 32], strides = [1, 1]} : vector<17x96xf32> to vector<17x32xf32>
    %31 = vector.extract_strided_slice %30 {offsets = [0, 0], sizes = [17, 8], strides = [1, 1]} : vector<17x32xf32> to vector<17x8xf32>
    %32 = vector.shape_cast %31 : vector<17x8xf32> to vector<1x17x8xf32>
    %33 = vector.extract_strided_slice %30 {offsets = [0, 8], sizes = [17, 8], strides = [1, 1]} : vector<17x32xf32> to vector<17x8xf32>
    %34 = vector.shape_cast %33 : vector<17x8xf32> to vector<1x17x8xf32>
    %35 = vector.extract_strided_slice %30 {offsets = [0, 16], sizes = [17, 8], strides = [1, 1]} : vector<17x32xf32> to vector<17x8xf32>
    %36 = vector.shape_cast %35 : vector<17x8xf32> to vector<1x17x8xf32>
    %37 = vector.extract_strided_slice %30 {offsets = [0, 24], sizes = [17, 8], strides = [1, 1]} : vector<17x32xf32> to vector<17x8xf32>
    %38 = vector.shape_cast %37 : vector<17x8xf32> to vector<1x17x8xf32>
    %39 = tpu.concatenate %32, %34, %36, %38 in 0 : vector<1x17x8xf32>, vector<1x17x8xf32>, vector<1x17x8xf32>, vector<1x17x8xf32> -> vector<4x17x8xf32>
    %40 = vector.extract_strided_slice %29 {offsets = [0, 32], sizes = [17, 32], strides = [1, 1]} : vector<17x96xf32> to vector<17x32xf32>
    %41 = vector.extract_strided_slice %40 {offsets = [0, 0], sizes = [17, 8], strides = [1, 1]} : vector<17x32xf32> to vector<17x8xf32>
    %42 = vector.shape_cast %41 : vector<17x8xf32> to vector<1x17x8xf32>
    %43 = vector.extract_strided_slice %40 {offsets = [0, 8], sizes = [17, 8], strides = [1, 1]} : vector<17x32xf32> to vector<17x8xf32>
    %44 = vector.shape_cast %43 : vector<17x8xf32> to vector<1x17x8xf32>
    %45 = vector.extract_strided_slice %40 {offsets = [0, 16], sizes = [17, 8], strides = [1, 1]} : vector<17x32xf32> to vector<17x8xf32>
    %46 = vector.shape_cast %45 : vector<17x8xf32> to vector<1x17x8xf32>
    %47 = vector.extract_strided_slice %40 {offsets = [0, 24], sizes = [17, 8], strides = [1, 1]} : vector<17x32xf32> to vector<17x8xf32>
    %48 = vector.shape_cast %47 : vector<17x8xf32> to vector<1x17x8xf32>
    %49 = tpu.concatenate %42, %44, %46, %48 in 0 : vector<1x17x8xf32>, vector<1x17x8xf32>, vector<1x17x8xf32>, vector<1x17x8xf32> -> vector<4x17x8xf32>
    %50 = vector.extract_strided_slice %29 {offsets = [0, 64], sizes = [17, 32], strides = [1, 1]} : vector<17x96xf32> to vector<17x32xf32>
    %51 = vector.extract_strided_slice %50 {offsets = [0, 0], sizes = [17, 8], strides = [1, 1]} : vector<17x32xf32> to vector<17x8xf32>
    %52 = vector.shape_cast %51 : vector<17x8xf32> to vector<1x17x8xf32>
    %53 = vector.extract_strided_slice %50 {offsets = [0, 8], sizes = [17, 8], strides = [1, 1]} : vector<17x32xf32> to vector<17x8xf32>
    %54 = vector.shape_cast %53 : vector<17x8xf32> to vector<1x17x8xf32>
    %55 = vector.extract_strided_slice %50 {offsets = [0, 16], sizes = [17, 8], strides = [1, 1]} : vector<17x32xf32> to vector<17x8xf32>
    %56 = vector.shape_cast %55 : vector<17x8xf32> to vector<1x17x8xf32>
    %57 = vector.extract_strided_slice %50 {offsets = [0, 24], sizes = [17, 8], strides = [1, 1]} : vector<17x32xf32> to vector<17x8xf32>
    %58 = vector.shape_cast %57 : vector<17x8xf32> to vector<1x17x8xf32>
    %59 = tpu.concatenate %52, %54, %56, %58 in 0 : vector<1x17x8xf32>, vector<1x17x8xf32>, vector<1x17x8xf32>, vector<1x17x8xf32> -> vector<4x17x8xf32>
    %c0_15 = arith.constant 0 : index
    %c0_16 = arith.constant 0 : index
    %60 = vector.load %arg2[%c0_15, %c0_16] : memref<17x8xf32, #tpu.memory_space<vmem>>, vector<17x8xf32>
    %61 = vector.shape_cast %60 : vector<17x8xf32> to vector<1x17x8xf32>
    %c0_17 = arith.constant 0 : index
    %c0_18 = arith.constant 0 : index
    %62 = vector.load %arg3[%c0_17, %c0_18] : memref<17x8xf32, #tpu.memory_space<vmem>>, vector<17x8xf32>
    %63 = vector.shape_cast %62 : vector<17x8xf32> to vector<1x17x8xf32>
    %64 = vector.extract_strided_slice %39 {offsets = [0, 0, 4], sizes = [4, 17, 4], strides = [1, 1, 1]} : vector<4x17x8xf32> to vector<4x17x4xf32>
    %cst_19 = arith.constant 0.000000e+00 : f32
    %65 = vector.broadcast %cst_19 : f32 to vector<4x17x4xf32>
    %66 = arith.subf %65, %64 : vector<4x17x4xf32>
    %67 = vector.extract_strided_slice %39 {offsets = [0, 0, 0], sizes = [4, 17, 4], strides = [1, 1, 1]} : vector<4x17x8xf32> to vector<4x17x4xf32>
    %68 = tpu.concatenate %66, %67 in 2 : vector<4x17x4xf32>, vector<4x17x4xf32> -> vector<4x17x8xf32>
    %69 = vector.broadcast %61 : vector<1x17x8xf32> to vector<4x17x8xf32>
    %70 = arith.mulf %39, %69 : vector<4x17x8xf32>
    %71 = vector.broadcast %63 : vector<1x17x8xf32> to vector<4x17x8xf32>
    %72 = arith.mulf %68, %71 : vector<4x17x8xf32>
    %73 = arith.addf %70, %72 : vector<4x17x8xf32>
    %cst_20 = arith.constant 0.353553385 : f32
    %74 = vector.broadcast %cst_20 : f32 to vector<4x17x8xf32>
    %75 = arith.mulf %73, %74 : vector<4x17x8xf32>
    %76 = arith.truncf %75 : vector<4x17x8xf32> to vector<4x17x8xbf16>
    %77 = vector.extract_strided_slice %49 {offsets = [0, 0, 4], sizes = [4, 17, 4], strides = [1, 1, 1]} : vector<4x17x8xf32> to vector<4x17x4xf32>
    %cst_21 = arith.constant 0.000000e+00 : f32
    %78 = vector.broadcast %cst_21 : f32 to vector<4x17x4xf32>
    %79 = arith.subf %78, %77 : vector<4x17x4xf32>
    %80 = vector.extract_strided_slice %49 {offsets = [0, 0, 0], sizes = [4, 17, 4], strides = [1, 1, 1]} : vector<4x17x8xf32> to vector<4x17x4xf32>
    %81 = tpu.concatenate %79, %80 in 2 : vector<4x17x4xf32>, vector<4x17x4xf32> -> vector<4x17x8xf32>
    %82 = vector.broadcast %61 : vector<1x17x8xf32> to vector<4x17x8xf32>
    %83 = arith.mulf %49, %82 : vector<4x17x8xf32>
    %84 = vector.broadcast %63 : vector<1x17x8xf32> to vector<4x17x8xf32>
    %85 = arith.mulf %81, %84 : vector<4x17x8xf32>
    %86 = arith.addf %83, %85 : vector<4x17x8xf32>
    %87 = arith.truncf %86 : vector<4x17x8xf32> to vector<4x17x8xbf16>
    %88 = arith.truncf %59 : vector<4x17x8xf32> to vector<4x17x8xbf16>
    %cst_22 = arith.constant dense<0.000000e+00> : vector<4x17x17xf32>
    %89 = tpu.matmul %76, %87, %cst_22 {dimension_numbers = #tpu.dot_dimension_numbers<[2], [2], [1], [1], [0, 0, 0, 1, 1, 1], [0], [0]>} : vector<4x17x8xbf16>, vector<4x17x8xbf16>, vector<4x17x17xf32> -> vector<4x17x17xf32>
    %cst_23 = arith.constant dense<0xFF800000> : vector<4x17xf32>
    %90 = vector.multi_reduction <maximumf>, %89, %cst_23 [2] : vector<4x17x17xf32> to vector<4x17xf32>
    %91 = vector.shape_cast %90 : vector<4x17xf32> to vector<4x17x1xf32>
    %92 = vector.broadcast %91 : vector<4x17x1xf32> to vector<4x17x17xf32>
    %93 = arith.subf %89, %92 : vector<4x17x17xf32>
    %94 = math.exp %93 : vector<4x17x17xf32>
    %cst_24 = arith.constant dense<0.000000e+00> : vector<4x17xf32>
    %95 = vector.multi_reduction <add>, %94, %cst_24 [2] : vector<4x17x17xf32> to vector<4x17xf32>
    %96 = vector.shape_cast %95 : vector<4x17xf32> to vector<4x17x1xf32>
    %97 = arith.truncf %94 : vector<4x17x17xf32> to vector<4x17x17xbf16>
    %cst_25 = arith.constant dense<0.000000e+00> : vector<4x17x8xf32>
    %98 = tpu.matmul %97, %88, %cst_25 {dimension_numbers = #tpu.dot_dimension_numbers<[2], [1], [1], [2], [0, 0, 0, 1, 1, 2], [0], [0]>} : vector<4x17x17xbf16>, vector<4x17x8xbf16>, vector<4x17x8xf32> -> vector<4x17x8xf32>
    %99 = tpu.reciprocal %96 {approx = true} : vector<4x17x1xf32> -> vector<4x17x1xf32>
    %100 = vector.broadcast %99 : vector<4x17x1xf32> to vector<4x17x8xf32>
    %101 = arith.mulf %98, %100 : vector<4x17x8xf32>
    %102 = arith.truncf %101 : vector<4x17x8xf32> to vector<4x17x8xbf16>
    %c0_26 = arith.constant 0 : index
    %c0_27 = arith.constant 0 : index
    %c0_28 = arith.constant 0 : index
    %103 = vector.load %arg8[%c0_26, %c0_27, %c0_28] : memref<4x8x32xbf16, #tpu.memory_space<vmem>>, vector<4x8x32xbf16>
    %cst_29 = arith.constant 0.000000e+00 : f32
    %104 = vector.broadcast %cst_29 : f32 to vector<17x32xf32>
    %105 = vector.extract_strided_slice %102 {offsets = [0, 0, 0], sizes = [1, 17, 8], strides = [1, 1, 1]} : vector<4x17x8xbf16> to vector<1x17x8xbf16>
    %106 = vector.shape_cast %105 : vector<1x17x8xbf16> to vector<17x8xbf16>
    %107 = vector.extract_strided_slice %103 {offsets = [0, 0, 0], sizes = [1, 8, 32], strides = [1, 1, 1]} : vector<4x8x32xbf16> to vector<1x8x32xbf16>
    %108 = vector.shape_cast %107 : vector<1x8x32xbf16> to vector<8x32xbf16>
    %cst_30 = arith.constant dense<0.000000e+00> : vector<17x32xf32>
    %109 = tpu.matmul %106, %108, %cst_30 {dimension_numbers = #tpu.dot_dimension_numbers<[1], [0], [0], [1], [0, 0, 1, 1], [], []>} : vector<17x8xbf16>, vector<8x32xbf16>, vector<17x32xf32> -> vector<17x32xf32>
    %110 = arith.addf %104, %109 : vector<17x32xf32>
    %111 = vector.extract_strided_slice %102 {offsets = [1, 0, 0], sizes = [1, 17, 8], strides = [1, 1, 1]} : vector<4x17x8xbf16> to vector<1x17x8xbf16>
    %112 = vector.shape_cast %111 : vector<1x17x8xbf16> to vector<17x8xbf16>
    %113 = vector.extract_strided_slice %103 {offsets = [1, 0, 0], sizes = [1, 8, 32], strides = [1, 1, 1]} : vector<4x8x32xbf16> to vector<1x8x32xbf16>
    %114 = vector.shape_cast %113 : vector<1x8x32xbf16> to vector<8x32xbf16>
    %cst_31 = arith.constant dense<0.000000e+00> : vector<17x32xf32>
    %115 = tpu.matmul %112, %114, %cst_31 {dimension_numbers = #tpu.dot_dimension_numbers<[1], [0], [0], [1], [0, 0, 1, 1], [], []>} : vector<17x8xbf16>, vector<8x32xbf16>, vector<17x32xf32> -> vector<17x32xf32>
    %116 = arith.addf %110, %115 : vector<17x32xf32>
    %117 = vector.extract_strided_slice %102 {offsets = [2, 0, 0], sizes = [1, 17, 8], strides = [1, 1, 1]} : vector<4x17x8xbf16> to vector<1x17x8xbf16>
    %118 = vector.shape_cast %117 : vector<1x17x8xbf16> to vector<17x8xbf16>
    %119 = vector.extract_strided_slice %103 {offsets = [2, 0, 0], sizes = [1, 8, 32], strides = [1, 1, 1]} : vector<4x8x32xbf16> to vector<1x8x32xbf16>
    %120 = vector.shape_cast %119 : vector<1x8x32xbf16> to vector<8x32xbf16>
    %cst_32 = arith.constant dense<0.000000e+00> : vector<17x32xf32>
    %121 = tpu.matmul %118, %120, %cst_32 {dimension_numbers = #tpu.dot_dimension_numbers<[1], [0], [0], [1], [0, 0, 1, 1], [], []>} : vector<17x8xbf16>, vector<8x32xbf16>, vector<17x32xf32> -> vector<17x32xf32>
    %122 = arith.addf %116, %121 : vector<17x32xf32>
    %123 = vector.extract_strided_slice %102 {offsets = [3, 0, 0], sizes = [1, 17, 8], strides = [1, 1, 1]} : vector<4x17x8xbf16> to vector<1x17x8xbf16>
    %124 = vector.shape_cast %123 : vector<1x17x8xbf16> to vector<17x8xbf16>
    %125 = vector.extract_strided_slice %103 {offsets = [3, 0, 0], sizes = [1, 8, 32], strides = [1, 1, 1]} : vector<4x8x32xbf16> to vector<1x8x32xbf16>
    %126 = vector.shape_cast %125 : vector<1x8x32xbf16> to vector<8x32xbf16>
    %cst_33 = arith.constant dense<0.000000e+00> : vector<17x32xf32>
    %127 = tpu.matmul %124, %126, %cst_33 {dimension_numbers = #tpu.dot_dimension_numbers<[1], [0], [0], [1], [0, 0, 1, 1], [], []>} : vector<17x8xbf16>, vector<8x32xbf16>, vector<17x32xf32> -> vector<17x32xf32>
    %128 = arith.addf %122, %127 : vector<17x32xf32>
    %129 = arith.addf %1, %128 : vector<17x32xf32>
    %c0_34 = arith.constant 0 : index
    %c0_35 = arith.constant 0 : index
    %130 = vector.load %arg9[%c0_34, %c0_35] : memref<1x32xf32, #tpu.memory_space<vmem>>, vector<1x32xf32>
    %131 = vector.broadcast %130 : vector<1x32xf32> to vector<17x32xf32>
    %132 = arith.addf %129, %131 : vector<17x32xf32>
    %c0_36 = arith.constant 0 : index
    %c0_37 = arith.constant 0 : index
    %133 = vector.load %arg10[%c0_36, %c0_37] : memref<1x32xf32, #tpu.memory_space<vmem>>, vector<1x32xf32>
    %c0_38 = arith.constant 0 : index
    %c0_39 = arith.constant 0 : index
    %134 = vector.load %arg11[%c0_38, %c0_39] : memref<1x32xf32, #tpu.memory_space<vmem>>, vector<1x32xf32>
    %cst_40 = arith.constant dense<0.000000e+00> : vector<17xf32>
    %135 = vector.multi_reduction <add>, %132, %cst_40 [1] : vector<17x32xf32> to vector<17xf32>
    %136 = vector.shape_cast %135 : vector<17xf32> to vector<17x1xf32>
    %cst_41 = arith.constant 3.200000e+01 : f32
    %137 = vector.broadcast %cst_41 : f32 to vector<17x1xf32>
    %138 = arith.divf %136, %137 : vector<17x1xf32>
    %139 = vector.broadcast %138 : vector<17x1xf32> to vector<17x32xf32>
    %140 = arith.subf %132, %139 : vector<17x32xf32>
    %141 = arith.mulf %140, %140 : vector<17x32xf32>
    %cst_42 = arith.constant dense<0.000000e+00> : vector<17xf32>
    %142 = vector.multi_reduction <add>, %141, %cst_42 [1] : vector<17x32xf32> to vector<17xf32>
    %143 = vector.shape_cast %142 : vector<17xf32> to vector<17x1xf32>
    %cst_43 = arith.constant 3.200000e+01 : f32
    %144 = vector.broadcast %cst_43 : f32 to vector<17x1xf32>
    %145 = arith.divf %143, %144 : vector<17x1xf32>
    %cst_44 = arith.constant 9.99999974E-6 : f32
    %146 = vector.broadcast %cst_44 : f32 to vector<17x1xf32>
    %147 = arith.addf %145, %146 : vector<17x1xf32>
    %148 = math.rsqrt %147 : vector<17x1xf32>
    %149 = vector.broadcast %148 : vector<17x1xf32> to vector<17x32xf32>
    %150 = arith.mulf %140, %149 : vector<17x32xf32>
    %151 = vector.broadcast %133 : vector<1x32xf32> to vector<17x32xf32>
    %152 = arith.mulf %150, %151 : vector<17x32xf32>
    %153 = vector.broadcast %134 : vector<1x32xf32> to vector<17x32xf32>
    %154 = arith.addf %152, %153 : vector<17x32xf32>
    %c0_45 = arith.constant 0 : index
    %c0_46 = arith.constant 0 : index
    %155 = vector.load %arg12[%c0_45, %c0_46] : memref<32x128xbf16, #tpu.memory_space<vmem>>, vector<32x128xbf16>
    %156 = arith.truncf %154 : vector<17x32xf32> to vector<17x32xbf16>
    %cst_47 = arith.constant dense<0.000000e+00> : vector<17x128xf32>
    %157 = tpu.matmul %156, %155, %cst_47 {dimension_numbers = #tpu.dot_dimension_numbers<[1], [0], [0], [1], [0, 0, 1, 1], [], []>} : vector<17x32xbf16>, vector<32x128xbf16>, vector<17x128xf32> -> vector<17x128xf32>
    %c0_48 = arith.constant 0 : index
    %c0_49 = arith.constant 0 : index
    %158 = vector.load %arg13[%c0_48, %c0_49] : memref<1x128xf32, #tpu.memory_space<vmem>>, vector<1x128xf32>
    %159 = vector.broadcast %158 : vector<1x128xf32> to vector<17x128xf32>
    %160 = arith.addf %157, %159 : vector<17x128xf32>
    %161 = arith.mulf %160, %160 : vector<17x128xf32>
    %162 = arith.mulf %160, %161 : vector<17x128xf32>
    %cst_50 = arith.constant 4.471500e-02 : f32
    %163 = vector.broadcast %cst_50 : f32 to vector<17x128xf32>
    %164 = arith.mulf %163, %162 : vector<17x128xf32>
    %165 = arith.addf %160, %164 : vector<17x128xf32>
    %cst_51 = arith.constant 0.797884583 : f32
    %166 = vector.broadcast %cst_51 : f32 to vector<17x128xf32>
    %167 = arith.mulf %166, %165 : vector<17x128xf32>
    %168 = math.tanh %167 : vector<17x128xf32>
    %cst_52 = arith.constant 1.000000e+00 : f32
    %169 = vector.broadcast %cst_52 : f32 to vector<17x128xf32>
    %170 = arith.addf %169, %168 : vector<17x128xf32>
    %cst_53 = arith.constant 5.000000e-01 : f32
    %171 = vector.broadcast %cst_53 : f32 to vector<17x128xf32>
    %172 = arith.mulf %171, %170 : vector<17x128xf32>
    %173 = arith.mulf %160, %172 : vector<17x128xf32>
    %c0_54 = arith.constant 0 : index
    %c0_55 = arith.constant 0 : index
    %174 = vector.load %arg14[%c0_54, %c0_55] : memref<128x32xbf16, #tpu.memory_space<vmem>>, vector<128x32xbf16>
    %175 = arith.truncf %173 : vector<17x128xf32> to vector<17x128xbf16>
    %cst_56 = arith.constant dense<0.000000e+00> : vector<17x32xf32>
    %176 = tpu.matmul %175, %174, %cst_56 {dimension_numbers = #tpu.dot_dimension_numbers<[1], [0], [0], [1], [0, 0, 1, 1], [], []>} : vector<17x128xbf16>, vector<128x32xbf16>, vector<17x32xf32> -> vector<17x32xf32>
    %177 = arith.addf %132, %176 : vector<17x32xf32>
    %c0_57 = arith.constant 0 : index
    %c0_58 = arith.constant 0 : index
    %178 = vector.load %arg15[%c0_57, %c0_58] : memref<1x32xf32, #tpu.memory_space<vmem>>, vector<1x32xf32>
    %179 = vector.broadcast %178 : vector<1x32xf32> to vector<17x32xf32>
    %180 = arith.addf %177, %179 : vector<17x32xf32>
    %c0_59 = arith.constant 0 : index
    %c0_60 = arith.constant 0 : index
    %c0_61 = arith.constant 0 : index
    %181 = vector.load %arg18[%c0_59, %c0_60, %c0_61] : memref<1x17x32xf32, #tpu.memory_space<vmem>>, vector<1x17x32xf32>
    %182 = vector.shape_cast %181 : vector<1x17x32xf32> to vector<17x32xf32>
    %183 = vector.shape_cast %180 : vector<17x32xf32> to vector<1x17x32xf32>
    tpu.vector_store %arg18[%c0_59, %c0_60, %c0_61], %183 {strides = array<i32>} : memref<1x17x32xf32, #tpu.memory_space<vmem>>, vector<1x17x32xf32>,
    return
  }
  func.func @transform_0(%arg0: i32) -> (i32, i32, i32) {
    %c0_i32 = arith.constant 0 : i32
    %c0_i32_0 = arith.constant 0 : i32
    %c0_i32_1 = arith.constant 0 : i32
    return %arg0, %c0_i32, %c0_i32_0 : i32, i32, i32
  }
  func.func @transform_1(%arg0: i32) -> (i32, i32) {
    %c0_i32 = arith.constant 0 : i32
    %c0_i32_0 = arith.constant 0 : i32
    %c0_i32_1 = arith.constant 0 : i32
    return %c0_i32, %c0_i32_0 : i32, i32
  }
  func.func @transform_2(%arg0: i32) -> (i32, i32) {
    %c0_i32 = arith.constant 0 : i32
    %c0_i32_0 = arith.constant 0 : i32
    %c0_i32_1 = arith.constant 0 : i32
    return %c0_i32, %c0_i32_0 : i32, i32
  }
  func.func @transform_3(%arg0: i32) -> (i32, i32) {
    %c0_i32 = arith.constant 0 : i32
    %c0_i32_0 = arith.constant 0 : i32
    %c0_i32_1 = arith.constant 0 : i32
    return %c0_i32, %c0_i32_0 : i32, i32
  }
  func.func @transform_4(%arg0: i32) -> (i32, i32) {
    %c0_i32 = arith.constant 0 : i32
    %c0_i32_0 = arith.constant 0 : i32
    %c0_i32_1 = arith.constant 0 : i32
    return %c0_i32, %c0_i32_0 : i32, i32
  }
  func.func @transform_5(%arg0: i32) -> (i32, i32) {
    %c0_i32 = arith.constant 0 : i32
    %c0_i32_0 = arith.constant 0 : i32
    %c0_i32_1 = arith.constant 0 : i32
    return %c0_i32, %c0_i32_0 : i32, i32
  }
  func.func @transform_6(%arg0: i32) -> (i32, i32) {
    %c0_i32 = arith.constant 0 : i32
    %c0_i32_0 = arith.constant 0 : i32
    %c0_i32_1 = arith.constant 0 : i32
    return %c0_i32, %c0_i32_0 : i32, i32
  }
  func.func @transform_7(%arg0: i32) -> (i32, i32, i32) {
    %c0_i32 = arith.constant 0 : i32
    %c0_i32_0 = arith.constant 0 : i32
    %c0_i32_1 = arith.constant 0 : i32
    %c0_i32_2 = arith.constant 0 : i32
    return %c0_i32, %c0_i32_0, %c0_i32_1 : i32, i32, i32
  }
  func.func @transform_8(%arg0: i32) -> (i32, i32) {
    %c0_i32 = arith.constant 0 : i32
    %c0_i32_0 = arith.constant 0 : i32
    %c0_i32_1 = arith.constant 0 : i32
    return %c0_i32, %c0_i32_0 : i32, i32
  }
  func.func @transform_9(%arg0: i32) -> (i32, i32) {
    %c0_i32 = arith.constant 0 : i32
    %c0_i32_0 = arith.constant 0 : i32
    %c0_i32_1 = arith.constant 0 : i32
    return %c0_i32, %c0_i32_0 : i32, i32
  }
  func.func @transform_10(%arg0: i32) -> (i32, i32) {
    %c0_i32 = arith.constant 0 : i32
    %c0_i32_0 = arith.constant 0 : i32
    %c0_i32_1 = arith.constant 0 : i32
    return %c0_i32, %c0_i32_0 : i32, i32
  }
  func.func @transform_11(%arg0: i32) -> (i32, i32) {
    %c0_i32 = arith.constant 0 : i32
    %c0_i32_0 = arith.constant 0 : i32
    %c0_i32_1 = arith.constant 0 : i32
    return %c0_i32, %c0_i32_0 : i32, i32
  }
  func.func @transform_12(%arg0: i32) -> (i32, i32) {
    %c0_i32 = arith.constant 0 : i32
    %c0_i32_0 = arith.constant 0 : i32
    %c0_i32_1 = arith.constant 0 : i32
    return %c0_i32, %c0_i32_0 : i32, i32
  }
  func.func @transform_13(%arg0: i32) -> (i32, i32) {
    %c0_i32 = arith.constant 0 : i32
    %c0_i32_0 = arith.constant 0 : i32
    %c0_i32_1 = arith.constant 0 : i32
    return %c0_i32, %c0_i32_0 : i32, i32
  }
  func.func @transform_14(%arg0: i32) -> (i32, i32) {
    %c0_i32 = arith.constant 0 : i32
    %c0_i32_0 = arith.constant 0 : i32
    %c0_i32_1 = arith.constant 0 : i32
    return %c0_i32, %c0_i32_0 : i32, i32
  }
  func.func @transform_15(%arg0: i32) -> (i32, i32) {
    %c0_i32 = arith.constant 0 : i32
    %c0_i32_0 = arith.constant 0 : i32
    %c0_i32_1 = arith.constant 0 : i32
    return %c0_i32, %c0_i32_0 : i32, i32
  }
  func.func @transform_16(%arg0: i32) -> (i32, i32) {
    %c0_i32 = arith.constant 0 : i32
    %c0_i32_0 = arith.constant 0 : i32
    %c0_i32_1 = arith.constant 0 : i32
    return %c0_i32, %c0_i32_0 : i32, i32
  }
  func.func @transform_17(%arg0: i32) -> (i32, i32, i32) {
    %c0_i32 = arith.constant 0 : i32
    %c0_i32_0 = arith.constant 0 : i32
    %c0_i32_1 = arith.constant 0 : i32
    return %arg0, %c0_i32, %c0_i32_0 : i32, i32, i32
  }
}

module attributes {stable_mosaic.version = 11 : i64} {
  func.func @_adapter_kernel(%arg0: i32, %arg1: memref<8x128xf32, #tpu.memory_space<vmem>>, %arg2: memref<128x64xbf16, #tpu.memory_space<vmem>>, %arg3: memref<64x64xbf16, #tpu.memory_space<vmem>>, %arg4: memref<64x48xbf16, #tpu.memory_space<vmem>>, %arg5: memref<8x48xf32, #tpu.memory_space<vmem>>) attributes {dimension_semantics = [#tpu.dimension_semantics<parallel>], iteration_bounds = array<i64: 1>, scalar_prefetch = 0 : i64, scratch_operands = 0 : i64, tpu.core_type = #tpu.core_type<tc>, window_params = [{transform_indices = @transform_0, window_bounds = array<i64: 8, 128>}, {pipeline_mode = #tpu.pipeline_mode<synchronous>, transform_indices = @transform_1, window_bounds = array<i64: 128, 64>}, {pipeline_mode = #tpu.pipeline_mode<synchronous>, transform_indices = @transform_2, window_bounds = array<i64: 64, 64>}, {pipeline_mode = #tpu.pipeline_mode<synchronous>, transform_indices = @transform_3, window_bounds = array<i64: 64, 48>}, {transform_indices = @transform_4, window_bounds = array<i64: 8, 48>}]} {
    %c0 = arith.constant 0 : index
    %c0_0 = arith.constant 0 : index
    %0 = vector.load %arg1[%c0, %c0_0] : memref<8x128xf32, #tpu.memory_space<vmem>>, vector<8x128xf32>
    %c0_1 = arith.constant 0 : index
    %c0_2 = arith.constant 0 : index
    %1 = vector.load %arg2[%c0_1, %c0_2] : memref<128x64xbf16, #tpu.memory_space<vmem>>, vector<128x64xbf16>
    %2 = arith.truncf %0 : vector<8x128xf32> to vector<8x128xbf16>
    %cst = arith.constant dense<0.000000e+00> : vector<8x64xf32>
    %3 = tpu.matmul %2, %1, %cst {dimension_numbers = #tpu.dot_dimension_numbers<[1], [0], [0], [1], [0, 0, 1, 1], [], []>} : vector<8x128xbf16>, vector<128x64xbf16>, vector<8x64xf32> -> vector<8x64xf32>
    %4 = arith.mulf %3, %3 : vector<8x64xf32>
    %5 = arith.mulf %3, %4 : vector<8x64xf32>
    %cst_3 = arith.constant 4.471500e-02 : f32
    %6 = vector.broadcast %cst_3 : f32 to vector<8x64xf32>
    %7 = arith.mulf %6, %5 : vector<8x64xf32>
    %8 = arith.addf %3, %7 : vector<8x64xf32>
    %cst_4 = arith.constant 0.797884583 : f32
    %9 = vector.broadcast %cst_4 : f32 to vector<8x64xf32>
    %10 = arith.mulf %9, %8 : vector<8x64xf32>
    %11 = math.tanh %10 : vector<8x64xf32>
    %cst_5 = arith.constant 1.000000e+00 : f32
    %12 = vector.broadcast %cst_5 : f32 to vector<8x64xf32>
    %13 = arith.addf %12, %11 : vector<8x64xf32>
    %cst_6 = arith.constant 5.000000e-01 : f32
    %14 = vector.broadcast %cst_6 : f32 to vector<8x64xf32>
    %15 = arith.mulf %14, %13 : vector<8x64xf32>
    %16 = arith.mulf %3, %15 : vector<8x64xf32>
    %c0_7 = arith.constant 0 : index
    %c0_8 = arith.constant 0 : index
    %17 = vector.load %arg3[%c0_7, %c0_8] : memref<64x64xbf16, #tpu.memory_space<vmem>>, vector<64x64xbf16>
    %18 = arith.truncf %16 : vector<8x64xf32> to vector<8x64xbf16>
    %cst_9 = arith.constant dense<0.000000e+00> : vector<8x64xf32>
    %19 = tpu.matmul %18, %17, %cst_9 {dimension_numbers = #tpu.dot_dimension_numbers<[1], [0], [0], [1], [0, 0, 1, 1], [], []>} : vector<8x64xbf16>, vector<64x64xbf16>, vector<8x64xf32> -> vector<8x64xf32>
    %20 = arith.mulf %19, %19 : vector<8x64xf32>
    %21 = arith.mulf %19, %20 : vector<8x64xf32>
    %cst_10 = arith.constant 4.471500e-02 : f32
    %22 = vector.broadcast %cst_10 : f32 to vector<8x64xf32>
    %23 = arith.mulf %22, %21 : vector<8x64xf32>
    %24 = arith.addf %19, %23 : vector<8x64xf32>
    %cst_11 = arith.constant 0.797884583 : f32
    %25 = vector.broadcast %cst_11 : f32 to vector<8x64xf32>
    %26 = arith.mulf %25, %24 : vector<8x64xf32>
    %27 = math.tanh %26 : vector<8x64xf32>
    %cst_12 = arith.constant 1.000000e+00 : f32
    %28 = vector.broadcast %cst_12 : f32 to vector<8x64xf32>
    %29 = arith.addf %28, %27 : vector<8x64xf32>
    %cst_13 = arith.constant 5.000000e-01 : f32
    %30 = vector.broadcast %cst_13 : f32 to vector<8x64xf32>
    %31 = arith.mulf %30, %29 : vector<8x64xf32>
    %32 = arith.mulf %19, %31 : vector<8x64xf32>
    %c0_14 = arith.constant 0 : index
    %c0_15 = arith.constant 0 : index
    %33 = vector.load %arg4[%c0_14, %c0_15] : memref<64x48xbf16, #tpu.memory_space<vmem>>, vector<64x48xbf16>
    %34 = arith.truncf %32 : vector<8x64xf32> to vector<8x64xbf16>
    %cst_16 = arith.constant dense<0.000000e+00> : vector<8x48xf32>
    %35 = tpu.matmul %34, %33, %cst_16 {dimension_numbers = #tpu.dot_dimension_numbers<[1], [0], [0], [1], [0, 0, 1, 1], [], []>} : vector<8x64xbf16>, vector<64x48xbf16>, vector<8x48xf32> -> vector<8x48xf32>
    %c0_17 = arith.constant 0 : index
    %c0_18 = arith.constant 0 : index
    %36 = vector.load %arg5[%c0_17, %c0_18] : memref<8x48xf32, #tpu.memory_space<vmem>>, vector<8x48xf32>
    tpu.vector_store %arg5[%c0_17, %c0_18], %35 {strides = array<i32>} : memref<8x48xf32, #tpu.memory_space<vmem>>, vector<8x48xf32>,
    return
  }
  func.func @transform_0(%arg0: i32) -> (i32, i32) {
    %c0_i32 = arith.constant 0 : i32
    %c0_i32_0 = arith.constant 0 : i32
    return %arg0, %c0_i32 : i32, i32
  }
  func.func @transform_1(%arg0: i32) -> (i32, i32) {
    %c0_i32 = arith.constant 0 : i32
    %c0_i32_0 = arith.constant 0 : i32
    %c0_i32_1 = arith.constant 0 : i32
    return %c0_i32, %c0_i32_0 : i32, i32
  }
  func.func @transform_2(%arg0: i32) -> (i32, i32) {
    %c0_i32 = arith.constant 0 : i32
    %c0_i32_0 = arith.constant 0 : i32
    %c0_i32_1 = arith.constant 0 : i32
    return %c0_i32, %c0_i32_0 : i32, i32
  }
  func.func @transform_3(%arg0: i32) -> (i32, i32) {
    %c0_i32 = arith.constant 0 : i32
    %c0_i32_0 = arith.constant 0 : i32
    %c0_i32_1 = arith.constant 0 : i32
    return %c0_i32, %c0_i32_0 : i32, i32
  }
  func.func @transform_4(%arg0: i32) -> (i32, i32) {
    %c0_i32 = arith.constant 0 : i32
    %c0_i32_0 = arith.constant 0 : i32
    return %arg0, %c0_i32 : i32, i32
  }
}

</mosaic_0001>

<bundles_post_ra>
// kernel: tpu_custom_call.1
= control target key start
LH: loop header
LB: loop body
LE: loop exit
PB: predicated region body
PF: predicated region fallthrough
CT: control target
= control target key end

     0   :  { %6 = vsyncpa [#allocation3], 0  ;;  %s441_s0 = inlined_call_operand.hbm [shape: f32[8,128], index: 0, kind: input, shape index: {}]   ;;  %s442_s1 = inlined_call_operand.hbm [shape: f32[16,128], index: 1, kind: output, shape index: {}]  }
   0x1   :  { %7 = vsyncpa [#allocation4], 0 }
   0x2   :  { %9 = vsyncpa [#allocation4 + $0x1], 0  ;;  %s357_s6 = smov 0   ;;  %s359_s7 = smov 0  }
   0x3   :  { %s361_s8 = smov 0   ;;  %s363_s9 = smov 0  }
   0x4 LB: > { %s378_s10 = sadd.s32 4294967295, %s344_s9   ;;  %s188_s11 = sadd.s32 4294967294, %s344_s9   ;;  %s344_s9 = sphi %s363_s9, %s448_s9   ;;  %s340_s8 = sphi %s361_s8, %s447_s8   ;;  %s336_s7 = sphi %s359_s7, %s446_s7   ;;  %s332_s6 = sphi %s357_s6, %s445_s6  }
   0x5   : > { %s382_s12 = sadd.s32 1, %s344_s9   ;;  %s43_s13 = sadd.s32 1, %s340_s8 }
   0x6   : > { %s40_s14 = ssub.s32 %s344_s9, %s382_s12  ;;  %p53_p0 = scmp.ne.s32.totalorder %s340_s8, %s336_s7 }
   0x7   : > { %p41_p1 = scmp.eq.s32.totalorder %s40_s14, 0  ;;  %p54_p2 = scmp.eq.s32.totalorder %s378_s10, 1 }
   0x8   : > { %p59_p3 = scmp.ne.s32.totalorder %s336_s7, %s332_s6  ;;  %p60_p4 = scmp.eq.s32.totalorder %s188_s11, 1 }
   0x9   : > { %s393_s15 = scalar_select %p41_p1, %s340_s8, %s43_s13  }
   0xa   : > { %p395_p5 = por %p54_p2, %p53_p0  ;;  %p399_p6 = por %p60_p4, %p59_p3 }
   0xb   : > { %p189_p7 = scmp.ge.s32.totalorder %s344_s9, 1  ;;  %p67_p8 = scmp.lt.s32.totalorder %s344_s9, 3 }
   0xc   : > { %p212_p9 = scmp.eq.s32.totalorder %s378_s10, 0  ;;  %s79_s20 = sshll.u32 %s441_s0, 4  ;;  %s80_s20 = int_to_ptr.hbm [resolvable:$true] %s79_s20 }
   0xd   : > { %p68_p10 = pnand %p189_p7, %p67_p8  ;;  %s346_s21 = smov [#allocation2]  }
   0xe   : > { %s81_s22 = sshll.u32 %s346_s21, 4  ;;  %s82_s22 = int_to_ptr.vmem [resolvable:$true] %s81_s22 }
   0xf   : > { %p204_p11 = pneg %p68_p10  ;;  %94 = sbr.rel (%p68_p10) target bundleno = 37 (0x25), region = 24 }
  0x11   : > { %p205_p12 = pnand %p212_p9, %p204_p11 }
  0x13   : > { %207 = dma.hbm_to_vmem [thread:$0]  (!%p205_p12), %s80_s20, 128, %s82_s22, [#allocation3]  }
  0x14   : > { %323 = dma.done.wait (%p212_p9), [#allocation3], 128  }
  0x15   : > { %325 = vsyncadd (%p212_p9), [#allocation3], 4294967168  ;;  %s107_s23 = sand.u32 1, %s336_s7   ;;  %s195_s24 = sshll.u32 %s378_s10, 3  ;;  %v110_v0 = vld [vmem:[#allocation2] sm:$0xff] }
  0x16   : > { %s193_s25 = sshll.u32 %s107_s23, 3  ;;  %s124_s28 = scalar_lea.hbm %s442_s1, %s195_s24  ;;  %v111_v1 = vadd.f32 1.0, %v110_v0 }
  0x17   : > { %s109_s29 = scalar_lea.vmem [#allocation5], %s193_s25  ;;  %s128_s2 = sshll.u32 %s124_s28, 4  ;;  %s129_s2 = int_to_ptr.hbm [resolvable:$true] %s128_s2 }
  0x18   : > { %s126_s30 = sshll.u32 %s109_s29, 4  ;;  %112 = vst [vmem:[%s109_s29] sm:$0xff] %v111_v1  ;;  %s114_s3 = scalar_lea.sflag [#allocation4], %s107_s23  ;;  %s127_s30 = int_to_ptr.vmem [resolvable:$true] %s126_s30 }
  0x19   : > { %s292_s4 = sshra.s32 %s129_s2, 4  ;;  %s298_s13 = scalar_lea.hbm %s442_s1, 16  ;;  %s293_s4 = int_to_ptr.hbm [resolvable:$true] %s292_s4 }
  0x1a   : > { %s294_s5 = scalar_lea.hbm %s293_s4, 8  ;;  %p299_p2 = scmp.lt.s32.totalorder %s293_s4, %s442_s1 }
  0x1b   : > { %p295_p13 = scmp.ne.s32.totalorder %s293_s4, %s294_s5  ;;  %p300_p3 = scmp.lt.s32.totalorder %s298_s13, %s294_s5 }
  0x1d   : > { %p296_p0 = pnand %p295_p13, %p395_p5  ;;  %p301_p4 = por %p300_p3, %p299_p2 }
  0x1f   : > { %p297_p1 = pneg %p296_p0 }
  0x21   : > { %p302_p7 = pnand %p301_p4, %p297_p1 }
  0x23   : > { %305 = shalt.err (!%p302_p7)
}
  0x24   : > { %202 = dma.vmem_to_hbm [thread:$0]  (%p395_p5), %s127_s30, 128, %s129_s2, %s114_s3  }
  0x25 PF: > { %p214_p8 = scmp.ge.s32.totalorder %s344_s9, 2  ;;  %s140_s19 = sand.u32 1, %s332_s6  }
  0x26   : > { %s141_s20 = scalar_lea.sflag [#allocation4], %s140_s19 }
  0x27   : > { %p209_p9 = pnand %p214_p8, %p399_p6 }
  0x29   : > { %p210_p10 = pneg %p209_p9 }
  0x2b   : > { %327 = dma.done.wait (%p210_p10), %s141_s20, 128  }
  0x2c   : > { %329 = vsyncadd (%p210_p10), %s141_s20, 4294967168  ;;  %p12_p11 = scmp.ge.s32.totalorder %s382_s12, 4   ;;  %s445_s6 = smov %s336_s7 }
  0x2d   : > { %s446_s7 = smov %s340_s8  ;;  %s447_s8 = smov %s393_s15 }
  0x2e   : > { %s448_s9 = smov %s382_s12  ;;  %14 = sbr.rel (!%p12_p11) target bundleno = 4 (0x4), region = 61 }
  0x33   :  { %147 = vsyncpa [#allocation3], 1 }
  0x34   :  { %149 = vsyncpa [#allocation3 + $0x1], 1 }
  0x35   :  { %150 = vsyncpa [#allocation4], 1 }
  0x36   :  { %152 = vsyncpa [#allocation4 + $0x1], 1 }

// kernel: llama4_encoder_forward.4
= control target key start
LH: loop header
LB: loop body
LE: loop exit
PB: predicated region body
PF: predicated region fallthrough
CT: control target
= control target key end

     0   :  { %s539_s21 = smov 0   ;;  %s604_s0 = inlined_call_operand.vmem [shape: f32[2,16,48], index: 0, kind: input, shape index: {}]   ;;  %s605_s1 = inlined_call_operand.vmem [shape: bf16[48,32], index: 1, kind: input, shape index: {}]   ;;  %s606_s2 = inlined_call_operand.vmem [shape: f32[16,32], index: 2, kind: input, shape index: {}]   ;;  %s607_s3 = inlined_call_operand.vmem [shape: f32[1,32], index: 3, kind: input, shape index: {}]   ;;  %s608_s4 = inlined_call_operand.vmem [shape: f32[1,32], index: 4, kind: input, shape index: {}]   ;;  %s609_s5 = inlined_call_operand.vmem [shape: f32[1,32], index: 5, kind: input, shape index: {}]   ;;  %s610_s6 = inlined_call_operand.vmem [shape: f32[2,17,32], index: 6, kind: output, shape index: {}]  }
   0x1 LB: > { %s448_s22 = sadd.s32 4294967295, %s501_s21   ;;  %p452_p0 = scmp.ge.s32.totalorder %s501_s21, 1  ;;  %s501_s21 = sphi %s539_s21, %s16_s21  }
   0x2   : > { %p212_p1 = scmp.lt.s32.totalorder %s501_s21, 3 }
   0x4   : > { %p213_p2 = pnand %p452_p0, %p212_p1 }
   0x5   : > { %p242_p3 = scmp.lt.s32.totalorder (!%p213_p2), %s448_s22, 1 }
   0x6   : > { %216 = sbr.rel (%p213_p2) target bundleno = 436 (0x1b4), region = 44 }
   0xb   : > { %v474_v0 = vld [vmem:[%s605_s1 + $0x10] sm:$0xff]  ;;  %v473_v1 = vld [vmem:[%s605_s1 + $0x8] sm:$0xff]  ;;  %s612_s22 = smov (!%p242_p3, %s448_s22), 1  ;;  %v472_v2 = vld [vmem:[%s605_s1] sm:$0xff]  ;;  %vm284_vm0 = vcmask 392192   ;;  %vm367_vm1 = vcmask 253952  }
   0xc   : > { %293 = vmatpush.bf16.msra.mxu0 %v474_v0  ;;  %s471_s27 = sshll.u32 %s612_s22, 4  ;;  %v366_v6 = vld [vmem:[%s607_s3] sm:$0x1]  ;;  %vm302_vm2 = vcmask 261120   ;;  %v265_v12 = vld [vmem:[%s606_s2 + $0x8] sm:$0xff]  ;;  %v503_v16 = vmov 32.0  }
   0xd   : > { %s246_s30 = scalar_lea.vmem %s604_s0, %s471_s27  ;;  %v368_v7 = vsel %vm367_vm1, %v366_v6, 0.0  ;;  %v264_v8 = vld [vmem:[%s606_s2] sm:$0xff]  ;;  %487 = vrcp.f32 %v503_v16  ;;  %s475_s17 = smul.u32 24, %s612_s22 }
   0xe   : > { %v255_v3 = vld [vmem:[%s246_s30] sm:$0xff]  ;;  %v256_v4 = vld [vmem:[%s246_s30 + $0x8] sm:$0xff]  ;;  %369 = vadd.xlane.f32.xlu1 %v368_v7 }
   0xf   : > { %v263_v5 = vpack.c.bf16 %v256_v4, %v255_v3  ;;  %v485_v55 = vld [vmem:[%s608_s4] ss:$0 sm:$0xff]  ;;  %s251_s24 = scalar_lea.vmem %s610_s6, %s475_s17 }
  0x10   : > { %294 = vmatpush.bf16.msra.mxu0 %v473_v1  ;;  %v486_v58 = vld [vmem:[%s609_s5] ss:$0 sm:$0xff] }
  0x13   : > { %v488_v17 = vpop.eup %487 }
  0x14   : > { %295 = vmatpush.bf16.msra.mxu0 %v472_v2  ;;  %v310_v18 = vmul.f32 32.0, %v488_v17  ;;  %vm314_vm3 = vweird.f32 %v488_v17 }
  0x16   : > { %v311_v19 = vsub.f32 1.0, %v310_v18 }
  0x17   : > { %468 = vmatmul.msk.bf16.vlgmr.msra.gmra.mxu0 %vm284_vm0, %v263_v5 }
  0x18   : > { %v312_v20 = vmul.f32 %v488_v17, %v311_v19 }
  0x1a   : > { %v313_v21 = vadd.f32 %v488_v17, %v312_v20 }
  0x1c   : > { %v315_v22 = vsel %vm314_vm3, %v488_v17, %v313_v21 }
  0x81   : > { %v370_v27 = vpop.xlane.xlu1 %369 }
  0x82   : > { %v371_v31 = vmul.f32 %v370_v27, %v315_v22 }
  0x84   : > { %v575_v33 = vsub.f32 %v366_v6, %v371_v31 }
  0x86   : > { %v373_v36 = vmul.f32 %v575_v33, %v575_v33 }
  0x88   : > { %v374_v37 = vsel %vm367_vm1, %v373_v36, 0.0 }
  0x94   : > { %v297_v9 = vpop.f32.mrf.mxu0 }
  0x95   : > { %v298_v10 = vadd.f32 %v297_v9, %v264_v8 }
  0x97   : > { %v303_v11 = vsel %vm302_vm2, %v298_v10, 0.0 }
  0x98   : > { %304 = vadd.xlane.f32.xlu0 %v303_v11  ;;  %v253_v11 = vld [vmem:[%s608_s4] sm:$0x1] }
  0x9c   : > { %v299_v13 = vpop.f32.mrf.mxu0 }
  0x9d   : > { %v300_v14 = vadd.f32 %v299_v13, %v265_v12 }
  0x9f   : > { %v306_v15 = vsel %vm302_vm2, %v300_v14, 0.0 }
  0xa0   : > { %307 = vadd.xlane.f32.xlu0 %v306_v15 }
 0x10b   : > { %v305_v23 = vpop.xlane.xlu0 %304 }
 0x10c   : > { %v316_v24 = vmul.f32 %v315_v22, %v305_v23 }
 0x10e   : > { %v318_v25 = vsub.f32 %v298_v10, %v316_v24 }
 0x110   : > { %v320_v26 = vmul.f32 %v318_v25, %v318_v25 }
 0x112   : > { %v322_v28 = vsel %vm302_vm2, %v320_v26, 0.0 }
 0x113   : > { %323 = vadd.xlane.f32.xlu1 %v322_v28  ;;  %v308_v29 = vpop.xlane.xlu0 %307 }
 0x114   : > { %v317_v30 = vmul.f32 %v315_v22, %v308_v29 }
 0x116   : > { %v319_v32 = vsub.f32 %v300_v14, %v317_v30  ;;  %v254_v14 = vld [vmem:[%s609_s5] sm:$0x1] }
 0x118   : > { %v321_v34 = vmul.f32 %v319_v32, %v319_v32 }
 0x11a   : > { %v325_v35 = vsel %vm302_vm2, %v321_v34, 0.0 }
 0x11b   : > { %326 = vadd.xlane.f32.xlu2 %v325_v35 }
 0x123   : > { %375 = vadd.xlane.f32.xlu2 %v374_v37 }
 0x186   : > { %v324_v38 = vpop.xlane.xlu1 %323 }
 0x187   : > { %v328_v39 = vmul.f32 %v324_v38, %v315_v22 }
 0x189   : > { %v330_v40 = vadd.f32 1e-05, %v328_v39 }
 0x18b   : > { %489 = vrsqrt.f32 %v330_v40  ;;  %vm338_vm5 = vweird.f32 %v330_v40 }
 0x18e   : > { %v327_v41 = vpop.xlane.xlu2 %326 }
 0x18f   : > { %v329_v42 = vmul.f32 %v327_v41, %v315_v22 }
 0x191   : > { %v490_v43 = vpop.eup %489  ;;  %v331_v44 = vadd.f32 1e-05, %v329_v42 }
 0x192   : > { %v333_v45 = vmul.f32 %v490_v43, %v330_v40  ;;  %vm339_vm4 = vweird.f32 %v490_v43 }
 0x193   : > { %491 = vrsqrt.f32 %v331_v44  ;;  %vm340_vm6 = vmor %vm338_vm5, %vm339_vm4  ;;  %vm348_vm8 = vweird.f32 %v331_v44 }
 0x194   : > { %v334_v46 = vmul.f32 %v490_v43, %v333_v45 }
 0x196   : > { %v335_v47 = vmul.f32 0.5, %v334_v46  ;;  %v376_v48 = vpop.xlane.xlu2 %375 }
 0x197   : > { %v377_v49 = vmul.f32 %v376_v48, %v315_v22 }
 0x198   : > { %v336_v50 = vsub.f32 1.5, %v335_v47 }
 0x199   : > { %v492_v51 = vpop.eup %491  ;;  %v378_v52 = vadd.f32 1e-05, %v377_v49 }
 0x19a   : > { %v337_v53 = vmul.f32 %v490_v43, %v336_v50  ;;  %v343_v54 = vmul.f32 %v492_v51, %v331_v44  ;;  %vm349_vm7 = vweird.f32 %v492_v51 }
 0x19b   : > { %493 = vrsqrt.f32 %v378_v52  ;;  %vm350_vm9 = vmor %vm348_vm8, %vm349_vm7  ;;  %vm385_vm11 = vweird.f32 %v378_v52 }
 0x19c   : > { %v341_v56 = vsel %vm340_vm6, %v490_v43, %v337_v53  ;;  %v344_v57 = vmul.f32 %v492_v51, %v343_v54 }
 0x19d   : > { %v352_v59 = vmul.f32 %v341_v56, %v318_v25 }
 0x19e   : > { %v345_v60 = vmul.f32 0.5, %v344_v57 }
 0x19f   : > { %v357_v61 = vmul.f32 %v485_v55, %v352_v59 }
 0x1a0   : > { %v346_v62 = vsub.f32 1.5, %v345_v60 }
 0x1a1   : > { %v494_v63 = vpop.eup %493  ;;  %v362_v0 = vadd.f32 %v486_v58, %v357_v61 }
 0x1a2   : > { %v347_v1 = vmul.f32 %v492_v51, %v346_v62  ;;  %v380_v2 = vmul.f32 %v494_v63, %v378_v52  ;;  %vm386_vm10 = vweird.f32 %v494_v63 }
 0x1a3   : > { %364 = vst.msk [vmem:[%s251_s24] sm:$0xff] %vm302_vm2, %v362_v0  ;;  %vm387_vm12 = vmor %vm385_vm11, %vm386_vm10 }
 0x1a4   : > { %v351_v3 = vsel %vm350_vm9, %v492_v51, %v347_v1  ;;  %v381_v4 = vmul.f32 %v494_v63, %v380_v2 }
 0x1a5   : > { %v353_v5 = vmul.f32 %v351_v3, %v319_v32 }
 0x1a6   : > { %v382_v6 = vmul.f32 0.5, %v381_v4 }
 0x1a7   : > { %v358_v7 = vmul.f32 %v485_v55, %v353_v5 }
 0x1a8   : > { %v383_v8 = vsub.f32 1.5, %v382_v6 }
 0x1a9   : > { %v363_v9 = vadd.f32 %v486_v58, %v358_v7 }
 0x1aa   : > { %v384_v10 = vmul.f32 %v494_v63, %v383_v8 }
 0x1ab   : > { %365 = vst.msk [vmem:[%s251_s24 + $0x8] sm:$0xff] %vm302_vm2, %v363_v9 }
 0x1ac   : > { %v388_v12 = vsel %vm387_vm12, %v494_v63, %v384_v10 }
 0x1ad   : > { %v389_v13 = vmul.f32 %v388_v12, %v575_v33 }
 0x1af   : > { %v390_v15 = vmul.f32 %v389_v13, %v253_v11 }
 0x1b1   : > { %v391_v16 = vadd.f32 %v390_v15, %v254_v14 }
 0x1b3   : > { %392 = vst.msk [vmem:[%s251_s24 + $0x10] sm:$0x1] %vm367_vm1, %v391_v16 }
 0x1b4 PF: > { %s16_s21 = sadd.s32 1, %s501_s21  }
 0x1b5   : > { %p13_p4 = scmp.ge.s32.totalorder %s16_s21, 4  }
 0x1b7   :  { %15 = sbr.rel (!%p13_p4) target bundleno = 1 (0x1), region = 74 }

// kernel: llama4_encoder_forward.6
= control target key start
LH: loop header
LB: loop body
LE: loop exit
PB: predicated region body
PF: predicated region fallthrough
CT: control target
= control target key end

     0   :  { %s2486_s24 = smov 0   ;;  %s3119_s0 = inlined_call_operand.vmem [shape: f32[2,17,32], index: 0, kind: input, shape index: {}]   ;;  %s3120_s1 = inlined_call_operand.vmem [shape: f32[17,8], index: 1, kind: input, shape index: {}]   ;;  %s3121_s2 = inlined_call_operand.vmem [shape: f32[17,8], index: 2, kind: input, shape index: {}]   ;;  %s3122_s3 = inlined_call_operand.vmem [shape: f32[1,32], index: 3, kind: input, shape index: {}]   ;;  %s3123_s4 = inlined_call_operand.vmem [shape: f32[1,32], index: 4, kind: input, shape index: {}]   ;;  %s3124_s5 = inlined_call_operand.vmem [shape: bf16[32,96], index: 5, kind: input, shape index: {}]   ;;  %s3125_s6 = inlined_call_operand.vmem [shape: f32[1,96], index: 6, kind: input, shape index: {}]   ;;  %s3126_s7 = inlined_call_operand.vmem [shape: bf16[4,8,32], index: 7, kind: input, shape index: {}]   ;;  %s3127_s8 = inlined_call_operand.vmem [shape: f32[1,32], index: 8, kind: input, shape index: {}]   ;;  %s3128_s9 = inlined_call_operand.vmem [shape: f32[1,32], index: 9, kind: input, shape index: {}]   ;;  %s3129_s10 = inlined_call_operand.vmem [shape: f32[1,32], index: 10, kind: input, shape index: {}]   ;;  %s3130_s11 = inlined_call_operand.vmem [shape: bf16[32,128], index: 11, kind: input, shape index: {}]   ;;  %s3131_s12 = inlined_call_operand.vmem [shape: f32[1,128], index: 12, kind: input, shape index: {}]   ;;  %s3132_s13 = inlined_call_operand.vmem [shape: bf16[128,32], index: 13, kind: input, shape index: {}]   ;;  %s3133_s14 = inlined_call_operand.vmem [shape: f32[1,32], index: 14, kind: input, shape index: {}]   ;;  %s3134_s15 = inlined_call_operand.vmem [shape: f32[1,32], index: 15, kind: input, shape index: {}]   ;;  %s3135_s16 = inlined_call_operand.vmem [shape: f32[1,32], index: 16, kind: input, shape index: {}]   ;;  %s3136_s17 = inlined_call_operand.vmem [shape: f32[2,16,32], index: 17, kind: output, shape index: {}]  }
   0x1   :  { %3138 = sst [smem:[#allocation2_spill]] %s3119_s0 }
   0x2   :  { %3139 = sst [smem:[#allocation3_spill]] %s3120_s1 }
   0x3 LB: > { %s2169_s25 = sadd.s32 4294967295, %s2382_s24   ;;  %p2173_p0 = scmp.ge.s32.totalorder %s2382_s24, 1  ;;  %s2382_s24 = sphi %s2486_s24, %s27_s24  }
   0x4   : > { %p487_p1 = scmp.lt.s32.totalorder %s2382_s24, 3 }
   0x6   : > { %p488_p2 = pnand %p2173_p0, %p487_p1 }
   0x7   : > { %p539_p3 = scmp.lt.s32.totalorder (!%p488_p2), %s2169_s25, 1  ;;  %s3140_s29 = sld [smem:[#allocation2_spill]] (!%p488_p2) }
   0x8   : > { %491 = sbr.rel (%p488_p2) target bundleno = 2435 (0x983), region = 88  ;;  %s3141_s22 = sld [smem:[#allocation3_spill]] (!%p488_p2) }
   0x9   : > { %s2385_s23 = smov (!%p488_p2), 32   ;;  %s2386_s19 = smov (!%p488_p2), 104  }
   0xa   : > { %s2387_s1 = smov (!%p488_p2), 112   ;;  %s2388_s20 = smov (!%p488_p2), 92  }
   0xb   : > { %s2389_s21 = smov (!%p488_p2), 120   ;;  %s2392_s28 = smov (!%p488_p2), 4  }
   0xd   : > { %s3143_s25 = smov (!%p539_p3, %s2169_s25), 1  ;;  %vm555_vm0 = vcmask 261120   ;;  %vm562_vm1 = vcmask 253952   ;;  %v2384_v6 = vmov 32.0   ;;  %v2257_v28 = vld [vmem:[%s3124_s5 + $0x8] sm:$0xff]  ;;  %v2256_v31 = vld [vmem:[%s3124_s5] sm:$0xff] }
   0xe   : > { %s2270_s26 = smul.u32 24, %s3143_s25  ;;  %2301 = vrcp.f32 %v2384_v6  ;;  %676 = vmatpush.bf16.msra.mxu0 %v2257_v28  ;;  %v2532_v48 = vld [vmem:[%s3141_s22 + $0x10] sm:$0x1]  ;;  %v2291_v54 = vld [vmem:[%s3122_s3] ss:$0 sm:$0xff]  ;;  %vm820_vm12 = vcmask 31744  }
   0xf   : > { %v2292_v61 = vld [vmem:[%s3123_s4] ss:$0 sm:$0xff]  ;;  %vm1117_vm13 = vcmask 64512   ;;  %vm1298_vm14 = vcmask 138240   ;;  %vm1305_vm15 = vcmask 131072  }
  0x10   : > { %s2500_s0 = scalar_lea.vmem %s3140_s29, %s2270_s26  ;;  %s2390_s26 = smov 100  }
  0x11   : > { %v550_v0 = vld [vmem:[%s2500_s0] sm:$0xff]  ;;  %v552_v1 = vld [vmem:[%s2500_s0 + $0x10] sm:$0x1]  ;;  %v551_v4 = vld [vmem:[%s2500_s0 + $0x8] sm:$0xff]  ;;  %s2393_s29 = smov 96  }
  0x12   : > { %v556_v2 = vsel %vm555_vm0, %v550_v0, 0.0  ;;  %v563_v3 = vsel %vm562_vm1, %v552_v1, 0.0  ;;  %v559_v5 = vsel %vm555_vm0, %v551_v4, 0.0  ;;  %677 = vmatpush.bf16.msra.mxu0 %v2256_v31 }
  0x13   : > { %557 = vadd.xlane.f32.xlu0 %v556_v2  ;;  %564 = vadd.xlane.f32.xlu1 %v563_v3 }
  0x14   : > { %v2302_v7 = vpop.eup %2301 }
  0x15   : > { %v567_v8 = vmul.f32 32.0, %v2302_v7  ;;  %vm571_vm2 = vweird.f32 %v2302_v7 }
  0x17   : > { %v568_v9 = vsub.f32 1.0, %v567_v8 }
  0x19   : > { %v569_v10 = vmul.f32 %v2302_v7, %v568_v9 }
  0x1b   : > { %560 = vadd.xlane.f32.xlu0 %v559_v5  ;;  %v570_v11 = vadd.f32 %v2302_v7, %v569_v10  ;;  %v2293_v10 = vld [vmem:[%s3125_s6] ss:$0 sm:$0xff] }
  0x1d   : > { %v2508_v12 = vsel %vm571_vm2, %v2302_v7, %v570_v11  ;;  %vm1447_vm2 = vcmask 1040384  }
  0x86   : > { %v558_v13 = vpop.xlane.xlu0 %557  ;;  %v565_v17 = vpop.xlane.xlu1 %564 }
  0x87   : > { %v573_v14 = vmul.f32 %v2508_v12, %v558_v13  ;;  %v575_v21 = vmul.f32 %v2508_v12, %v565_v17 }
  0x89   : > { %v576_v15 = vsub.f32 %v550_v0, %v573_v14  ;;  %v2514_v23 = vsub.f32 %v552_v1, %v575_v21 }
  0x8b   : > { %v579_v16 = vmul.f32 %v576_v15, %v576_v15  ;;  %v581_v26 = vmul.f32 %v2514_v23, %v2514_v23 }
  0x8d   : > { %v582_v18 = vsel %vm555_vm0, %v579_v16, 0.0  ;;  %v588_v27 = vsel %vm562_vm1, %v581_v26, 0.0 }
  0x8e   : > { %583 = vadd.xlane.f32.xlu1 %v582_v18  ;;  %v561_v19 = vpop.xlane.xlu0 %560 }
  0x8f   : > { %v574_v20 = vmul.f32 %v2508_v12, %v561_v19 }
  0x91   : > { %v577_v22 = vsub.f32 %v551_v4, %v574_v20 }
  0x93   : > { %v580_v24 = vmul.f32 %v577_v22, %v577_v22 }
  0x95   : > { %v585_v25 = vsel %vm555_vm0, %v580_v24, 0.0 }
  0x96   : > { %586 = vadd.xlane.f32.xlu2 %v585_v25 }
  0x9e   : > { %589 = vadd.xlane.f32.xlu2 %v588_v27 }
  0xa7   : > { %984 = vrot.lane.b32.xlu1 %v2532_v48, %s2385_s23 }
 0x101   : > { %v584_v29 = vpop.xlane.xlu1 %583 }
 0x102   : > { %v591_v30 = vmul.f32 %v584_v29, %v2508_v12 }
 0x104   : > { %v594_v32 = vadd.f32 1e-05, %v591_v30 }
 0x106   : > { %2303 = vrsqrt.f32 %v594_v32  ;;  %vm603_vm4 = vweird.f32 %v594_v32 }
 0x109   : > { %v587_v33 = vpop.xlane.xlu2 %586 }
 0x10a   : > { %v592_v34 = vmul.f32 %v587_v33, %v2508_v12 }
 0x10c   : > { %v2304_v35 = vpop.eup %2303  ;;  %v595_v36 = vadd.f32 1e-05, %v592_v34 }
 0x10d   : > { %v598_v37 = vmul.f32 %v2304_v35, %v594_v32  ;;  %vm604_vm3 = vweird.f32 %v2304_v35 }
 0x10e   : > { %2305 = vrsqrt.f32 %v595_v36  ;;  %vm605_vm5 = vmor %vm603_vm4, %vm604_vm3  ;;  %vm613_vm7 = vweird.f32 %v595_v36  ;;  %vm1669_vm3 = vcmask 1043456  }
 0x10f   : > { %v599_v38 = vmul.f32 %v2304_v35, %v598_v37 }
 0x111   : > { %v600_v39 = vmul.f32 0.5, %v599_v38  ;;  %v590_v40 = vpop.xlane.xlu2 %589 }
 0x112   : > { %v593_v41 = vmul.f32 %v590_v40, %v2508_v12 }
 0x113   : > { %v601_v42 = vsub.f32 1.5, %v600_v39 }
 0x114   : > { %v2306_v43 = vpop.eup %2305  ;;  %v596_v44 = vadd.f32 1e-05, %v593_v41 }
 0x115   : > { %v602_v45 = vmul.f32 %v2304_v35, %v601_v42  ;;  %v608_v46 = vmul.f32 %v2306_v43, %v595_v36  ;;  %vm614_vm6 = vweird.f32 %v2306_v43 }
 0x116   : > { %2307 = vrsqrt.f32 %v596_v44  ;;  %vm615_vm8 = vmor %vm613_vm7, %vm614_vm6  ;;  %vm623_vm9 = vweird.f32 %v596_v44 }
 0x117   : > { %v609_v47 = vmul.f32 %v2306_v43, %v608_v46  ;;  %v606_v49 = vsel %vm605_vm5, %v2304_v35, %v602_v45  ;;  %v2660_v46 = vld [vmem:[%s3141_s22] sm:$0xff] }
 0x118   : > { %v627_v53 = vmul.f32 %v606_v49, %v576_v15  ;;  %v2668_v49 = vld [vmem:[%s3121_s2 + $0x8] sm:$0xff] }
 0x119   : > { %v610_v50 = vmul.f32 0.5, %v609_v47  ;;  %v2597_v26 = vpop.permute.xlu1 %984 }
 0x11a   : > { %v633_v60 = vmul.f32 %v2291_v54, %v627_v53 }
 0x11b   : > { %v611_v51 = vsub.f32 1.5, %v610_v50 }
 0x11c   : > { %v2308_v52 = vpop.eup %2307  ;;  %v639_v1 = vadd.f32 %v2292_v61, %v633_v60 }
 0x11d   : > { %v612_v55 = vmul.f32 %v2306_v43, %v611_v51  ;;  %v618_v56 = vmul.f32 %v2308_v52, %v596_v44  ;;  %vm624_vm10 = vweird.f32 %v2308_v52  ;;  %v2654_v44 = vld [vmem:[%s3121_s2] sm:$0xff]  ;;  %v2675_v51 = vld [vmem:[%s3141_s22 + $0x8] sm:$0xff] }
 0x11e   : > { %vm625_vm11 = vmor %vm623_vm9, %vm624_vm10 }
 0x11f   : > { %v616_v57 = vsel %vm615_vm8, %v2306_v43, %v612_v55  ;;  %v619_v58 = vmul.f32 %v2308_v52, %v618_v56  ;;  %v2688_v56 = vld [vmem:[%s3121_s2 + $0x10] sm:$0x1] }
 0x120   : > { %v628_v59 = vmul.f32 %v616_v57, %v577_v22 }
 0x121   : > { %v620_v62 = vmul.f32 0.5, %v619_v58 }
 0x122   : > { %v634_v63 = vmul.f32 %v2291_v54, %v628_v59 }
 0x123   : > { %v621_v0 = vsub.f32 1.5, %v620_v62 }
 0x124   : > { %v640_v2 = vadd.f32 %v2292_v61, %v634_v63 }
 0x125   : > { %v622_v3 = vmul.f32 %v2308_v52, %v621_v0 }
 0x126   : > { %v646_v4 = vpack.c.bf16 %v640_v2, %v639_v1 }
 0x127   : > { %v626_v5 = vsel %vm625_vm11, %v2308_v52, %v622_v3 }
 0x128   : > { %2185 = vmatmul.msk.bf16.vlgmr.msra.gmra.mxu0 %vm555_vm0, %v646_v4  ;;  %v629_v6 = vmul.f32 %v626_v5, %v2514_v23 }
 0x12a   : > { %v635_v7 = vmul.f32 %v2291_v54, %v629_v6 }
 0x12c   : > { %v641_v8 = vadd.f32 %v2292_v61, %v635_v7 }
 0x12e   : > { %v647_v9 = vpack.c.bf16 %v641_v8, %v641_v8 }
 0x138   : > { %2186 = vmatmul.msk.bf16.gmra.mxu0 %vm555_vm0, %v647_v9 }
 0x1a5   : > { %v679_v11 = vpop.f32.mrf.mxu0 }
 0x1a6   : > { %v2548_v13 = vadd.f32 %v2293_v10, %v679_v11 }
 0x1a8   : > { %709 = vrot.lane.b32.xlu0 %v2548_v13, %s2386_s19  ;;  %700 = vrot.lane.b32.xlu2 %v2548_v13, %s2387_s1  ;;  %v724_v14 = vsub.f32 0.0, %v2548_v13 }
 0x1aa   : > { %893 = vrot.lane.b32.xlu1 %v724_v14, %s2388_s20 }
 0x1ad   : > { %v681_v15 = vpop.f32.mrf.mxu0 }
 0x1ae   : > { %v2556_v16 = vadd.f32 %v2293_v10, %v681_v15 }
 0x1b0   : > { %702 = vrot.lane.b32.xlu0 %v2556_v16, %s2387_s1  ;;  %691 = vrot.lane.b32.xlu2 %v2548_v13, %s2389_s21  ;;  %v725_v18 = vsub.f32 0.0, %v2556_v16 }
 0x1b2   : > { %693 = vrot.lane.b32.xlu1 %v2556_v16, %s2389_s21 }
 0x1b5   : > { %v684_v17 = vpop.f32.mrf.mxu0 }
 0x1b6   : > { %v2569_v20 = vadd.f32 %v2293_v10, %v684_v17 }
 0x1b8   : > { %895 = vrot.lane.b32.xlu0 %v725_v18, %s2388_s20  ;;  %929 = vrot.lane.b32.xlu2 %v2548_v13, %s2390_s26  ;;  %v726_v21 = vsub.f32 0.0, %v2569_v20 }
 0x1ba   : > { %931 = vrot.lane.b32.xlu1 %v2556_v16, %s2390_s26 }
 0x1bd   : > { %v686_v19 = vpop.f32.mrf.mxu0 }
 0x1c0   : > { %711 = vrot.lane.b32.xlu2 %v2556_v16, %s2386_s19  ;;  %704 = vrot.lane.b32.xlu0 %v2569_v20, %s2387_s1 }
 0x1c2   : > { %695 = vrot.lane.b32.xlu1 %v2569_v20, %s2389_s21  ;;  %s2255_s21 = sshll.u32 %s3143_s25, 4 }
 0x1c8   : > { %713 = vrot.lane.b32.xlu0 %v2569_v20, %s2386_s19  ;;  %897 = vrot.lane.b32.xlu2 %v726_v21, %s2388_s20 }
 0x1ca   : > { %933 = vrot.lane.b32.xlu1 %v2569_v20, %s2390_s26 }
 0x202   : > { %v2581_v22 = vpop.permute.xlu2 %700 }
 0x203   : > { %941 = vrot.lane.b32.xlu0 %v2581_v22, %s2390_s26  ;;  %v730_v25 = vsub.f32 0.0, %v2581_v22 }
 0x20a   : > { %v2585_v23 = vpop.permute.xlu2 %691 }
 0x20b   : > { %935 = vrot.lane.b32.xlu2 %v2585_v23, %s2390_s26  ;;  %v727_v24 = vsub.f32 0.0, %v2585_v23 }
 0x20d   : > { %899 = vrot.lane.b32.xlu1 %v727_v24, %s2388_s20 }
 0x212   : > { %v930_v36 = vpop.permute.xlu2 %929 }
 0x213   : > { %905 = vrot.lane.b32.xlu2 %v730_v25, %s2388_s20 }
 0x21a   : > { %v2599_v27 = vpop.permute.xlu0 %709  ;;  %v2633_v40 = vpop.permute.xlu2 %711 }
 0x21b   : > { %v733_v28 = vsub.f32 0.0, %v2599_v27  ;;  %v734_v43 = vsub.f32 0.0, %v2633_v40 }
 0x21c   : > { %v894_v29 = vpop.permute.xlu1 %893 }
 0x21d   : > { %911 = vrot.lane.b32.xlu2 %v733_v28, %s2388_s20  ;;  %v965_v45 = vsel %vm820_vm12, %v894_v29, %v930_v36 }
 0x21e   : > { %v1001_v47 = vmul.f32 %v965_v45, %v2654_v44 }
 0x222   : > { %v2605_v30 = vpop.permute.xlu0 %702  ;;  %v898_v55 = vpop.permute.xlu2 %897 }
 0x223   : > { %v731_v34 = vsub.f32 0.0, %v2605_v30 }
 0x224   : > { %v2607_v31 = vpop.permute.xlu1 %693 }
 0x225   : > { %937 = vrot.lane.b32.xlu1 %v2607_v31, %s2390_s26  ;;  %943 = vrot.lane.b32.xlu2 %v2605_v30, %s2390_s26  ;;  %v728_v32 = vsub.f32 0.0, %v2607_v31 }
 0x227   : > { %901 = vrot.lane.b32.xlu0 %v728_v32, %s2388_s20 }
 0x22a   : > { %v896_v33 = vpop.permute.xlu0 %895 }
 0x22c   : > { %v932_v35 = vpop.permute.xlu1 %931 }
 0x22d   : > { %907 = vrot.lane.b32.xlu1 %v731_v34, %s2388_s20  ;;  %v966_v50 = vsel %vm820_vm12, %v896_v33, %v932_v35 }
 0x22e   : > { %v1002_v52 = vmul.f32 %v966_v50, %v2668_v49 }
 0x232   : > { %v2621_v37 = vpop.permute.xlu0 %704 }
 0x233   : > { %945 = vrot.lane.b32.xlu2 %v2621_v37, %s2390_s26  ;;  %v732_v42 = vsub.f32 0.0, %v2621_v37 }
 0x234   : > { %v2625_v38 = vpop.permute.xlu1 %695 }
 0x235   : > { %939 = vrot.lane.b32.xlu0 %v2625_v38, %s2390_s26  ;;  %v729_v39 = vsub.f32 0.0, %v2625_v38 }
 0x237   : > { %903 = vrot.lane.b32.xlu1 %v729_v39, %s2388_s20 }
 0x23a   : > { %v2635_v41 = vpop.permute.xlu0 %713 }
 0x23b   : > { %951 = vrot.lane.b32.xlu2 %v2635_v41, %s2390_s26  ;;  %v735_v53 = vsub.f32 0.0, %v2635_v41 }
 0x23c   : > { %v934_v54 = vpop.permute.xlu1 %933 }
 0x23d   : > { %909 = vrot.lane.b32.xlu0 %v732_v42, %s2388_s20  ;;  %v967_v57 = vsel %vm820_vm12, %v898_v55, %v934_v54 }
 0x23e   : > { %v1003_v58 = vmul.f32 %v967_v57, %v2688_v56 }
 0x23f   : > { %913 = vrot.lane.b32.xlu1 %v734_v43, %s2388_s20 }
 0x243   : > { %949 = vrot.lane.b32.xlu2 %v2633_v40, %s2390_s26 }
 0x245   : > { %947 = vrot.lane.b32.xlu0 %v2599_v27, %s2390_s26 }
 0x247   : > { %980 = vrot.lane.b32.xlu1 %v2660_v46, %s2385_s23 }
 0x24b   : > { %1025 = vrot.lane.b32.xlu2 %v1001_v47, %s2385_s23 }
 0x24d   : > { %982 = vrot.lane.b32.xlu0 %v2675_v51, %s2385_s23 }
 0x24f   : > { %1027 = vrot.lane.b32.xlu1 %v1002_v52, %s2385_s23 }
 0x255   : > { %915 = vrot.lane.b32.xlu0 %v735_v53, %s2388_s20  ;;  %s2391_s20 = smov 124  }
 0x25d   : > { %1029 = vrot.lane.b32.xlu0 %v1003_v58, %s2385_s23 }
 0x265   : > { %v936_v59 = vpop.permute.xlu2 %935 }
 0x26d   : > { %v906_v60 = vpop.permute.xlu2 %905 }
 0x275   : > { %v942_v61 = vpop.permute.xlu0 %941 }
 0x276   : > { %v971_v62 = vsel %vm820_vm12, %v906_v60, %v942_v61 }
 0x277   : > { %v1007_v63 = vmul.f32 %v971_v62, %v2654_v44  ;;  %v912_v3 = vpop.permute.xlu2 %911 }
 0x279   : > { %1037 = vrot.lane.b32.xlu1 %v1007_v63, %s2385_s23 }
 0x27f   : > { %v900_v0 = vpop.permute.xlu1 %899  ;;  %v944_v4 = vpop.permute.xlu2 %943 }
 0x280   : > { %v968_v1 = vsel %vm820_vm12, %v900_v0, %v936_v59 }
 0x281   : > { %v1004_v2 = vmul.f32 %v968_v1, %v2654_v44 }
 0x283   : > { %1031 = vrot.lane.b32.xlu2 %v1004_v2, %s2385_s23 }
 0x28d   : > { %v946_v9 = vpop.permute.xlu2 %945 }
 0x295   : > { %v952_v17 = vpop.permute.xlu2 %951 }
 0x297   : > { %v938_v5 = vpop.permute.xlu1 %937 }
 0x299   : > { %v902_v6 = vpop.permute.xlu0 %901 }
 0x29a   : > { %v969_v7 = vsel %vm820_vm12, %v902_v6, %v938_v5 }
 0x29b   : > { %v1005_v8 = vmul.f32 %v969_v7, %v2668_v49 }
 0x29d   : > { %1033 = vrot.lane.b32.xlu1 %v1005_v8, %s2385_s23  ;;  %v950_v36 = vpop.permute.xlu2 %949 }
 0x29f   : > { %v908_v10 = vpop.permute.xlu1 %907 }
 0x2a0   : > { %v972_v11 = vsel %vm820_vm12, %v908_v10, %v944_v4 }
 0x2a1   : > { %v1008_v15 = vmul.f32 %v972_v11, %v2668_v49 }
 0x2a3   : > { %1039 = vrot.lane.b32.xlu0 %v1008_v15, %s2385_s23 }
 0x2a5   : > { %v1026_v1 = vpop.permute.xlu2 %1025 }
 0x2a7   : > { %v940_v19 = vpop.permute.xlu0 %939 }
 0x2a9   : > { %v904_v29 = vpop.permute.xlu1 %903 }
 0x2aa   : > { %v970_v59 = vsel %vm820_vm12, %v904_v29, %v940_v19 }
 0x2ab   : > { %v1006_v61 = vmul.f32 %v970_v59, %v2688_v56 }
 0x2af   : > { %v910_v33 = vpop.permute.xlu0 %909 }
 0x2b0   : > { %v973_v35 = vsel %vm820_vm12, %v910_v33, %v946_v9 }
 0x2b1   : > { %v1009_v45 = vmul.f32 %v973_v35, %v2688_v56  ;;  %v914_v47 = vpop.permute.xlu1 %913 }
 0x2b2   : > { %v975_v50 = vsel %vm820_vm12, %v914_v47, %v950_v36 }
 0x2b3   : > { %v1011_v52 = vmul.f32 %v975_v50, %v2668_v49  ;;  %1041 = vrot.lane.b32.xlu0 %v1009_v45, %s2385_s23 }
 0x2b5   : > { %1045 = vrot.lane.b32.xlu1 %v1011_v52, %s2385_s23 }
 0x2b7   : > { %v948_v54 = vpop.permute.xlu0 %947 }
 0x2b8   : > { %v974_v55 = vsel %vm820_vm12, %v912_v3, %v948_v54 }
 0x2b9   : > { %v1010_v57 = vmul.f32 %v974_v55, %v2654_v44  ;;  %v2713_v58 = vpop.permute.xlu1 %980 }
 0x2ba   : > { %v989_v0 = vmul.f32 %v2713_v58, %v2548_v13  ;;  %v992_v35 = vmul.f32 %v2713_v58, %v2585_v23  ;;  %v995_v50 = vmul.f32 %v2713_v58, %v2581_v22 }
 0x2bb   : > { %1043 = vrot.lane.b32.xlu2 %v1010_v57, %s2385_s23  ;;  %762 = vrot.lane.b32.xlu0 %v731_v34, %s2391_s20 }
 0x2bc   : > { %v1061_v2 = vadd.f32 %v1026_v1, %v989_v0 }
 0x2bd   : > { %788 = vrot.lane.b32.xlu1 %v2569_v20, %s2392_s28 }
 0x2be   : > { %v1073_v7 = vpack.c.bf16 %v1061_v2, %v1061_v2 }
 0x2bf   : > { %v2722_v60 = vpop.permute.xlu0 %982 }
 0x2c0   : > { %v990_v62 = vmul.f32 %v2722_v60, %v2556_v16  ;;  %v1108_v9 = vunpack.c.l.b16 %v1073_v7  ;;  %v993_v45 = vmul.f32 %v2722_v60, %v2607_v31  ;;  %v996_v59 = vmul.f32 %v2722_v60, %v2605_v30 }
 0x2c1   : > { %v1028_v63 = vpop.permute.xlu1 %1027 }
 0x2c2   : > { %v1062_v34 = vadd.f32 %v1028_v63, %v990_v62 }
 0x2c3   : > { %1035 = vrot.lane.b32.xlu2 %v1006_v61, %s2385_s23  ;;  %790 = vrot.lane.b32.xlu0 %v2585_v23, %s2392_s28 }
 0x2c4   : > { %v1074_v5 = vpack.c.bf16 %v1062_v34, %v1062_v34 }
 0x2c5   : > { %760 = vrot.lane.b32.xlu1 %v730_v25, %s2391_s20  ;;  %v991_v25 = vmul.f32 %v2597_v26, %v2569_v20 }
 0x2c6   : > { %v1109_v8 = vunpack.c.l.b16 %v1074_v5  ;;  %v994_v5 = vmul.f32 %v2597_v26, %v2625_v38 }
 0x2c7   : > { %v916_v3 = vpop.permute.xlu0 %915 }
 0x2c8   : > { %v976_v4 = vsel %vm820_vm12, %v916_v3, %v952_v17  ;;  %v1111_v15 = vpack.c.b16 %v1109_v8, %v1108_v9 }
 0x2c9   : > { %v1012_v6 = vmul.f32 %v976_v4, %v2688_v56 }
 0x2cb   : > { %752 = vrot.lane.b32.xlu2 %v726_v21, %s2391_s20  ;;  %1047 = vrot.lane.b32.xlu0 %v1012_v6, %s2385_s23  ;;  %s2394_s23 = smov 64  }
 0x2cd   : > { %798 = vrot.lane.b32.xlu1 %v2605_v30, %s2392_s28 }
 0x2cf   : > { %v1030_v10 = vpop.permute.xlu0 %1029 }
 0x2d0   : > { %v1063_v11 = vadd.f32 %v1030_v10, %v991_v25  ;;  %v998_v25 = vmul.f32 %v2713_v58, %v2599_v27 }
 0x2d2   : > { %v1075_v17 = vpack.c.bf16 %v1063_v11, %v1063_v11 }
 0x2d3   : > { %796 = vrot.lane.b32.xlu2 %v2581_v22, %s2392_s28  ;;  %1113 = vrot.lane.b32.xlu0 %v1111_v15, %s2393_s29  ;;  %v997_v15 = vmul.f32 %v2597_v26, %v2621_v37 }
 0x2d4   : > { %v1110_v21 = vunpack.c.l.b16 %v1075_v17 }
 0x2d5   : > { %756 = vrot.lane.b32.xlu1 %v728_v32, %s2391_s20 }
 0x2d6   : > { %v1112_v19 = vpack.c.b16 %v1110_v21, %v1110_v21 }
 0x2db   : > { %754 = vrot.lane.b32.xlu2 %v727_v24, %s2391_s20  ;;  %1115 = vrot.lane.b32.xlu0 %v1112_v19, %s2393_s29  ;;  %v999_v19 = vmul.f32 %v2722_v60, %v2633_v40  ;;  %v1000_v60 = vmul.f32 %v2597_v26, %v2635_v41 }
 0x2dd   : > { %v1032_v33 = vpop.permute.xlu2 %1031 }
 0x2de   : > { %v1064_v36 = vadd.f32 %v1032_v33, %v992_v35 }
 0x2e0   : > { %v1076_v47 = vpack.c.bf16 %v1064_v36, %v1064_v36 }
 0x2e2   : > { %v1159_v55 = vunpack.c.l.b16 %v1076_v47 }
 0x2e3   : > { %792 = vrot.lane.b32.xlu2 %v2607_v31, %s2392_s28 }
 0x2eb   : > { %v1038_v29 = vpop.permute.xlu1 %1037 }
 0x2ec   : > { %v1067_v52 = vadd.f32 %v1038_v29, %v995_v50 }
 0x2ee   : > { %v1079_v63 = vpack.c.bf16 %v1067_v52, %v1067_v52 }
 0x2f0   : > { %v1209_v2 = vunpack.c.l.b16 %v1079_v63 }
 0x30f   : > { %v1034_v32 = vpop.permute.xlu1 %1033 }
 0x310   : > { %v1065_v24 = vadd.f32 %v1034_v32, %v993_v45 }
 0x312   : > { %v1077_v54 = vpack.c.bf16 %v1065_v24, %v1065_v24 }
 0x314   : > { %v1160_v57 = vunpack.c.l.b16 %v1077_v54 }
 0x315   : > { %v1040_v61 = vpop.permute.xlu0 %1039  ;;  %v1044_v62 = vpop.permute.xlu2 %1043 }
 0x316   : > { %v1162_v0 = vpack.c.b16 %v1160_v57, %v1159_v55  ;;  %v1068_v34 = vadd.f32 %v1040_v61, %v996_v59  ;;  %v1070_v10 = vadd.f32 %v1044_v62, %v998_v25 }
 0x318   : > { %v1080_v1 = vpack.c.bf16 %v1068_v34, %v1068_v34  ;;  %1164 = vrot.lane.b32.xlu0 %v1162_v0, %s2393_s29  ;;  %v1082_v33 = vpack.c.bf16 %v1070_v10, %v1070_v10 }
 0x31a   : > { %v1210_v3 = vunpack.c.l.b16 %v1080_v1  ;;  %v1259_v32 = vunpack.c.l.b16 %v1082_v33 }
 0x31c   : > { %v1212_v4 = vpack.c.b16 %v1210_v3, %v1209_v2 }
 0x31d   : > { %v1036_v6 = vpop.permute.xlu2 %1035 }
 0x31e   : > { %v1066_v7 = vadd.f32 %v1036_v6, %v994_v5  ;;  %1214 = vrot.lane.b32.xlu1 %v1212_v4, %s2393_s29 }
 0x320   : > { %v1078_v8 = vpack.c.bf16 %v1066_v7, %v1066_v7 }
 0x322   : > { %v1161_v9 = vunpack.c.l.b16 %v1078_v8 }
 0x324   : > { %v1163_v11 = vpack.c.b16 %v1161_v9, %v1161_v9 }
 0x325   : > { %v1042_v17 = vpop.permute.xlu0 %1041 }
 0x326   : > { %v1069_v21 = vadd.f32 %v1042_v17, %v997_v15  ;;  %750 = vrot.lane.b32.xlu1 %v725_v18, %s2391_s20  ;;  %1166 = vrot.lane.b32.xlu0 %v1163_v11, %s2393_s29  ;;  %v840_v15 = vmul.f32 %v2675_v51, %v2605_v30  ;;  %v839_v17 = vmul.f32 %v2660_v46, %v2581_v22 }
 0x327   : > { %v1046_v29 = vpop.permute.xlu1 %1045 }
 0x328   : > { %v1081_v58 = vpack.c.bf16 %v1069_v21, %v1069_v21  ;;  %v1071_v35 = vadd.f32 %v1046_v29, %v999_v19 }
 0x32a   : > { %v1211_v36 = vunpack.c.l.b16 %v1081_v58  ;;  %v1083_v45 = vpack.c.bf16 %v1071_v35, %v1071_v35 }
 0x32c   : > { %v1213_v47 = vpack.c.b16 %v1211_v36, %v1211_v36  ;;  %v1260_v50 = vunpack.c.l.b16 %v1083_v45 }
 0x32d   : > { %v763_v24 = vpop.permute.xlu0 %762 }
 0x32e   : > { %v1262_v52 = vpack.c.b16 %v1260_v50, %v1259_v32  ;;  %1216 = vrot.lane.b32.xlu2 %v1213_v47, %s2393_s29  ;;  %784 = vrot.lane.b32.xlu0 %v2548_v13, %s2392_s28 }
 0x32f   : > { %v789_v61 = vpop.permute.xlu1 %788 }
 0x335   : > { %v2782_v18 = vpop.permute.xlu0 %790 }
 0x336   : > { %748 = vrot.lane.b32.xlu2 %v724_v14, %s2391_s20  ;;  %766 = vrot.lane.b32.xlu0 %v733_v28, %s2391_s20  ;;  %v753_v14 = vpop.permute.xlu2 %752  ;;  %v835_v28 = vmul.f32 %v2532_v48, %v2569_v20 }
 0x337   : > { %v823_v0 = vsel %vm820_vm12, %v753_v14, %v789_v61  ;;  %v836_v14 = vmul.f32 %v2660_v46, %v2585_v23 }
 0x338   : > { %v847_v26 = vmul.f32 %v823_v0, %v2688_v56 }
 0x33a   : > { %v859_v34 = vadd.f32 %v847_v26, %v835_v28 }
 0x33c   : > { %v871_v2 = vmul.f32 0.35355338, %v859_v34 }
 0x33d   : > { %v1048_v54 = vpop.permute.xlu0 %1047 }
 0x33e   : > { %v1072_v55 = vadd.f32 %v1048_v54, %v1000_v60  ;;  %786 = vrot.lane.b32.xlu2 %v2556_v16, %s2392_s28  ;;  %804 = vrot.lane.b32.xlu0 %v2633_v40, %s2392_s28  ;;  %v883_v3 = vpack.c.bf16 %v871_v2, %v871_v2 }
 0x340   : > { %v1084_v57 = vpack.c.bf16 %v1072_v55, %v1072_v55  ;;  %v1102_v5 = vunpack.c.l.b16 %v883_v3 }
 0x342   : > { %v1261_v59 = vunpack.c.l.b16 %v1084_v57  ;;  %v1104_v6 = vpack.c.b16 %v1102_v5, %v1102_v5 }
 0x344   : > { %v1263_v62 = vpack.c.b16 %v1261_v59, %v1261_v59 }
 0x345   : > { %v1114_v63 = vpop.permute.xlu0 %1113 }
 0x346   : > { %768 = vrot.lane.b32.xlu2 %v734_v43, %s2391_s20  ;;  %1266 = vrot.lane.b32.xlu1 %v1263_v62, %s2393_s29  ;;  %v1125_v4 = vsel %vm1117_vm13, %v1114_v63, 0  ;;  %v837_v62 = vmul.f32 %v2675_v51, %v2607_v31 }
 0x347   : > { %794 = vrot.lane.b32.xlu0 %v2625_v38, %s2392_s28 }
 0x34d   : > { %v1116_v1 = vpop.permute.xlu0 %1115 }
 0x34e   : > { %802 = vrot.lane.b32.xlu1 %v2599_v27, %s2392_s28  ;;  %1264 = vrot.lane.b32.xlu2 %v1262_v52, %s2393_s29  ;;  %v1128_v43 = vsel %vm1117_vm13, %v1116_v1, 0  ;;  %s548_s29 = scalar_lea.vmem %s3136_s17, %s2255_s21 }
 0x34f   : > { %770 = vrot.lane.b32.xlu0 %v735_v53, %s2391_s20  ;;  %1136 = vmatpush.bf16.xpose.msra.mxu1 %v1128_v43  ;;  %v797_v53 = vpop.permute.xlu2 %796 }
 0x350   : > { %2268 = vmatpush.bf16.xpose.msra.mxu3 %v1128_v43 }
 0x356   : > { %758 = vrot.lane.b32.xlu1 %v729_v39, %s2391_s20  ;;  %764 = vrot.lane.b32.xlu2 %v732_v42, %s2391_s20  ;;  %v761_v39 = vpop.permute.xlu1 %760 }
 0x357   : > { %1137 = vmatpush.bf16.xpose.msra.mxu1 %v1125_v4  ;;  %v755_v7 = vpop.permute.xlu2 %754  ;;  %v827_v9 = vsel %vm820_vm12, %v761_v39, %v797_v53 }
 0x358   : > { %2269 = vmatpush.bf16.xpose.msra.mxu3 %v1125_v4  ;;  %v851_v11 = vmul.f32 %v827_v9, %v2654_v44  ;;  %v824_v54 = vsel %vm820_vm12, %v755_v7, %v2782_v18  ;;  %v834_v4 = vmul.f32 %v2675_v51, %v2556_v16  ;;  %v833_v9 = vmul.f32 %v2660_v46, %v2548_v13 }
 0x359   : > { %v848_v59 = vmul.f32 %v824_v54, %v2654_v44 }
 0x35a   : > { %v863_v33 = vadd.f32 %v851_v11, %v839_v17 }
 0x35b   : > { %v860_v34 = vadd.f32 %v848_v59, %v836_v14  ;;  %v843_v59 = vmul.f32 %v2675_v51, %v2633_v40 }
 0x35c   : > { %v875_v36 = vmul.f32 0.35355338, %v863_v33 }
 0x35d   : > { %v872_v5 = vmul.f32 0.35355338, %v860_v34 }
 0x35e   : > { %800 = vrot.lane.b32.xlu1 %v2621_v37, %s2392_s28  ;;  %806 = vrot.lane.b32.xlu2 %v2635_v41, %s2392_s28  ;;  %v799_v8 = vpop.permute.xlu1 %798  ;;  %v887_v52 = vpack.c.bf16 %v875_v36, %v875_v36 }
 0x35f   : > { %2188 = vmatmul.msk.bf16.vlgmr.msra.gmra.mxu3 %vm1117_vm13, %v1104_v6  ;;  %v793_v25 = vpop.permute.xlu2 %792  ;;  %v828_v42 = vsel %vm820_vm12, %v763_v24, %v799_v8  ;;  %v884_v7 = vpack.c.bf16 %v872_v5, %v872_v5  ;;  %v838_v5 = vmul.f32 %v2532_v48, %v2625_v38 }
 0x360   : > { %v852_v10 = vmul.f32 %v828_v42, %v2668_v49  ;;  %v1201_v61 = vunpack.c.l.b16 %v887_v52 }
 0x361   : > { %v1151_v17 = vunpack.c.l.b16 %v884_v7 }
 0x362   : > { %v864_v21 = vadd.f32 %v852_v10, %v840_v15 }
 0x364   : > { %v876_v35 = vmul.f32 0.35355338, %v864_v21 }
 0x366   : > { %v757_v19 = vpop.permute.xlu1 %756  ;;  %v888_v45 = vpack.c.bf16 %v876_v35, %v876_v35 }
 0x367   : > { %v825_v47 = vsel %vm820_vm12, %v757_v19, %v793_v25 }
 0x368   : > { %v1202_v55 = vunpack.c.l.b16 %v888_v45  ;;  %v849_v57 = vmul.f32 %v825_v47, %v2668_v49 }
 0x36a   : > { %v861_v63 = vadd.f32 %v849_v57, %v837_v62  ;;  %v1204_v0 = vpack.c.b16 %v1202_v55, %v1201_v61 }
 0x36c   : > { %v873_v2 = vmul.f32 0.35355338, %v861_v63 }
 0x36e   : > { %v885_v53 = vpack.c.bf16 %v873_v2, %v873_v2 }
 0x370   : > { %v1152_v11 = vunpack.c.l.b16 %v885_v53 }
 0x372   : > { %v1154_v33 = vpack.c.b16 %v1152_v11, %v1151_v17  ;;  %v841_v17 = vmul.f32 %v2532_v48, %v2621_v37 }
 0x388   : > { %v1217_v29 = vpop.permute.xlu2 %1216 }
 0x389   : > { %v1228_v58 = vsel %vm1117_vm13, %v1217_v29, 0 }
 0x38a   : > { %1236 = vmatpush.bf16.xpose.msrb.mxu3 %v1228_v58  ;;  %v1165_v32 = vpop.permute.xlu0 %1164 }
 0x38b   : > { %v1175_v25 = vsel %vm1117_vm13, %v1165_v32, 0 }
 0x390   : > { %v1215_v50 = vpop.permute.xlu1 %1214  ;;  %v749_v24 = vpop.permute.xlu2 %748 }
 0x391   : > { %v1225_v60 = vsel %vm1117_vm13, %v1215_v50, 0 }
 0x392   : > { %1237 = vmatpush.bf16.xpose.msrb.mxu3 %v1225_v60 }
 0x398   : > { %v751_v26 = vpop.permute.xlu1 %750  ;;  %v1167_v28 = vpop.permute.xlu0 %1166 }
 0x399   : > { %v787_v1 = vpop.permute.xlu2 %786  ;;  %2191 = vmatmul.msk.bf16.vlgmr.msrb.gmra.mxu3 %vm1117_vm13, %v1204_v0  ;;  %v1178_v18 = vsel %vm1117_vm13, %v1167_v28, 0 }
 0x39a   : > { %v822_v43 = vsel %vm820_vm12, %v751_v26, %v787_v1  ;;  %1186 = vmatpush.bf16.xpose.msra.mxu2 %v1178_v18  ;;  %v842_v26 = vmul.f32 %v2660_v46, %v2599_v27 }
 0x39b   : > { %v846_v3 = vmul.f32 %v822_v43, %v2668_v49 }
 0x39d   : > { %v858_v6 = vadd.f32 %v846_v3, %v834_v4 }
 0x39f   : > { %v870_v42 = vmul.f32 0.35355338, %v858_v6 }
 0x3a0   : > { %v785_v39 = vpop.permute.xlu0 %784 }
 0x3a1   : > { %v821_v8 = vsel %vm820_vm12, %v749_v24, %v785_v39  ;;  %v882_v21 = vpack.c.bf16 %v870_v42, %v870_v42  ;;  %v769_v29 = vpop.permute.xlu2 %768 }
 0x3a2   : > { %v845_v10 = vmul.f32 %v821_v8, %v2654_v44  ;;  %1187 = vmatpush.bf16.xpose.msra.mxu2 %v1175_v25 }
 0x3a3   : > { %v1101_v45 = vunpack.c.l.b16 %v882_v21 }
 0x3a4   : > { %v857_v15 = vadd.f32 %v845_v10, %v833_v9 }
 0x3a6   : > { %v869_v19 = vmul.f32 0.35355338, %v857_v15 }
 0x3a8   : > { %v881_v58 = vpack.c.bf16 %v869_v19, %v869_v19  ;;  %v767_v35 = vpop.permute.xlu0 %766 }
 0x3a9   : > { %2189 = vmatmul.msk.bf16.vlgmr.msra.gmra.mxu2 %vm1117_vm13, %v1154_v33  ;;  %v1265_v47 = vpop.permute.xlu2 %1264 }
 0x3aa   : > { %v1100_v36 = vunpack.c.l.b16 %v881_v58  ;;  %v1275_v63 = vsel %vm1117_vm13, %v1265_v47, 0 }
 0x3ac   : > { %v1103_v32 = vpack.c.b16 %v1101_v45, %v1100_v36 }
 0x3ae   : > { %2187 = vmatmul.msk.bf16.vlgmr.msra.gmra.mxu1 %vm1117_vm13, %v1103_v32 }
 0x3b0   : > { %v805_v50 = vpop.permute.xlu0 %804 }
 0x3b1   : > { %v831_v24 = vsel %vm820_vm12, %v769_v29, %v805_v50  ;;  %v765_v57 = vpop.permute.xlu2 %764 }
 0x3b2   : > { %v855_v55 = vmul.f32 %v831_v24, %v2668_v49 }
 0x3b4   : > { %v867_v61 = vadd.f32 %v855_v55, %v843_v59 }
 0x3b6   : > { %v879_v0 = vmul.f32 0.35355338, %v867_v61 }
 0x3b8   : > { %v1267_v52 = vpop.permute.xlu1 %1266  ;;  %v891_v43 = vpack.c.bf16 %v879_v0, %v879_v0 }
 0x3b9   : > { %v795_v60 = vpop.permute.xlu0 %794  ;;  %v1278_v54 = vsel %vm1117_vm13, %v1267_v52, 0  ;;  %v807_v49 = vpop.permute.xlu2 %806 }
 0x3ba   : > { %1286 = vmatpush.bf16.xpose.msrb.mxu0 %v1278_v54  ;;  %v1252_v46 = vunpack.c.l.b16 %v891_v43 }
 0x3c0   : > { %v803_v62 = vpop.permute.xlu1 %802 }
 0x3c1   : > { %v830_v14 = vsel %vm820_vm12, %v767_v35, %v803_v62  ;;  %v771_v34 = vpop.permute.xlu0 %770 }
 0x3c2   : > { %v854_v28 = vmul.f32 %v830_v14, %v2654_v44  ;;  %1287 = vmatpush.bf16.xpose.msrb.mxu0 %v1275_v63  ;;  %v832_v18 = vsel %vm820_vm12, %v771_v34, %v807_v49  ;;  %v844_v44 = vmul.f32 %v2532_v48, %v2635_v41  ;;  %v1090_v14 = vpack.c.bf16 %v2625_v38, %v2625_v38 }
 0x3c3   : > { %v856_v3 = vmul.f32 %v832_v18, %v2688_v56  ;;  %v1092_v34 = vpack.c.bf16 %v2605_v30, %v2605_v30  ;;  %v1093_v30 = vpack.c.bf16 %v2621_v37, %v2621_v37  ;;  %v1088_v37 = vpack.c.bf16 %v2585_v23, %v2585_v23 }
 0x3c4   : > { %v866_v1 = vadd.f32 %v854_v28, %v842_v26  ;;  %v1484_v0 = vunpack.c.l.b16 %v1090_v14  ;;  %v1087_v26 = vpack.c.bf16 %v2569_v20, %v2569_v20  ;;  %v1086_v20 = vpack.c.bf16 %v2556_v16, %v2556_v16 }
 0x3c5   : > { %v868_v7 = vadd.f32 %v856_v3, %v844_v44  ;;  %v1531_v38 = vunpack.c.l.b16 %v1092_v34  ;;  %v1085_v3 = vpack.c.bf16 %v2548_v13, %v2548_v13  ;;  %v1089_v44 = vpack.c.bf16 %v2607_v31, %v2607_v31 }
 0x3c6   : > { %v878_v51 = vmul.f32 0.35355338, %v866_v1  ;;  %v1486_v28 = vpack.c.b16 %v1484_v0, %v1484_v0  ;;  %v1433_v49 = vunpack.c.l.b16 %v1087_v26  ;;  %v1091_v1 = vpack.c.bf16 %v2581_v22, %v2581_v22 }
 0x3c7   : > { %v880_v9 = vmul.f32 0.35355338, %v868_v7  ;;  %v1432_v22 = vunpack.c.l.b16 %v1086_v20  ;;  %v1483_v13 = vunpack.c.l.b16 %v1089_v44  ;;  %v1482_v7 = vunpack.c.l.b16 %v1088_v37 }
 0x3c8   : > { %v890_v2 = vpack.c.bf16 %v878_v51, %v878_v51  ;;  %v759_v4 = vpop.permute.xlu1 %758  ;;  %v1435_v18 = vpack.c.b16 %v1433_v49, %v1433_v49  ;;  %v1530_v43 = vunpack.c.l.b16 %v1091_v1 }
 0x3c9   : > { %v826_v6 = vsel %vm820_vm12, %v759_v4, %v795_v60  ;;  %v892_v58 = vpack.c.bf16 %v880_v9, %v880_v9  ;;  %v1532_v4 = vunpack.c.l.b16 %v1093_v30 }
 0x3ca   : > { %v1251_v53 = vunpack.c.l.b16 %v890_v2  ;;  %v850_v39 = vmul.f32 %v826_v6, %v2688_v56  ;;  %v1533_v2 = vpack.c.b16 %v1531_v38, %v1530_v43  ;;  %v1431_v6 = vunpack.c.l.b16 %v1085_v3 }
 0x3cb   : > { %v1253_v45 = vunpack.c.l.b16 %v892_v58  ;;  %v1534_v16 = vpack.c.b16 %v1532_v4, %v1532_v4  ;;  %v1094_v58 = vpack.c.bf16 %v2599_v27, %v2599_v27 }
 0x3cc   : > { %v862_v8 = vadd.f32 %v850_v39, %v838_v5  ;;  %v1254_v25 = vpack.c.b16 %v1252_v46, %v1251_v53  ;;  %v1434_v53 = vpack.c.b16 %v1432_v22, %v1431_v6 }
 0x3cd   : > { %v1255_v50 = vpack.c.b16 %v1253_v45, %v1253_v45  ;;  %v1578_v45 = vunpack.c.l.b16 %v1094_v58 }
 0x3ce   : > { %v874_v42 = vmul.f32 0.35355338, %v862_v8  ;;  %2193 = vmatmul.msk.bf16.vlgmr.msrb.gmra.mxu0 %vm1117_vm13, %v1254_v25  ;;  %v1485_v25 = vpack.c.b16 %v1483_v13, %v1482_v7 }
 0x3d0   : > { %v801_v10 = vpop.permute.xlu1 %800  ;;  %v886_v11 = vpack.c.bf16 %v874_v42, %v874_v42  ;;  %v1096_v42 = vpack.c.bf16 %v2635_v41, %v2635_v41 }
 0x3d1   : > { %v829_v15 = vsel %vm820_vm12, %v765_v57, %v801_v10 }
 0x3d2   : > { %v853_v21 = vmul.f32 %v829_v15, %v2688_v56  ;;  %v1153_v19 = vunpack.c.l.b16 %v886_v11  ;;  %v1580_v31 = vunpack.c.l.b16 %v1096_v42 }
 0x3d4   : > { %v865_v29 = vadd.f32 %v853_v21, %v841_v17  ;;  %v1155_v33 = vpack.c.b16 %v1153_v19, %v1153_v19  ;;  %v1582_v23 = vpack.c.b16 %v1580_v31, %v1580_v31 }
 0x3d6   : > { %v877_v35 = vmul.f32 0.35355338, %v865_v29  ;;  %2190 = vmatmul.msk.bf16.gmra.mxu2 %vm1117_vm13, %v1155_v33 }
 0x3d8   : > { %v889_v36 = vpack.c.bf16 %v877_v35, %v877_v35  ;;  %v1095_v35 = vpack.c.bf16 %v2633_v40, %v2633_v40 }
 0x3da   : > { %v1203_v32 = vunpack.c.l.b16 %v889_v36 }
 0x3dc   : > { %v1205_v47 = vpack.c.b16 %v1203_v32, %v1203_v32  ;;  %v1579_v32 = vunpack.c.l.b16 %v1095_v35 }
 0x3de   : > { %2192 = vmatmul.msk.bf16.gmra.mxu3 %vm1117_vm13, %v1205_v47  ;;  %2194 = vmatmul.msk.bf16.gmra.mxu0 %vm1117_vm13, %v1255_v50 }
 0x3e2   : > { %v2883_v24 = vpop.f32.mrf.mxu3 }
 0x3ea   : > { %v1146_v48 = vpop.f32.mrf.mxu3 }
 0x41c   : > { %v2885_v56 = vpop.f32.mrf.mxu3 }
 0x41d   : > { %v1318_v63 = vsel %vm1298_vm14, %v2885_v56, -inf }
 0x424   : > { %v2895_v57 = vpop.f32.mrf.mxu3 }
 0x425   : > { %v1321_v62 = vsel %vm1298_vm14, %v2895_v57, -inf }
 0x42b   : > { %v2887_v52 = vpop.f32.mrf.mxu1 }
 0x42c   : > { %v2889_v60 = vpop.f32.mrf.mxu2  ;;  %v1299_v54 = vsel %vm1298_vm14, %v2887_v52, -inf }
 0x42d   : > { %1300 = vmax.xlane.f32.xlu2 %v1299_v54  ;;  %v1309_v55 = vsel %vm1298_vm14, %v2889_v60, -inf  ;;  %v1581_v54 = vpack.c.b16 %v1579_v32, %v1578_v45 }
 0x42e   : > { %1310 = vmax.xlane.f32.xlu0 %v1309_v55  ;;  %v2395_v55 = vmov 0  }
 0x433   : > { %v2897_v59 = vpop.f32.mrf.mxu1 }
 0x434   : > { %v1302_v61 = vsel %vm1298_vm14, %v2897_v59, -inf  ;;  %v2924_v5 = vpop.f32.mrf.mxu2 }
 0x435   : > { %1303 = vmax.xlane.f32.xlu1 %v1302_v61  ;;  %v1312_v33 = vsel %vm1298_vm14, %v2924_v5, -inf  ;;  %v1449_v61 = vsel %vm1447_vm2, 65535, %v2395_v55 }
 0x436   : > { %1322 = vmax.xlane.f32.xlu0 %v1321_v62 }
 0x43d   : > { %1319 = vmax.xlane.f32.xlu1 %v1318_v63 }
 0x445   : > { %1489 = vrot.lane.b32.xlu2 %v1486_v28, %s2394_s23 }
 0x44a   : > { %1438 = vrot.lane.b32.xlu0 %v1435_v18, %s2394_s23 }
 0x44b   : > { %v2915_v51 = vpop.f32.mrf.mxu0 }
 0x44c   : > { %v1327_v17 = vsel %vm1298_vm14, %v2915_v51, -inf }
 0x44d   : > { %1535 = vrot.lane.b32.xlu2 %v1533_v2, %s2394_s23 }
 0x453   : > { %v2926_v46 = vpop.f32.mrf.mxu0 }
 0x454   : > { %v1330_v41 = vsel %vm1298_vm14, %v2926_v46, -inf }
 0x455   : > { %1436 = vrot.lane.b32.xlu2 %v1434_v53, %s2394_s23 }
 0x456   : > { %1537 = vrot.lane.b32.xlu1 %v1534_v16, %s2394_s23 }
 0x459   : > { %v2934_v39 = vpop.f32.mrf.mxu2 }
 0x45a   : > { %v1315_v19 = vsel %vm1305_vm15, %v2934_v39, -inf }
 0x45b   : > { %v2936_v8 = vpop.f32.mrf.mxu0 }
 0x45c   : > { %v1333_v21 = vsel %vm1305_vm15, %v2936_v8, -inf }
 0x45d   : > { %1487 = vrot.lane.b32.xlu2 %v1485_v25, %s2394_s23 }
 0x461   : > { %v1196_v9 = vpop.f32.mrf.mxu2  ;;  %v2941_v10 = vpop.f32.mrf.mxu3 }
 0x462   : > { %v1324_v29 = vsel %vm1305_vm15, %v2941_v10, -inf }
 0x463   : > { %v1296_v11 = vpop.f32.mrf.mxu0 }
 0x465   : > { %1585 = vrot.lane.b32.xlu2 %v1582_v23, %s2394_s23 }
 0x469   : > { %v1246_v15 = vpop.f32.mrf.mxu3 }
 0x474   : > { %1328 = vmax.xlane.f32.xlu0 %v1327_v17 }
 0x47c   : > { %1334 = vmax.xlane.f32.xlu0 %v1333_v21 }
 0x480   : > { %1331 = vmax.xlane.f32.xlu1 %v1330_v41  ;;  %v1306_v41 = vsel %vm1305_vm15, %v2883_v24, -inf }
 0x484   : > { %1316 = vmax.xlane.f32.xlu0 %v1315_v19 }
 0x488   : > { %1325 = vmax.xlane.f32.xlu1 %v1324_v29 }
 0x48e   : > { %1313 = vmax.xlane.f32.xlu2 %v1312_v33 }
 0x4a0   : > { %v1301_v36 = vpop.xlane.xlu2 %1300 }
 0x4a1   : > { %v1336_v47 = vsub.f32 %v2887_v52, %v1301_v36  ;;  %v1311_v50 = vpop.xlane.xlu0 %1310 }
 0x4a2   : > { %v1339_v43 = vsub.f32 %v2889_v60, %v1311_v50 }
 0x4a3   : > { %v1348_v48 = vmul.f32 1.442695, %v1336_v47 }
 0x4a5   : > { %2309 = vpow2.f32 %v1348_v48 }
 0x4a6   : > { %1583 = vrot.lane.b32.xlu2 %v1581_v54, %s2394_s23 }
 0x4a8   : > { %v1304_v62 = vpop.xlane.xlu1 %1303  ;;  %v1490_v14 = vpop.permute.xlu2 %1489 }
 0x4a9   : > { %v1337_v27 = vsub.f32 %v2897_v59, %v1304_v62  ;;  %v1499_v63 = vand.u32 %v1490_v14, %v1449_v61  ;;  %v1323_v40 = vpop.xlane.xlu0 %1322 }
 0x4aa   : > { %v1343_v28 = vsub.f32 %v2895_v57, %v1323_v40  ;;  %v1354_v57 = vmul.f32 1.442695, %v1339_v43 }
 0x4ab   : > { %v2310_v0 = vpop.eup %2309  ;;  %v1350_v26 = vmul.f32 1.442695, %v1337_v27  ;;  %1507 = vmatpush.bf16.msrb.mxu2 %v1499_v63 }
 0x4ac   : > { %v1372_v52 = vsel %vm1298_vm14, %v2310_v0, 0.0  ;;  %v1362_v34 = vmul.f32 1.442695, %v1343_v28  ;;  %v1408_v60 = vpack.c.bf16 %v2310_v0, %v2310_v0 }
 0x4ad   : > { %2311 = vpow2.f32 %v1350_v26  ;;  %1373 = vadd.xlane.f32.xlu1 %v1372_v52 }
 0x4ae   : > { %2313 = vpow2.f32 %v1362_v34  ;;  %v1423_v13 = vunpack.c.l.b16 %v1408_v60 }
 0x4b0   : > { %v1320_v49 = vpop.xlane.xlu1 %1319  ;;  %v1536_v1 = vpop.permute.xlu2 %1535 }
 0x4b1   : > { %v1342_v38 = vsub.f32 %v2885_v56, %v1320_v49 }
 0x4b3   : > { %v2312_v18 = vpop.eup %2311  ;;  %v1360_v59 = vmul.f32 1.442695, %v1342_v38 }
 0x4b4   : > { %v1375_v2 = vsel %vm1298_vm14, %v2312_v18, 0.0  ;;  %v2314_v30 = vpop.eup %2313  ;;  %v1409_v22 = vpack.c.bf16 %v2312_v18, %v2312_v18 }
 0x4b5   : > { %2315 = vpow2.f32 %v1360_v59  ;;  %1376 = vadd.xlane.f32.xlu0 %v1375_v2  ;;  %v1393_v6 = vsel %vm1298_vm14, %v2314_v30, 0.0  ;;  %v1415_v15 = vpack.c.bf16 %v2314_v30, %v2314_v30 }
 0x4b6   : > { %2317 = vpow2.f32 %v1354_v57  ;;  %v1424_v44 = vunpack.c.l.b16 %v1409_v22 }
 0x4b7   : > { %v1523_v21 = vunpack.c.l.b16 %v1415_v15 }
 0x4b8   : > { %v1437_v20 = vpop.permute.xlu2 %1436  ;;  %v1426_v25 = vpack.c.b16 %v1424_v44, %v1423_v13  ;;  %v1651_v13 = vld [vmem:[%s3126_s7] sm:$0xf] }
 0x4bb   : > { %v2316_v3 = vpop.eup %2315 }
 0x4bc   : > { %v1439_v4 = vpop.permute.xlu0 %1438  ;;  %v1390_v56 = vsel %vm1298_vm14, %v2316_v3, 0.0  ;;  %v2970_v37 = vpop.eup %2317  ;;  %v1414_v42 = vpack.c.bf16 %v2316_v3, %v2316_v3 }
 0x4bd   : > { %v1451_v53 = vand.u32 %v1449_v61, %v1439_v4  ;;  %1394 = vadd.xlane.f32.xlu0 %v1393_v6  ;;  %1391 = vadd.xlane.f32.xlu1 %v1390_v56  ;;  %v1381_v7 = vsel %vm1298_vm14, %v2970_v37, 0.0 }
 0x4be   : > { %v1522_v17 = vunpack.c.l.b16 %v1414_v42 }
 0x4bf   : > { %1459 = vmatpush.bf16.msrb.mxu1 %v1451_v53 }
 0x4c0   : > { %v1488_v16 = vpop.permute.xlu2 %1487  ;;  %v1525_v19 = vpack.c.b16 %v1523_v21, %v1522_v17 }
 0x4c1   : > { %1508 = vmatpush.bf16.msrb.mxu2 %v1488_v16 }
 0x4c3   : > { %1460 = vmatpush.bf16.msrb.mxu1 %v1437_v20 }
 0x4c5   : > { %1382 = vadd.xlane.f32.xlu1 %v1381_v7  ;;  %v1706_v7 = vsel %vm1669_vm3, %v1651_v13, 0 }
 0x4c6   : > { %2195 = vmatmul.msk.bf16.vlgmr.msrb.gmra.mxu1 %vm1298_vm14, %v1426_v25  ;;  %1715 = vmatpush.bf16.msra.mxu2 %v1706_v7 }
 0x4c8   : > { %v1538_v31 = vpop.permute.xlu1 %1537  ;;  %v1586_v9 = vpop.permute.xlu2 %1585 }
 0x4c9   : > { %v1547_v11 = vand.u32 %v1538_v31, %v1449_v61  ;;  %v1595_v23 = vand.u32 %v1586_v9, %v1449_v61  ;;  %v1653_v9 = vld [vmem:[%s3126_s7 + $0x8] sm:$0xf] }
 0x4ca   : > { %v1741_v15 = vsel %vm1669_vm3, %v1653_v9, 0 }
 0x4cb   : > { %1555 = vmatpush.bf16.msra.mxu3 %v1547_v11  ;;  %1603 = vmatpush.bf16.msra.mxu0 %v1595_v23 }
 0x4cf   : > { %1307 = vmax.xlane.f32.xlu2 %v1306_v41  ;;  %1556 = vmatpush.bf16.msra.mxu3 %v1536_v1 }
 0x4d2   : > { %2199 = vmatmul.msk.bf16.vlgmr.msra.gmra.mxu3 %vm1298_vm14, %v1525_v19 }
 0x4d3   : > { %1750 = vmatpush.bf16.msrb.mxu3 %v1741_v15 }
 0x4e7   : > { %v1329_v29 = vpop.xlane.xlu0 %1328 }
 0x4e8   : > { %v1345_v33 = vsub.f32 %v2915_v51, %v1329_v29 }
 0x4ea   : > { %v1366_v58 = vmul.f32 1.442695, %v1345_v33 }
 0x4ec   : > { %2319 = vpow2.f32 %v1366_v58 }
 0x4ef   : > { %v1335_v50 = vpop.xlane.xlu0 %1334 }
 0x4f0   : > { %v1347_v51 = vsub.f32 %v2936_v8, %v1335_v50 }
 0x4f2   : > { %v2320_v35 = vpop.eup %2319  ;;  %v1370_v26 = vmul.f32 1.442695, %v1347_v51 }
 0x4f3   : > { %v1332_v36 = vpop.xlane.xlu1 %1331  ;;  %v1399_v45 = vsel %vm1298_vm14, %v2320_v35, 0.0  ;;  %v1417_v40 = vpack.c.bf16 %v2320_v35, %v2320_v35 }
 0x4f4   : > { %v1346_v32 = vsub.f32 %v2926_v46, %v1332_v36  ;;  %1400 = vadd.xlane.f32.xlu1 %v1399_v45 }
 0x4f5   : > { %v1570_v49 = vunpack.c.l.b16 %v1417_v40 }
 0x4f6   : > { %v1368_v47 = vmul.f32 1.442695, %v1346_v32 }
 0x4f7   : > { %v1317_v0 = vpop.xlane.xlu0 %1316 }
 0x4f8   : > { %2321 = vpow2.f32 %v1368_v47 }
 0x4fb   : > { %v1326_v48 = vpop.xlane.xlu1 %1325 }
 0x4fc   : > { %v1344_v54 = vsub.f32 %v2941_v10, %v1326_v48  ;;  %v1341_v10 = vsub.f32 %v2934_v39, %v1317_v0 }
 0x4fe   : > { %v1364_v55 = vmul.f32 1.442695, %v1344_v54  ;;  %v2322_v61 = vpop.eup %2321  ;;  %v1358_v59 = vmul.f32 1.442695, %v1341_v10 }
 0x4ff   : > { %v1418_v27 = vpack.c.bf16 %v2322_v61, %v2322_v61  ;;  %v1402_v4 = vsel %vm1298_vm14, %v2322_v61, 0.0 }
 0x500   : > { %2323 = vpow2.f32 %v1364_v55 }
 0x501   : > { %v1314_v62 = vpop.xlane.xlu2 %1313  ;;  %v1571_v28 = vunpack.c.l.b16 %v1418_v27 }
 0x502   : > { %v1340_v14 = vsub.f32 %v2924_v5, %v1314_v62  ;;  %v1411_v5 = vpack.c.bf16 %v2970_v37, %v2970_v37 }
 0x503   : > { %v1573_v8 = vpack.c.b16 %v1571_v28, %v1570_v49 }
 0x504   : > { %v1356_v63 = vmul.f32 1.442695, %v1340_v14  ;;  %v1474_v57 = vunpack.c.l.b16 %v1411_v5 }
 0x506   : > { %v2324_v46 = vpop.eup %2323  ;;  %2325 = vpow2.f32 %v1356_v63 }
 0x507   : > { %v1396_v52 = vsel %vm1305_vm15, %v2324_v46, 0.0  ;;  %v1416_v34 = vpack.c.bf16 %v2324_v46, %v2324_v46  ;;  %2327 = vpow2.f32 %v1370_v26 }
 0x508   : > { %1397 = vadd.xlane.f32.xlu2 %v1396_v52  ;;  %2329 = vpow2.f32 %v1358_v59 }
 0x509   : > { %v1584_v1 = vpop.permute.xlu2 %1583  ;;  %v1524_v38 = vunpack.c.l.b16 %v1416_v34  ;;  %v1652_v34 = vld [vmem:[%s3126_s7 + $0x4] sm:$0xf] }
 0x50a   : > { %1604 = vmatpush.bf16.msra.mxu0 %v1584_v1  ;;  %v1671_v10 = vsel %vm1669_vm3, %v1652_v34, 0  ;;  %v1654_v1 = vld [vmem:[%s3126_s7 + $0xc] sm:$0xf] }
 0x50b   : > { %v1526_v18 = vpack.c.b16 %v1524_v38, %v1524_v38  ;;  %1680 = vmatpush.bf16.msra.mxu1 %v1671_v10  ;;  %v1779_v38 = vsel %vm1669_vm3, %v1654_v1, 0 }
 0x50c   : > { %v2326_v43 = vpop.eup %2325 }
 0x50d   : > { %v1412_v2 = vpack.c.bf16 %v2326_v43, %v2326_v43  ;;  %2200 = vmatmul.msk.bf16.gmra.mxu3 %vm1298_vm14, %v1526_v18  ;;  %2201 = vmatmul.msk.bf16.vlgmr.msra.gmra.mxu0 %vm1298_vm14, %v1573_v8  ;;  %v1384_v39 = vsel %vm1298_vm14, %v2326_v43, 0.0  ;;  %v2328_v30 = vpop.eup %2327 }
 0x50e   : > { %1385 = vadd.xlane.f32.xlu0 %v1384_v39  ;;  %v1419_v22 = vpack.c.bf16 %v2328_v30, %v2328_v30  ;;  %v2330_v6 = vpop.eup %2329  ;;  %v1405_v51 = vsel %vm1305_vm15, %v2328_v30, 0.0  ;;  %1788 = vmatpush.bf16.msrb.mxu0 %v1779_v38 }
 0x50f   : > { %v1475_v20 = vunpack.c.l.b16 %v1412_v2  ;;  %v1413_v53 = vpack.c.bf16 %v2330_v6, %v2330_v6  ;;  %v1387_v44 = vsel %vm1305_vm15, %v2330_v6, 0.0 }
 0x510   : > { %v1572_v56 = vunpack.c.l.b16 %v1419_v22 }
 0x511   : > { %v1477_v3 = vpack.c.b16 %v1475_v20, %v1474_v57  ;;  %v1476_v16 = vunpack.c.l.b16 %v1413_v53 }
 0x512   : > { %v1574_v60 = vpack.c.b16 %v1572_v56, %v1572_v56 }
 0x513   : > { %2197 = vmatmul.msk.bf16.vlgmr.msrb.gmra.mxu2 %vm1298_vm14, %v1477_v3  ;;  %v1478_v37 = vpack.c.b16 %v1476_v16, %v1476_v16 }
 0x516   : > { %1403 = vadd.xlane.f32.xlu0 %v1402_v4 }
 0x51d   : > { %2202 = vmatmul.msk.bf16.gmra.mxu0 %vm1298_vm14, %v1574_v60 }
 0x51e   : > { %1388 = vadd.xlane.f32.xlu0 %v1387_v44 }
 0x520   : > { %v1374_v25 = vpop.xlane.xlu1 %1373 }
 0x521   : > { %2331 = vrcp.f32 %v1374_v25 }
 0x523   : > { %2198 = vmatmul.msk.bf16.gmra.mxu2 %vm1298_vm14, %v1478_v37 }
 0x527   : > { %v2332_v21 = vpop.eup %2331 }
 0x528   : > { %v1377_v42 = vpop.xlane.xlu0 %1376 }
 0x529   : > { %2333 = vrcp.f32 %v1377_v42 }
 0x52f   : > { %v2334_v19 = vpop.eup %2333 }
 0x530   : > { %v1395_v61 = vpop.xlane.xlu0 %1394 }
 0x542   : > { %v1308_v31 = vpop.xlane.xlu2 %1307 }
 0x543   : > { %v1338_v11 = vsub.f32 %v2883_v24, %v1308_v31  ;;  %v1462_v23 = vpop.f32.mrf.mxu1  ;;  %v1392_v24 = vpop.xlane.xlu1 %1391 }
 0x544   : > { %v1627_v41 = vmul.f32 %v2332_v21, %v1462_v23 }
 0x545   : > { %v1352_v17 = vmul.f32 1.442695, %v1338_v11 }
 0x546   : > { %v1639_v33 = vpack.c.bf16 %v1627_v41, %v1627_v41 }
 0x547   : > { %2335 = vpow2.f32 %v1352_v17 }
 0x548   : > { %v1694_v47 = vunpack.c.l.b16 %v1639_v33  ;;  %2337 = vrcp.f32 %v1392_v24 }
 0x549   : > { %2339 = vrcp.f32 %v1395_v61 }
 0x54b   : > { %v1464_v29 = vpop.f32.mrf.mxu1  ;;  %v1383_v5 = vpop.xlane.xlu1 %1382 }
 0x54c   : > { %v1628_v58 = vmul.f32 %v2334_v19, %v1464_v29 }
 0x54d   : > { %v2336_v35 = vpop.eup %2335 }
 0x54e   : > { %v1640_v36 = vpack.c.bf16 %v1628_v58, %v1628_v58  ;;  %v1378_v45 = vsel %vm1305_vm15, %v2336_v35, 0.0  ;;  %v1410_v32 = vpack.c.bf16 %v2336_v35, %v2336_v35  ;;  %v2338_v14 = vpop.eup %2337 }
 0x54f   : > { %1379 = vadd.xlane.f32.xlu1 %v1378_v45  ;;  %v2340_v63 = vpop.eup %2339 }
 0x550   : > { %v1695_v50 = vunpack.c.l.b16 %v1640_v36  ;;  %v1425_v48 = vunpack.c.l.b16 %v1410_v32 }
 0x552   : > { %v1697_v54 = vpack.c.b16 %v1695_v50, %v1694_v47  ;;  %v1427_v55 = vpack.c.b16 %v1425_v48, %v1425_v48 }
 0x554   : > { %2196 = vmatmul.msk.bf16.gmra.mxu1 %vm1298_vm14, %v1427_v55  ;;  %2205 = vmatmul.msk.bf16.vlgmr.msra.gmra.mxu2 %vm1117_vm13, %v1697_v54 }
 0x555   : > { %v1558_v62 = vpop.f32.mrf.mxu3 }
 0x556   : > { %v1633_v27 = vmul.f32 %v2338_v14, %v1558_v62 }
 0x557   : > { %1406 = vadd.xlane.f32.xlu1 %v1405_v51 }
 0x558   : > { %v1645_v0 = vpack.c.bf16 %v1633_v27, %v1633_v27 }
 0x55a   : > { %v1729_v28 = vunpack.c.l.b16 %v1645_v0 }
 0x55d   : > { %v1560_v40 = vpop.f32.mrf.mxu3 }
 0x55e   : > { %v1634_v46 = vmul.f32 %v2340_v63, %v1560_v40 }
 0x560   : > { %v1646_v26 = vpack.c.bf16 %v1634_v46, %v1634_v46 }
 0x562   : > { %v1730_v52 = vunpack.c.l.b16 %v1646_v26 }
 0x564   : > { %v1732_v49 = vpack.c.b16 %v1730_v52, %v1729_v28 }
 0x566   : > { %2207 = vmatmul.msk.bf16.vlgmr.msrb.gmra.mxu3 %vm1117_vm13, %v1732_v49 }
 0x567   : > { %v1401_v18 = vpop.xlane.xlu1 %1400 }
 0x568   : > { %2341 = vrcp.f32 %v1401_v18 }
 0x56e   : > { %v2342_v39 = vpop.eup %2341 }
 0x57b   : > { %v1398_v43 = vpop.xlane.xlu2 %1397 }
 0x57c   : > { %2343 = vrcp.f32 %v1398_v43 }
 0x581   : > { %v1386_v8 = vpop.xlane.xlu0 %1385 }
 0x582   : > { %v2344_v20 = vpop.eup %2343 }
 0x589   : > { %v1404_v59 = vpop.xlane.xlu0 %1403 }
 0x58a   : > { %v1606_v2 = vpop.f32.mrf.mxu0  ;;  %2345 = vrcp.f32 %v1404_v59 }
 0x58b   : > { %v1636_v57 = vmul.f32 %v2342_v39, %v1606_v2  ;;  %2347 = vrcp.f32 %v1383_v5  ;;  %v2294_v2 = vld [vmem:[%s3127_s8] ss:$0 sm:$0xff] }
 0x58c   : > { %2349 = vrcp.f32 %v1386_v8  ;;  %v2373_v39 = vld [vmem:[%s2500_s0] sm:$0xff] }
 0x58d   : > { %v1648_v6 = vpack.c.bf16 %v1636_v57, %v1636_v57 }
 0x58f   : > { %v1767_v37 = vunpack.c.l.b16 %v1648_v6 }
 0x590   : > { %v1563_v30 = vpop.f32.mrf.mxu3  ;;  %v2346_v22 = vpop.eup %2345 }
 0x591   : > { %v1635_v3 = vmul.f32 %v2344_v20, %v1563_v30  ;;  %v2348_v31 = vpop.eup %2347  ;;  %v1389_v17 = vpop.xlane.xlu0 %1388 }
 0x592   : > { %v1608_v4 = vpop.f32.mrf.mxu0  ;;  %v2350_v23 = vpop.eup %2349  ;;  %2351 = vrcp.f32 %v1389_v17 }
 0x593   : > { %v1647_v56 = vpack.c.bf16 %v1635_v3, %v1635_v3  ;;  %v1637_v53 = vmul.f32 %v2346_v22, %v1608_v4 }
 0x595   : > { %v1731_v60 = vunpack.c.l.b16 %v1647_v56  ;;  %v1649_v44 = vpack.c.bf16 %v1637_v53, %v1637_v53 }
 0x596   : > { %v1510_v16 = vpop.f32.mrf.mxu2 }
 0x597   : > { %v1733_v13 = vpack.c.b16 %v1731_v60, %v1731_v60  ;;  %v1768_v7 = vunpack.c.l.b16 %v1649_v44  ;;  %v1630_v11 = vmul.f32 %v2348_v31, %v1510_v16  ;;  %v2374_v60 = vld [vmem:[%s2500_s0 + $0x8] sm:$0xff] }
 0x598   : > { %v1565_v25 = vpop.f32.mrf.mxu3  ;;  %v2352_v45 = vpop.eup %2351 }
 0x599   : > { %v1770_v42 = vpack.c.b16 %v1768_v7, %v1767_v37  ;;  %2208 = vmatmul.msk.bf16.gmra.mxu3 %vm1117_vm13, %v1733_v13  ;;  %v1642_v21 = vpack.c.bf16 %v1630_v11, %v1630_v11 }
 0x59a   : > { %v1611_v9 = vpop.f32.mrf.mxu0 }
 0x59b   : > { %2209 = vmatmul.msk.bf16.vlgmr.msrb.gmra.mxu0 %vm1117_vm13, %v1770_v42  ;;  %v1658_v33 = vunpack.c.l.b16 %v1642_v21 }
 0x59e   : > { %v1512_v15 = vpop.f32.mrf.mxu2 }
 0x59f   : > { %v1631_v41 = vmul.f32 %v2350_v23, %v1512_v15  ;;  %v2375_v15 = vld [vmem:[%s2500_s0 + $0x10] sm:$0x1] }
 0x5a1   : > { %v1643_v19 = vpack.c.bf16 %v1631_v41, %v1631_v41 }
 0x5a2   : > { %v1613_v29 = vpop.f32.mrf.mxu0 }
 0x5a3   : > { %v1659_v58 = vunpack.c.l.b16 %v1643_v19 }
 0x5a5   : > { %v1661_v35 = vpack.c.b16 %v1659_v58, %v1658_v33 }
 0x5a6   : > { %v1515_v36 = vpop.f32.mrf.mxu2 }
 0x5a7   : > { %2203 = vmatmul.msk.bf16.vlgmr.msra.gmra.mxu1 %vm1117_vm13, %v1661_v35  ;;  %v1632_v32 = vmul.f32 %v2352_v45, %v1515_v36 }
 0x5a9   : > { %v1644_v24 = vpack.c.bf16 %v1632_v32, %v1632_v32 }
 0x5ab   : > { %v1660_v50 = vunpack.c.l.b16 %v1644_v24 }
 0x5ad   : > { %v1662_v48 = vpack.c.b16 %v1660_v50, %v1660_v50 }
 0x5ae   : > { %v1517_v47 = vpop.f32.mrf.mxu2 }
 0x5b7   : > { %2204 = vmatmul.msk.bf16.gmra.mxu1 %vm1117_vm13, %v1662_v48 }
 0x5c2   : > { %v1380_v54 = vpop.xlane.xlu1 %1379 }
 0x5c3   : > { %2353 = vrcp.f32 %v1380_v54 }
 0x5c9   : > { %v2354_v61 = vpop.eup %2353 }
 0x5ca   : > { %v1407_v55 = vpop.xlane.xlu1 %1406 }
 0x5cb   : > { %2355 = vrcp.f32 %v1407_v55 }
 0x5d1   : > { %v2356_v62 = vpop.eup %2355  ;;  %v1467_v51 = vpop.f32.mrf.mxu1 }
 0x5d2   : > { %v1629_v14 = vmul.f32 %v2354_v61, %v1467_v51  ;;  %v1638_v27 = vmul.f32 %v2356_v62, %v1611_v9  ;;  %v2259_v51 = vld [vmem:[%s3130_s11 + $0x8] sm:$0xff] }
 0x5d3   : > { %1926 = vmatpush.bf16.msrb.mxu1 %v2259_v51 }
 0x5d4   : > { %v1641_v63 = vpack.c.bf16 %v1629_v14, %v1629_v14  ;;  %v1650_v40 = vpack.c.bf16 %v1638_v27, %v1638_v27 }
 0x5d6   : > { %v1696_v0 = vunpack.c.l.b16 %v1641_v63  ;;  %v1769_v46 = vunpack.c.l.b16 %v1650_v40  ;;  %v2258_v40 = vld [vmem:[%s3130_s11] sm:$0xff] }
 0x5d7   : > { %v1717_v1 = vpop.f32.mrf.mxu2  ;;  %1927 = vmatpush.bf16.msrb.mxu1 %v2258_v40 }
 0x5d8   : > { %v1698_v26 = vpack.c.b16 %v1696_v0, %v1696_v0  ;;  %v1771_v28 = vpack.c.b16 %v1769_v46, %v1769_v46 }
 0x5d9   : > { %v1469_v52 = vpop.f32.mrf.mxu1 }
 0x5da   : > { %2206 = vmatmul.msk.bf16.gmra.mxu2 %vm1117_vm13, %v1698_v26  ;;  %2210 = vmatmul.msk.bf16.gmra.mxu0 %vm1117_vm13, %v1771_v28 }
 0x5df   : > { %v1719_v20 = vpop.f32.mrf.mxu2 }
 0x5e9   : > { %v1752_v34 = vpop.f32.mrf.mxu3 }
 0x5f1   : > { %v1754_v10 = vpop.f32.mrf.mxu3 }
 0x618   : > { %v1790_v18 = vpop.f32.mrf.mxu0 }
 0x61c   : > { %v1757_v49 = vpop.f32.mrf.mxu3 }
 0x620   : > { %v1792_v56 = vpop.f32.mrf.mxu0 }
 0x624   : > { %v1682_v38 = vpop.f32.mrf.mxu1  ;;  %v1759_v5 = vpop.f32.mrf.mxu3 }
 0x625   : > { %v1718_v8 = vadd.f32 %v1717_v1, %v1682_v38 }
 0x627   : > { %v1761_v43 = vadd.f32 %v1752_v34, %v1718_v8 }
 0x629   : > { %v1799_v59 = vadd.f32 %v1790_v18, %v1761_v43 }
 0x62b   : > { %v1802_v57 = vadd.f32 %v2373_v39, %v1799_v59 }
 0x62c   : > { %v1684_v30 = vpop.f32.mrf.mxu1 }
 0x62d   : > { %v1720_v3 = vadd.f32 %v1719_v20, %v1684_v30  ;;  %v3028_v22 = vadd.f32 %v2294_v2, %v1802_v57  ;;  %v2296_v30 = vld [vmem:[%s3129_s10] ss:$0 sm:$0xff] }
 0x62f   : > { %v1762_v4 = vadd.f32 %v1754_v10, %v1720_v3  ;;  %v1814_v6 = vsel %vm555_vm0, %v3028_v22, 0.0 }
 0x630   : > { %1815 = vadd.xlane.f32.xlu2 %v1814_v6 }
 0x631   : > { %v1800_v53 = vadd.f32 %v1792_v56, %v1762_v4 }
 0x633   : > { %v1803_v44 = vadd.f32 %v2374_v60, %v1800_v53 }
 0x634   : > { %v1687_v16 = vpop.f32.mrf.mxu1 }
 0x635   : > { %v3033_v37 = vadd.f32 %v2294_v2, %v1803_v44 }
 0x637   : > { %v1817_v13 = vsel %vm555_vm0, %v3033_v37, 0.0 }
 0x638   : > { %1818 = vadd.xlane.f32.xlu0 %v1817_v13 }
 0x63c   : > { %v1689_v7 = vpop.f32.mrf.mxu1 }
 0x657   : > { %v1795_v25 = vpop.f32.mrf.mxu0 }
 0x65d   : > { %v1722_v42 = vpop.f32.mrf.mxu2 }
 0x65e   : > { %v1723_v31 = vadd.f32 %v1722_v42, %v1687_v16 }
 0x65f   : > { %v1797_v9 = vpop.f32.mrf.mxu0 }
 0x660   : > { %v1763_v11 = vadd.f32 %v1757_v49, %v1723_v31 }
 0x662   : > { %v1801_v23 = vadd.f32 %v1795_v25, %v1763_v11 }
 0x664   : > { %v1804_v17 = vadd.f32 %v2375_v15, %v1801_v23 }
 0x665   : > { %v1724_v21 = vpop.f32.mrf.mxu2 }
 0x666   : > { %v1811_v41 = vadd.f32 %v2294_v2, %v1804_v17  ;;  %v2295_v2 = vld [vmem:[%s3128_s9] ss:$0 sm:$0xff] }
 0x668   : > { %v1820_v19 = vsel %vm562_vm1, %v1811_v41, 0.0 }
 0x669   : > { %1821 = vadd.xlane.f32.xlu0 %v1820_v19  ;;  %v2267_v19 = vld [vmem:[%s3132_s13 + $0x38] sm:$0xff] }
 0x66a   : > { %2031 = vmatpush.bf16.msrb.mxu2 %v2267_v19 }
 0x6a3   : > { %v1816_v29 = vpop.xlane.xlu2 %1815 }
 0x6a4   : > { %v1823_v33 = vmul.f32 %v1816_v29, %v2508_v12  ;;  %v2266_v29 = vld [vmem:[%s3132_s13 + $0x30] sm:$0xff] }
 0x6a5   : > { %2032 = vmatpush.bf16.msrb.mxu2 %v2266_v29 }
 0x6a6   : > { %v1826_v58 = vsub.f32 %v3028_v22, %v1823_v33  ;;  %v2265_v33 = vld [vmem:[%s3132_s13 + $0x28] sm:$0xff] }
 0x6a8   : > { %v1829_v35 = vmul.f32 %v1826_v58, %v1826_v58 }
 0x6a9   : > { %2033 = vmatpush.bf16.msrb.mxu2 %v2265_v33 }
 0x6aa   : > { %v1832_v36 = vsel %vm555_vm0, %v1829_v35, 0.0  ;;  %v2263_v35 = vld [vmem:[%s3132_s13 + $0x18] sm:$0xff] }
 0x6ab   : > { %v1819_v45 = vpop.xlane.xlu0 %1818  ;;  %1833 = vadd.xlane.f32.xlu1 %v1832_v36  ;;  %v2262_v36 = vld [vmem:[%s3132_s13 + $0x10] sm:$0xff] }
 0x6ac   : > { %v1824_v32 = vmul.f32 %v1819_v45, %v2508_v12  ;;  %v2261_v45 = vld [vmem:[%s3132_s13 + $0x8] sm:$0xff] }
 0x6ae   : > { %v1827_v24 = vsub.f32 %v3033_v37, %v1824_v32  ;;  %v2297_v32 = vld [vmem:[%s3131_s12] ss:$0 sm:$0xff] }
 0x6b0   : > { %v1830_v47 = vmul.f32 %v1827_v24, %v1827_v24 }
 0x6b2   : > { %v1835_v50 = vsel %vm555_vm0, %v1830_v47, 0.0  ;;  %v2260_v47 = vld [vmem:[%s3132_s13] sm:$0xff] }
 0x6b3   : > { %1836 = vadd.xlane.f32.xlu2 %v1835_v50 }
 0x6dc   : > { %v1822_v48 = vpop.xlane.xlu0 %1821 }
 0x6dd   : > { %v1825_v54 = vmul.f32 %v1822_v48, %v2508_v12 }
 0x6df   : > { %v1828_v55 = vsub.f32 %v1811_v41, %v1825_v54 }
 0x6e1   : > { %v1831_v61 = vmul.f32 %v1828_v55, %v1828_v55 }
 0x6e3   : > { %v1838_v62 = vsel %vm562_vm1, %v1831_v61, 0.0 }
 0x6e4   : > { %1839 = vadd.xlane.f32.xlu1 %v1838_v62 }
 0x71e   : > { %v1834_v14 = vpop.xlane.xlu1 %1833 }
 0x71f   : > { %v1841_v27 = vmul.f32 %v1834_v14, %v2508_v12 }
 0x721   : > { %v1844_v63 = vadd.f32 1e-05, %v1841_v27 }
 0x723   : > { %2357 = vrsqrt.f32 %v1844_v63  ;;  %vm1853_vm4 = vweird.f32 %v1844_v63 }
 0x726   : > { %v1837_v0 = vpop.xlane.xlu2 %1836 }
 0x727   : > { %v1842_v46 = vmul.f32 %v1837_v0, %v2508_v12 }
 0x729   : > { %v2358_v26 = vpop.eup %2357  ;;  %v1845_v28 = vadd.f32 1e-05, %v1842_v46 }
 0x72a   : > { %v1848_v52 = vmul.f32 %v2358_v26, %v1844_v63  ;;  %vm1854_vm1 = vweird.f32 %v2358_v26 }
 0x72b   : > { %2359 = vrsqrt.f32 %v1845_v28  ;;  %vm1855_vm5 = vmor %vm1853_vm4, %vm1854_vm1  ;;  %vm1863_vm7 = vweird.f32 %v1845_v28 }
 0x72c   : > { %v1849_v34 = vmul.f32 %v2358_v26, %v1848_v52 }
 0x72e   : > { %v1850_v10 = vmul.f32 0.5, %v1849_v34 }
 0x730   : > { %v1851_v49 = vsub.f32 1.5, %v1850_v10 }
 0x731   : > { %v2360_v1 = vpop.eup %2359 }
 0x732   : > { %v1852_v38 = vmul.f32 %v2358_v26, %v1851_v49  ;;  %v1858_v5 = vmul.f32 %v2360_v1, %v1845_v28  ;;  %vm1864_vm6 = vweird.f32 %v2360_v1 }
 0x733   : > { %vm1865_vm8 = vmor %vm1863_vm7, %vm1864_vm6 }
 0x734   : > { %v1859_v8 = vmul.f32 %v2360_v1, %v1858_v5  ;;  %v1856_v18 = vsel %vm1855_vm5, %v2358_v26, %v1852_v38 }
 0x735   : > { %v1877_v39 = vmul.f32 %v1856_v18, %v1826_v58  ;;  %v2264_v58 = vld [vmem:[%s3132_s13 + $0x20] sm:$0xff] }
 0x736   : > { %v1860_v43 = vmul.f32 0.5, %v1859_v8  ;;  %2034 = vmatpush.bf16.msrb.mxu2 %v2264_v58 }
 0x737   : > { %v1883_v3 = vmul.f32 %v2295_v2, %v1877_v39 }
 0x738   : > { %v1861_v59 = vsub.f32 1.5, %v1860_v43 }
 0x739   : > { %v1889_v56 = vadd.f32 %v2296_v30, %v1883_v3 }
 0x73a   : > { %v1862_v57 = vmul.f32 %v2360_v1, %v1861_v59  ;;  %2035 = vmatpush.bf16.msrb.mxu2 %v2263_v35 }
 0x73c   : > { %v1866_v20 = vsel %vm1865_vm8, %v2360_v1, %v1862_v57 }
 0x73d   : > { %v1878_v4 = vmul.f32 %v1866_v20, %v1827_v24 }
 0x73e   : > { %2036 = vmatpush.bf16.msrb.mxu2 %v2262_v36 }
 0x73f   : > { %v1884_v6 = vmul.f32 %v2295_v2, %v1878_v4 }
 0x741   : > { %v1890_v53 = vadd.f32 %v2296_v30, %v1884_v6 }
 0x742   : > { %2037 = vmatpush.bf16.msrb.mxu2 %v2261_v45 }
 0x743   : > { %v1896_v60 = vpack.c.bf16 %v1890_v53, %v1889_v56  ;;  %v2298_v53 = vld [vmem:[%s3133_s14] ss:$0 sm:$0xff] }
 0x745   : > { %2219 = vmatmul.msk.bf16.vlgmr.msrb.gmra.mxu1 %vm555_vm0, %v1896_v60 }
 0x746   : > { %2038 = vmatpush.bf16.msrb.mxu2 %v2260_v47 }
 0x757   : > { %v1840_v44 = vpop.xlane.xlu1 %1839 }
 0x758   : > { %v1843_v16 = vmul.f32 %v1840_v44, %v2508_v12 }
 0x75a   : > { %v1846_v13 = vadd.f32 1e-05, %v1843_v16 }
 0x75c   : > { %2361 = vrsqrt.f32 %v1846_v13  ;;  %vm1873_vm10 = vweird.f32 %v1846_v13 }
 0x762   : > { %v2362_v7 = vpop.eup %2361 }
 0x763   : > { %v1868_v25 = vmul.f32 %v2362_v7, %v1846_v13  ;;  %vm1874_vm9 = vweird.f32 %v2362_v7 }
 0x764   : > { %vm1875_vm11 = vmor %vm1873_vm10, %vm1874_vm9 }
 0x765   : > { %v1869_v42 = vmul.f32 %v2362_v7, %v1868_v25 }
 0x767   : > { %v1870_v31 = vmul.f32 0.5, %v1869_v42 }
 0x769   : > { %v1871_v9 = vsub.f32 1.5, %v1870_v31 }
 0x76b   : > { %v1872_v11 = vmul.f32 %v2362_v7, %v1871_v9 }
 0x76d   : > { %v1876_v23 = vsel %vm1875_vm11, %v2362_v7, %v1872_v11 }
 0x76e   : > { %v1879_v15 = vmul.f32 %v1876_v23, %v1828_v55 }
 0x770   : > { %v1885_v17 = vmul.f32 %v2295_v2, %v1879_v15 }
 0x772   : > { %v1891_v21 = vadd.f32 %v2296_v30, %v1885_v17 }
 0x774   : > { %v1897_v41 = vpack.c.bf16 %v1891_v21, %v1891_v21 }
 0x776   : > { %2220 = vmatmul.msk.bf16.gmra.mxu1 %vm555_vm0, %v1897_v41 }
 0x7c2   : > { %v1929_v24 = vpop.f32.mrf.mxu1 }
 0x7c3   : > { %v1930_v50 = vadd.f32 %v2297_v32, %v1929_v24 }
 0x7c5   : > { %v1938_v48 = vmul.f32 %v1930_v50, %v1930_v50 }
 0x7c7   : > { %v1941_v54 = vmul.f32 %v1938_v48, %v1930_v50 }
 0x7c9   : > { %v1944_v55 = vmul.f32 0.044715, %v1941_v54 }
 0x7ca   : > { %v1931_v61 = vpop.f32.mrf.mxu1 }
 0x7cb   : > { %v1947_v62 = vadd.f32 %v1944_v55, %v1930_v50  ;;  %v1932_v51 = vadd.f32 %v2297_v32, %v1931_v61 }
 0x7cd   : > { %v1950_v14 = vmul.f32 0.7978846, %v1947_v62  ;;  %v1939_v27 = vmul.f32 %v1932_v51, %v1932_v51 }
 0x7cf   : > { %v1942_v63 = vmul.f32 %v1939_v27, %v1932_v51  ;;  %2363 = vtanh.f32 %v1950_v14  ;;  %v2299_v14 = vld [vmem:[%s3134_s15] ss:$0 sm:$0xff] }
 0x7d1   : > { %v1945_v40 = vmul.f32 0.044715, %v1942_v63  ;;  %v2300_v63 = vld [vmem:[%s3135_s16] ss:$0 sm:$0xff] }
 0x7d3   : > { %v1948_v0 = vadd.f32 %v1945_v40, %v1932_v51 }
 0x7d5   : > { %v1951_v46 = vmul.f32 0.7978846, %v1948_v0  ;;  %v2364_v26 = vpop.eup %2363 }
 0x7d6   : > { %v1956_v28 = vadd.f32 1.0, %v2364_v26 }
 0x7d7   : > { %2365 = vtanh.f32 %v1951_v46 }
 0x7d8   : > { %v1959_v34 = vmul.f32 0.5, %v1956_v28 }
 0x7da   : > { %v1962_v1 = vmul.f32 %v1959_v34, %v1930_v50 }
 0x7dd   : > { %v2366_v52 = vpop.eup %2365 }
 0x7de   : > { %v1957_v10 = vadd.f32 1.0, %v2366_v52 }
 0x7e0   : > { %v1960_v49 = vmul.f32 0.5, %v1957_v10 }
 0x7e2   : > { %v1963_v38 = vmul.f32 %v1960_v49, %v1932_v51 }
 0x7e4   : > { %v1981_v5 = vpack.c.bf16 %v1963_v38, %v1962_v1 }
 0x7e6   : > { %2039 = vmatmul.bf16.vlgmr.msrb.gmra.mxu2 %v1981_v5 }
 0x7f3   : > { %v1934_v8 = vpop.f32.mrf.mxu1 }
 0x7f4   : > { %v1935_v18 = vadd.f32 %v2297_v32, %v1934_v8 }
 0x7f6   : > { %v1940_v43 = vmul.f32 %v1935_v18, %v1935_v18 }
 0x7f8   : > { %v1943_v59 = vmul.f32 %v1940_v43, %v1935_v18 }
 0x7fa   : > { %v1946_v2 = vmul.f32 0.044715, %v1943_v59 }
 0x7fb   : > { %v1936_v39 = vpop.f32.mrf.mxu1 }
 0x7fc   : > { %v1949_v57 = vadd.f32 %v1946_v2, %v1935_v18 }
 0x7fe   : > { %v1952_v20 = vmul.f32 0.7978846, %v1949_v57 }
 0x800   : > { %2367 = vtanh.f32 %v1952_v20 }
 0x806   : > { %v2368_v30 = vpop.eup %2367 }
 0x807   : > { %v1958_v3 = vadd.f32 1.0, %v2368_v30 }
 0x809   : > { %v1961_v4 = vmul.f32 0.5, %v1958_v3 }
 0x80b   : > { %v1964_v6 = vmul.f32 %v1961_v4, %v1935_v18 }
 0x80d   : > { %v1982_v56 = vpack.c.bf16 %v1964_v6, %v1964_v6 }
 0x80f   : > { %2044 = vmatmul.bf16.gmra.mxu2 %v1982_v56 }
 0x869   : > { %v2040_v60 = vpop.f32.mrf.mxu2 }
 0x86a   : > { %v2048_v44 = vadd.f32 %v2040_v60, %v3028_v22 }
 0x86c   : > { %v2054_v16 = vadd.f32 %v2298_v53, %v2048_v44 }
 0x86e   : > { %v2058_v13 = vsel %vm555_vm0, %v2054_v16, 0.0 }
 0x86f   : > { %2059 = vadd.xlane.f32.xlu2 %v2058_v13 }
 0x871   : > { %v2042_v7 = vpop.f32.mrf.mxu2 }
 0x872   : > { %v2049_v25 = vadd.f32 %v2042_v7, %v3033_v37 }
 0x874   : > { %v2055_v42 = vadd.f32 %v2298_v53, %v2049_v25 }
 0x876   : > { %v2061_v31 = vsel %vm555_vm0, %v2055_v42, 0.0 }
 0x877   : > { %2062 = vadd.xlane.f32.xlu0 %v2061_v31 }
 0x892   : > { %v2045_v9 = vpop.f32.mrf.mxu2 }
 0x89a   : > { %v2046_v11 = vpop.f32.mrf.mxu2 }
 0x8e2   : > { %v2060_v23 = vpop.xlane.xlu2 %2059 }
 0x8e3   : > { %v2064_v15 = vmul.f32 %v2060_v23, %v2508_v12 }
 0x8e5   : > { %v2066_v17 = vsub.f32 %v2054_v16, %v2064_v15 }
 0x8e7   : > { %v2068_v21 = vmul.f32 %v2066_v17, %v2066_v17 }
 0x8e9   : > { %v2070_v22 = vsel %vm555_vm0, %v2068_v21, 0.0 }
 0x8ea   : > { %2071 = vadd.xlane.f32.xlu1 %v2070_v22  ;;  %v2063_v41 = vpop.xlane.xlu0 %2062 }
 0x8eb   : > { %v2065_v19 = vmul.f32 %v2063_v41, %v2508_v12 }
 0x8ed   : > { %v2067_v29 = vsub.f32 %v2055_v42, %v2065_v19 }
 0x8ef   : > { %v2069_v33 = vmul.f32 %v2067_v29, %v2067_v29 }
 0x8f1   : > { %v2073_v37 = vsel %vm555_vm0, %v2069_v33, 0.0 }
 0x8f2   : > { %2074 = vadd.xlane.f32.xlu2 %v2073_v37 }
 0x95d   : > { %v2072_v58 = vpop.xlane.xlu1 %2071 }
 0x95e   : > { %v2076_v35 = vmul.f32 %v2072_v58, %v2508_v12 }
 0x960   : > { %v2078_v36 = vadd.f32 1e-05, %v2076_v35 }
 0x962   : > { %2369 = vrsqrt.f32 %v2078_v36  ;;  %vm2086_vm13 = vweird.f32 %v2078_v36 }
 0x965   : > { %v2075_v45 = vpop.xlane.xlu2 %2074 }
 0x966   : > { %v2077_v32 = vmul.f32 %v2075_v45, %v2508_v12 }
 0x968   : > { %v2370_v24 = vpop.eup %2369  ;;  %v2079_v47 = vadd.f32 1e-05, %v2077_v32 }
 0x969   : > { %v2081_v50 = vmul.f32 %v2370_v24, %v2078_v36  ;;  %vm2087_vm12 = vweird.f32 %v2370_v24 }
 0x96a   : > { %2371 = vrsqrt.f32 %v2079_v47  ;;  %vm2088_vm14 = vmor %vm2086_vm13, %vm2087_vm12  ;;  %vm2096_vm2 = vweird.f32 %v2079_v47 }
 0x96b   : > { %v2082_v48 = vmul.f32 %v2370_v24, %v2081_v50 }
 0x96d   : > { %v2083_v54 = vmul.f32 0.5, %v2082_v48 }
 0x96f   : > { %v2084_v55 = vsub.f32 1.5, %v2083_v54 }
 0x970   : > { %v2372_v61 = vpop.eup %2371 }
 0x971   : > { %v2085_v62 = vmul.f32 %v2370_v24, %v2084_v55  ;;  %v2091_v51 = vmul.f32 %v2372_v61, %v2079_v47  ;;  %vm2097_vm15 = vweird.f32 %v2372_v61 }
 0x972   : > { %vm2098_vm3 = vmor %vm2096_vm2, %vm2097_vm15 }
 0x973   : > { %v2089_v27 = vsel %vm2088_vm14, %v2370_v24, %v2085_v62  ;;  %v2092_v12 = vmul.f32 %v2372_v61, %v2091_v51 }
 0x974   : > { %v2100_v40 = vmul.f32 %v2089_v27, %v2066_v17 }
 0x975   : > { %v2093_v0 = vmul.f32 0.5, %v2092_v12 }
 0x976   : > { %v2105_v46 = vmul.f32 %v2299_v14, %v2100_v40 }
 0x977   : > { %v2094_v26 = vsub.f32 1.5, %v2093_v0 }
 0x978   : > { %v2110_v28 = vadd.f32 %v2300_v63, %v2105_v46 }
 0x979   : > { %v2095_v52 = vmul.f32 %v2372_v61, %v2094_v26 }
 0x97a   : > { %2112 = vst.msk [vmem:[%s548_s29] sm:$0xff] %vm555_vm0, %v2110_v28 }
 0x97b   : > { %v2099_v34 = vsel %vm2098_vm3, %v2372_v61, %v2095_v52 }
 0x97c   : > { %v2101_v10 = vmul.f32 %v2099_v34, %v2067_v29 }
 0x97e   : > { %v2106_v49 = vmul.f32 %v2299_v14, %v2101_v10 }
 0x980   : > { %v2111_v1 = vadd.f32 %v2300_v63, %v2106_v49 }
 0x982   : > { %2113 = vst.msk [vmem:[%s548_s29 + $0x8] sm:$0xff] %vm555_vm0, %v2111_v1 }
 0x983 PF: > { %s27_s24 = sadd.s32 1, %s2382_s24  }
 0x984   : > { %p24_p4 = scmp.ge.s32.totalorder %s27_s24, 4  }
 0x986   :  { %26 = sbr.rel (!%p24_p4) target bundleno = 3 (0x3), region = 118 }

// kernel: llama4_encoder_forward.7
= control target key start
LH: loop header
LB: loop body
LE: loop exit
PB: predicated region body
PF: predicated region fallthrough
CT: control target
= control target key end

     0   :  { %s428_s0 = inlined_call_operand.vmem [shape: f32[8,128], index: 0, kind: input, shape index: {}]   ;;  %s429_s1 = inlined_call_operand.vmem [shape: bf16[128,64], index: 1, kind: input, shape index: {}]   ;;  %s430_s2 = inlined_call_operand.vmem [shape: bf16[64,64], index: 2, kind: input, shape index: {}]   ;;  %s431_s3 = inlined_call_operand.vmem [shape: bf16[64,48], index: 3, kind: input, shape index: {}]   ;;  %s432_s4 = inlined_call_operand.hbm [shape: f32[8,48], index: 4, kind: output, shape index: {}]  }
   0x1   :  { %v306_v0 = vld [vmem:[%s429_s1 + $0x38] sm:$0xff]  ;;  %v305_v1 = vld [vmem:[%s429_s1 + $0x30] sm:$0xff] }
   0x2   :  { %85 = vmatpush.bf16.msra.mxu0 %v306_v0 }
   0x3   :  { %9 = vsyncpa [#allocation3], 0  ;;  %v304_v2 = vld [vmem:[%s429_s1 + $0x28] sm:$0xff]  ;;  %v303_v3 = vld [vmem:[%s429_s1 + $0x20] sm:$0xff]  ;;  %vm140_vm0 = vcmask 523264   ;;  %s346_s20 = smov [#allocation2]  }
   0x4   :  { %v302_v4 = vld [vmem:[%s429_s1 + $0x18] sm:$0xff]  ;;  %v301_v5 = vld [vmem:[%s429_s1 + $0x10] sm:$0xff]  ;;  %v300_v6 = vld [vmem:[%s429_s1 + $0x8] sm:$0xff]  ;;  %s222_s21 = sshll.u32 %s346_s20, 4  ;;  %s224_s23 = sshll.u32 %s432_s4, 4  ;;  %vm215_vm1 = vcmask 392192   ;;  %s223_s21 = int_to_ptr.vmem [resolvable:$true] %s222_s21  ;;  %s225_s23 = int_to_ptr.hbm [resolvable:$true] %s224_s23 }
   0x5   :  { %v299_v7 = vld [vmem:[%s429_s1] sm:$0xff]  ;;  %v310_v10 = vld [vmem:[%s430_s2 + $0x18] sm:$0xff]  ;;  %v309_v11 = vld [vmem:[%s430_s2 + $0x10] sm:$0xff] }
   0x6   :  { %86 = vmatpush.bf16.msra.mxu0 %v305_v1  ;;  %v19_v8 = vld [vmem:[%s428_s0] sm:$0xff]  ;;  %148 = vmatpush.bf16.msra.mxu1 %v310_v10  ;;  %v308_v12 = vld [vmem:[%s430_s2 + $0x8] sm:$0xff]  ;;  %v314_v26 = vld [vmem:[%s431_s3 + $0x18] sm:$0xff] }
   0x7   :  { %v36_v9 = vpack.c.bf16 %v19_v8, %v19_v8  ;;  %v307_v13 = vld [vmem:[%s430_s2] sm:$0xff]  ;;  %206 = vmatpush.bf16.msra.mxu2 %v314_v26  ;;  %v313_v27 = vld [vmem:[%s431_s3 + $0x10] sm:$0xff]  ;;  %v312_v28 = vld [vmem:[%s431_s3 + $0x8] sm:$0xff] }
   0x8   :  { %v311_v29 = vld [vmem:[%s431_s3] sm:$0xff] }
   0xa   :  { %87 = vmatpush.bf16.msra.mxu0 %v304_v2  ;;  %149 = vmatpush.bf16.msra.mxu1 %v309_v11 }
   0xb   :  { %207 = vmatpush.bf16.msra.mxu2 %v313_v27 }
   0xe   :  { %88 = vmatpush.bf16.msra.mxu0 %v303_v3  ;;  %150 = vmatpush.bf16.msra.mxu1 %v308_v12 }
   0xf   :  { %208 = vmatpush.bf16.msra.mxu2 %v312_v28 }
  0x12   :  { %89 = vmatpush.bf16.msra.mxu0 %v302_v4  ;;  %151 = vmatpush.bf16.msra.mxu1 %v307_v13 }
  0x13   :  { %209 = vmatpush.bf16.msra.mxu2 %v311_v29 }
  0x16   :  { %90 = vmatpush.bf16.msra.mxu0 %v301_v5 }
  0x1a   :  { %91 = vmatpush.bf16.msra.mxu0 %v300_v6 }
  0x1e   :  { %92 = vmatpush.bf16.msra.mxu0 %v299_v7 }
  0x21   :  { %93 = vmatmul.bf16.vlgmr.msra.gmra.mxu0 %v36_v9 }
  0x9e   :  { %v94_v14 = vpop.f32.mrf.mxu0 }
  0x9f   :  { %v98_v15 = vmul.f32 %v94_v14, %v94_v14 }
  0xa1   :  { %v99_v16 = vmul.f32 %v98_v15, %v94_v14 }
  0xa3   :  { %v100_v17 = vmul.f32 0.044715, %v99_v16 }
  0xa5   :  { %v101_v18 = vadd.f32 %v100_v17, %v94_v14 }
  0xa6   :  { %v96_v19 = vpop.f32.mrf.mxu0 }
  0xa7   :  { %v102_v20 = vmul.f32 0.7978846, %v101_v18 }
  0xa9   :  { %316 = vtanh.f32 %v102_v20 }
  0xaf   :  { %v317_v21 = vpop.eup %316 }
  0xb0   :  { %v104_v22 = vadd.f32 1.0, %v317_v21 }
  0xb2   :  { %v105_v23 = vmul.f32 0.5, %v104_v22 }
  0xb4   :  { %v106_v24 = vmul.f32 %v105_v23, %v94_v14 }
  0xb6   :  { %v115_v25 = vpack.c.bf16 %v106_v24, %v106_v24 }
  0xb8   :  { %281 = vmatmul.msk.bf16.vlgmr.msra.gmra.mxu1 %vm140_vm0, %v115_v25 }
 0x135   :  { %v153_v30 = vpop.f32.mrf.mxu1 }
 0x136   :  { %v157_v31 = vmul.f32 %v153_v30, %v153_v30 }
 0x138   :  { %v158_v32 = vmul.f32 %v157_v31, %v153_v30 }
 0x13a   :  { %v159_v33 = vmul.f32 0.044715, %v158_v32 }
 0x13c   :  { %v160_v34 = vadd.f32 %v159_v33, %v153_v30 }
 0x13d   :  { %v155_v35 = vpop.f32.mrf.mxu1 }
 0x13e   :  { %v161_v36 = vmul.f32 0.7978846, %v160_v34 }
 0x140   :  { %318 = vtanh.f32 %v161_v36 }
 0x146   :  { %v319_v37 = vpop.eup %318 }
 0x147   :  { %v163_v38 = vadd.f32 1.0, %v319_v37 }
 0x149   :  { %v164_v39 = vmul.f32 0.5, %v163_v38 }
 0x14b   :  { %v165_v40 = vmul.f32 %v164_v39, %v153_v30 }
 0x14d   :  { %v174_v41 = vpack.c.bf16 %v165_v40, %v165_v40 }
 0x14f   :  { %298 = vmatmul.msk.bf16.vlgmr.msra.gmra.mxu2 %vm140_vm0, %v174_v41 }
 0x1d2   :  { %v211_v42 = vpop.f32.mrf.mxu2 }
 0x1d3   :  { %216 = vst.msk [vmem:[#allocation2] sm:$0xff] %vm215_vm1, %v211_v42 }
 0x1d4   :  { %227 = dma.vmem_to_hbm [thread:$0]  %s223_s21, 128, %s225_s23, [#allocation3]  }
 0x1da   :  { %v213_v43 = vpop.f32.mrf.mxu2 }
 0x1db   :  { %344 = dma.done.wait [#allocation3], 128  }
 0x1dc   :  { %345 = vsyncadd [#allocation3], 4294967168 }
 0x1dd   :  { %232 = vsyncpa [#allocation3], 1 }

// kernel: llama4_encoder_forward.5
= control target key start
LH: loop header
LB: loop body
LE: loop exit
PB: predicated region body
PF: predicated region fallthrough
CT: control target
= control target key end

     0   :  { %s2426_s24 = smov 0   ;;  %s3054_s0 = inlined_call_operand.vmem [shape: f32[2,17,32], index: 0, kind: input, shape index: {}]   ;;  %s3055_s1 = inlined_call_operand.vmem [shape: f32[17,8], index: 1, kind: input, shape index: {}]   ;;  %s3056_s2 = inlined_call_operand.vmem [shape: f32[17,8], index: 2, kind: input, shape index: {}]   ;;  %s3057_s3 = inlined_call_operand.vmem [shape: f32[1,32], index: 3, kind: input, shape index: {}]   ;;  %s3058_s4 = inlined_call_operand.vmem [shape: f32[1,32], index: 4, kind: input, shape index: {}]   ;;  %s3059_s5 = inlined_call_operand.vmem [shape: bf16[32,96], index: 5, kind: input, shape index: {}]   ;;  %s3060_s6 = inlined_call_operand.vmem [shape: f32[1,96], index: 6, kind: input, shape index: {}]   ;;  %s3061_s7 = inlined_call_operand.vmem [shape: bf16[4,8,32], index: 7, kind: input, shape index: {}]   ;;  %s3062_s8 = inlined_call_operand.vmem [shape: f32[1,32], index: 8, kind: input, shape index: {}]   ;;  %s3063_s9 = inlined_call_operand.vmem [shape: f32[1,32], index: 9, kind: input, shape index: {}]   ;;  %s3064_s10 = inlined_call_operand.vmem [shape: f32[1,32], index: 10, kind: input, shape index: {}]   ;;  %s3065_s11 = inlined_call_operand.vmem [shape: bf16[32,128], index: 11, kind: input, shape index: {}]   ;;  %s3066_s12 = inlined_call_operand.vmem [shape: f32[1,128], index: 12, kind: input, shape index: {}]   ;;  %s3067_s13 = inlined_call_operand.vmem [shape: bf16[128,32], index: 13, kind: input, shape index: {}]   ;;  %s3068_s14 = inlined_call_operand.vmem [shape: f32[1,32], index: 14, kind: input, shape index: {}]   ;;  %s3069_s15 = inlined_call_operand.vmem [shape: f32[1,32], index: 15, kind: input, shape index: {}]   ;;  %s3070_s16 = inlined_call_operand.vmem [shape: f32[1,32], index: 16, kind: input, shape index: {}]   ;;  %s3071_s17 = inlined_call_operand.vmem [shape: f32[2,17,32], index: 17, kind: output, shape index: {}]  }
   0x1   :  { %3073 = sst [smem:[#allocation2_spill]] %s3054_s0 }
   0x2   :  { %3074 = sst [smem:[#allocation3_spill]] %s3055_s1 }
   0x3 LB: > { %s2117_s25 = sadd.s32 4294967295, %s2322_s24   ;;  %p2121_p0 = scmp.ge.s32.totalorder %s2322_s24, 1  ;;  %s2322_s24 = sphi %s2426_s24, %s27_s24  }
   0x4   : > { %p487_p1 = scmp.lt.s32.totalorder %s2322_s24, 3 }
   0x6   : > { %p488_p2 = pnand %p2121_p0, %p487_p1 }
   0x7   : > { %p539_p3 = scmp.lt.s32.totalorder (!%p488_p2), %s2117_s25, 1  ;;  %s3075_s27 = sld [smem:[#allocation2_spill]] (!%p488_p2) }
   0x8   : > { %491 = sbr.rel (%p488_p2) target bundleno = 2203 (0x89b), region = 88  ;;  %s3076_s20 = sld [smem:[#allocation3_spill]] (!%p488_p2) }
   0x9   : > { %s2325_s21 = smov (!%p488_p2), 32   ;;  %s2326_s0 = smov (!%p488_p2), 104  }
   0xa   : > { %s2327_s30 = smov (!%p488_p2), 112   ;;  %s2328_s18 = smov (!%p488_p2), 92  }
   0xb   : > { %s2329_s19 = smov (!%p488_p2), 120   ;;  %s2330_s1 = smov (!%p488_p2), 100  }
   0xc   : > { %s2332_s22 = smov (!%p488_p2), 4   ;;  %s2333_s23 = smov (!%p488_p2), 96  }
   0xd   : > { %s3078_s25 = smov (!%p539_p3, %s2117_s25), 1  ;;  %vm555_vm0 = vcmask 261120   ;;  %vm562_vm1 = vcmask 253952   ;;  %v2324_v6 = vmov 32.0   ;;  %v2203_v28 = vld [vmem:[%s3059_s5 + $0x8] sm:$0xff]  ;;  %v2202_v31 = vld [vmem:[%s3059_s5] sm:$0xff] }
   0xe   : > { %s2216_s15 = smul.u32 24, %s3078_s25  ;;  %2245 = vrcp.f32 %v2324_v6  ;;  %676 = vmatpush.bf16.msra.mxu0 %v2203_v28  ;;  %v2474_v48 = vld [vmem:[%s3076_s20 + $0x10] sm:$0x1]  ;;  %v2237_v54 = vld [vmem:[%s3057_s3] ss:$0 sm:$0xff]  ;;  %vm820_vm12 = vcmask 31744  }
   0xf   : > { %v2238_v61 = vld [vmem:[%s3058_s4] ss:$0 sm:$0xff]  ;;  %vm1117_vm13 = vcmask 64512   ;;  %vm1298_vm14 = vcmask 138240   ;;  %vm1305_vm15 = vcmask 131072  }
  0x10   : > { %s2442_s28 = scalar_lea.vmem %s3075_s27, %s2216_s15  ;;  %s548_s26 = scalar_lea.vmem %s3071_s17, %s2216_s15 }
  0x11   : > { %v550_v0 = vld [vmem:[%s2442_s28] sm:$0xff]  ;;  %v552_v1 = vld [vmem:[%s2442_s28 + $0x10] sm:$0x1]  ;;  %v551_v4 = vld [vmem:[%s2442_s28 + $0x8] sm:$0xff] }
  0x12   : > { %v556_v2 = vsel %vm555_vm0, %v550_v0, 0.0  ;;  %v563_v3 = vsel %vm562_vm1, %v552_v1, 0.0  ;;  %v559_v5 = vsel %vm555_vm0, %v551_v4, 0.0  ;;  %677 = vmatpush.bf16.msra.mxu0 %v2202_v31 }
  0x13   : > { %557 = vadd.xlane.f32.xlu0 %v556_v2  ;;  %564 = vadd.xlane.f32.xlu1 %v563_v3 }
  0x14   : > { %v2246_v7 = vpop.eup %2245 }
  0x15   : > { %v567_v8 = vmul.f32 32.0, %v2246_v7  ;;  %vm571_vm2 = vweird.f32 %v2246_v7 }
  0x17   : > { %v568_v9 = vsub.f32 1.0, %v567_v8 }
  0x19   : > { %v569_v10 = vmul.f32 %v2246_v7, %v568_v9 }
  0x1b   : > { %560 = vadd.xlane.f32.xlu0 %v559_v5  ;;  %v570_v11 = vadd.f32 %v2246_v7, %v569_v10  ;;  %v2239_v10 = vld [vmem:[%s3060_s6] ss:$0 sm:$0xff] }
  0x1d   : > { %v2450_v12 = vsel %vm571_vm2, %v2246_v7, %v570_v11  ;;  %vm1447_vm2 = vcmask 1040384  }
  0x86   : > { %v558_v13 = vpop.xlane.xlu0 %557  ;;  %v565_v17 = vpop.xlane.xlu1 %564 }
  0x87   : > { %v573_v14 = vmul.f32 %v2450_v12, %v558_v13  ;;  %v575_v21 = vmul.f32 %v2450_v12, %v565_v17 }
  0x89   : > { %v576_v15 = vsub.f32 %v550_v0, %v573_v14  ;;  %v2456_v23 = vsub.f32 %v552_v1, %v575_v21 }
  0x8b   : > { %v579_v16 = vmul.f32 %v576_v15, %v576_v15  ;;  %v581_v26 = vmul.f32 %v2456_v23, %v2456_v23 }
  0x8d   : > { %v582_v18 = vsel %vm555_vm0, %v579_v16, 0.0  ;;  %v588_v27 = vsel %vm562_vm1, %v581_v26, 0.0 }
  0x8e   : > { %583 = vadd.xlane.f32.xlu1 %v582_v18  ;;  %v561_v19 = vpop.xlane.xlu0 %560 }
  0x8f   : > { %v574_v20 = vmul.f32 %v2450_v12, %v561_v19 }
  0x91   : > { %v577_v22 = vsub.f32 %v551_v4, %v574_v20 }
  0x93   : > { %v580_v24 = vmul.f32 %v577_v22, %v577_v22 }
  0x95   : > { %v585_v25 = vsel %vm555_vm0, %v580_v24, 0.0 }
  0x96   : > { %586 = vadd.xlane.f32.xlu2 %v585_v25 }
  0x9e   : > { %589 = vadd.xlane.f32.xlu2 %v588_v27 }
  0xa7   : > { %984 = vrot.lane.b32.xlu1 %v2474_v48, %s2325_s21 }
 0x101   : > { %v584_v29 = vpop.xlane.xlu1 %583 }
 0x102   : > { %v591_v30 = vmul.f32 %v584_v29, %v2450_v12 }
 0x104   : > { %v594_v32 = vadd.f32 1e-05, %v591_v30 }
 0x106   : > { %2247 = vrsqrt.f32 %v594_v32  ;;  %vm603_vm4 = vweird.f32 %v594_v32 }
 0x109   : > { %v587_v33 = vpop.xlane.xlu2 %586 }
 0x10a   : > { %v592_v34 = vmul.f32 %v587_v33, %v2450_v12 }
 0x10c   : > { %v2248_v35 = vpop.eup %2247  ;;  %v595_v36 = vadd.f32 1e-05, %v592_v34 }
 0x10d   : > { %v598_v37 = vmul.f32 %v2248_v35, %v594_v32  ;;  %vm604_vm3 = vweird.f32 %v2248_v35 }
 0x10e   : > { %2249 = vrsqrt.f32 %v595_v36  ;;  %vm605_vm5 = vmor %vm603_vm4, %vm604_vm3  ;;  %vm613_vm7 = vweird.f32 %v595_v36  ;;  %vm1669_vm3 = vcmask 1043456  }
 0x10f   : > { %v599_v38 = vmul.f32 %v2248_v35, %v598_v37 }
 0x111   : > { %v600_v39 = vmul.f32 0.5, %v599_v38  ;;  %v590_v40 = vpop.xlane.xlu2 %589 }
 0x112   : > { %v593_v41 = vmul.f32 %v590_v40, %v2450_v12 }
 0x113   : > { %v601_v42 = vsub.f32 1.5, %v600_v39 }
 0x114   : > { %v2250_v43 = vpop.eup %2249  ;;  %v596_v44 = vadd.f32 1e-05, %v593_v41 }
 0x115   : > { %v602_v45 = vmul.f32 %v2248_v35, %v601_v42  ;;  %v608_v46 = vmul.f32 %v2250_v43, %v595_v36  ;;  %vm614_vm6 = vweird.f32 %v2250_v43 }
 0x116   : > { %2251 = vrsqrt.f32 %v596_v44  ;;  %vm615_vm8 = vmor %vm613_vm7, %vm614_vm6  ;;  %vm623_vm9 = vweird.f32 %v596_v44 }
 0x117   : > { %v609_v47 = vmul.f32 %v2250_v43, %v608_v46  ;;  %v606_v49 = vsel %vm605_vm5, %v2248_v35, %v602_v45  ;;  %v2602_v46 = vld [vmem:[%s3076_s20] sm:$0xff] }
 0x118   : > { %v627_v53 = vmul.f32 %v606_v49, %v576_v15  ;;  %v2610_v49 = vld [vmem:[%s3056_s2 + $0x8] sm:$0xff] }
 0x119   : > { %v610_v50 = vmul.f32 0.5, %v609_v47  ;;  %v2539_v26 = vpop.permute.xlu1 %984 }
 0x11a   : > { %v633_v60 = vmul.f32 %v2237_v54, %v627_v53 }
 0x11b   : > { %v611_v51 = vsub.f32 1.5, %v610_v50 }
 0x11c   : > { %v2252_v52 = vpop.eup %2251  ;;  %v639_v1 = vadd.f32 %v2238_v61, %v633_v60 }
 0x11d   : > { %v612_v55 = vmul.f32 %v2250_v43, %v611_v51  ;;  %v618_v56 = vmul.f32 %v2252_v52, %v596_v44  ;;  %vm624_vm10 = vweird.f32 %v2252_v52  ;;  %v2596_v44 = vld [vmem:[%s3056_s2] sm:$0xff]  ;;  %v2617_v51 = vld [vmem:[%s3076_s20 + $0x8] sm:$0xff] }
 0x11e   : > { %vm625_vm11 = vmor %vm623_vm9, %vm624_vm10 }
 0x11f   : > { %v616_v57 = vsel %vm615_vm8, %v2250_v43, %v612_v55  ;;  %v619_v58 = vmul.f32 %v2252_v52, %v618_v56  ;;  %v2630_v56 = vld [vmem:[%s3056_s2 + $0x10] sm:$0x1] }
 0x120   : > { %v628_v59 = vmul.f32 %v616_v57, %v577_v22 }
 0x121   : > { %v620_v62 = vmul.f32 0.5, %v619_v58 }
 0x122   : > { %v634_v63 = vmul.f32 %v2237_v54, %v628_v59 }
 0x123   : > { %v621_v0 = vsub.f32 1.5, %v620_v62 }
 0x124   : > { %v640_v2 = vadd.f32 %v2238_v61, %v634_v63 }
 0x125   : > { %v622_v3 = vmul.f32 %v2252_v52, %v621_v0 }
 0x126   : > { %v646_v4 = vpack.c.bf16 %v640_v2, %v639_v1 }
 0x127   : > { %v626_v5 = vsel %vm625_vm11, %v2252_v52, %v622_v3 }
 0x128   : > { %2132 = vmatmul.msk.bf16.vlgmr.msra.gmra.mxu0 %vm555_vm0, %v646_v4  ;;  %v629_v6 = vmul.f32 %v626_v5, %v2456_v23 }
 0x12a   : > { %v635_v7 = vmul.f32 %v2237_v54, %v629_v6 }
 0x12c   : > { %v641_v8 = vadd.f32 %v2238_v61, %v635_v7 }
 0x12e   : > { %v647_v9 = vpack.c.bf16 %v641_v8, %v641_v8 }
 0x138   : > { %2133 = vmatmul.msk.bf16.gmra.mxu0 %vm555_vm0, %v647_v9 }
 0x1a5   : > { %v679_v11 = vpop.f32.mrf.mxu0 }
 0x1a6   : > { %v2490_v13 = vadd.f32 %v2239_v10, %v679_v11 }
 0x1a8   : > { %709 = vrot.lane.b32.xlu0 %v2490_v13, %s2326_s0  ;;  %700 = vrot.lane.b32.xlu2 %v2490_v13, %s2327_s30  ;;  %v724_v14 = vsub.f32 0.0, %v2490_v13 }
 0x1aa   : > { %893 = vrot.lane.b32.xlu1 %v724_v14, %s2328_s18 }
 0x1ad   : > { %v681_v15 = vpop.f32.mrf.mxu0 }
 0x1ae   : > { %v2498_v16 = vadd.f32 %v2239_v10, %v681_v15 }
 0x1b0   : > { %702 = vrot.lane.b32.xlu0 %v2498_v16, %s2327_s30  ;;  %691 = vrot.lane.b32.xlu2 %v2490_v13, %s2329_s19  ;;  %v725_v18 = vsub.f32 0.0, %v2498_v16 }
 0x1b2   : > { %693 = vrot.lane.b32.xlu1 %v2498_v16, %s2329_s19 }
 0x1b5   : > { %v684_v17 = vpop.f32.mrf.mxu0 }
 0x1b6   : > { %v2511_v20 = vadd.f32 %v2239_v10, %v684_v17 }
 0x1b8   : > { %895 = vrot.lane.b32.xlu0 %v725_v18, %s2328_s18  ;;  %929 = vrot.lane.b32.xlu2 %v2490_v13, %s2330_s1  ;;  %v726_v21 = vsub.f32 0.0, %v2511_v20 }
 0x1ba   : > { %931 = vrot.lane.b32.xlu1 %v2498_v16, %s2330_s1 }
 0x1bd   : > { %v686_v19 = vpop.f32.mrf.mxu0 }
 0x1c0   : > { %711 = vrot.lane.b32.xlu2 %v2498_v16, %s2326_s0  ;;  %704 = vrot.lane.b32.xlu0 %v2511_v20, %s2327_s30 }
 0x1c2   : > { %695 = vrot.lane.b32.xlu1 %v2511_v20, %s2329_s19 }
 0x1c8   : > { %713 = vrot.lane.b32.xlu0 %v2511_v20, %s2326_s0  ;;  %897 = vrot.lane.b32.xlu2 %v726_v21, %s2328_s18 }
 0x1ca   : > { %933 = vrot.lane.b32.xlu1 %v2511_v20, %s2330_s1 }
 0x202   : > { %v2523_v22 = vpop.permute.xlu2 %700 }
 0x203   : > { %941 = vrot.lane.b32.xlu0 %v2523_v22, %s2330_s1  ;;  %v730_v25 = vsub.f32 0.0, %v2523_v22 }
 0x20a   : > { %v2527_v23 = vpop.permute.xlu2 %691 }
 0x20b   : > { %935 = vrot.lane.b32.xlu2 %v2527_v23, %s2330_s1  ;;  %v727_v24 = vsub.f32 0.0, %v2527_v23 }
 0x20d   : > { %899 = vrot.lane.b32.xlu1 %v727_v24, %s2328_s18 }
 0x212   : > { %v930_v36 = vpop.permute.xlu2 %929 }
 0x213   : > { %905 = vrot.lane.b32.xlu2 %v730_v25, %s2328_s18 }
 0x21a   : > { %v2541_v27 = vpop.permute.xlu0 %709  ;;  %v2575_v40 = vpop.permute.xlu2 %711 }
 0x21b   : > { %v733_v28 = vsub.f32 0.0, %v2541_v27  ;;  %v734_v43 = vsub.f32 0.0, %v2575_v40 }
 0x21c   : > { %v894_v29 = vpop.permute.xlu1 %893 }
 0x21d   : > { %911 = vrot.lane.b32.xlu2 %v733_v28, %s2328_s18  ;;  %v965_v45 = vsel %vm820_vm12, %v894_v29, %v930_v36 }
 0x21e   : > { %v1001_v47 = vmul.f32 %v965_v45, %v2596_v44 }
 0x222   : > { %v2547_v30 = vpop.permute.xlu0 %702  ;;  %v898_v55 = vpop.permute.xlu2 %897 }
 0x223   : > { %v731_v34 = vsub.f32 0.0, %v2547_v30 }
 0x224   : > { %v2549_v31 = vpop.permute.xlu1 %693 }
 0x225   : > { %937 = vrot.lane.b32.xlu1 %v2549_v31, %s2330_s1  ;;  %943 = vrot.lane.b32.xlu2 %v2547_v30, %s2330_s1  ;;  %v728_v32 = vsub.f32 0.0, %v2549_v31 }
 0x227   : > { %901 = vrot.lane.b32.xlu0 %v728_v32, %s2328_s18 }
 0x22a   : > { %v896_v33 = vpop.permute.xlu0 %895 }
 0x22c   : > { %v932_v35 = vpop.permute.xlu1 %931 }
 0x22d   : > { %907 = vrot.lane.b32.xlu1 %v731_v34, %s2328_s18  ;;  %v966_v50 = vsel %vm820_vm12, %v896_v33, %v932_v35 }
 0x22e   : > { %v1002_v52 = vmul.f32 %v966_v50, %v2610_v49 }
 0x232   : > { %v2563_v37 = vpop.permute.xlu0 %704 }
 0x233   : > { %945 = vrot.lane.b32.xlu2 %v2563_v37, %s2330_s1  ;;  %v732_v42 = vsub.f32 0.0, %v2563_v37 }
 0x234   : > { %v2567_v38 = vpop.permute.xlu1 %695 }
 0x235   : > { %939 = vrot.lane.b32.xlu0 %v2567_v38, %s2330_s1  ;;  %v729_v39 = vsub.f32 0.0, %v2567_v38 }
 0x237   : > { %903 = vrot.lane.b32.xlu1 %v729_v39, %s2328_s18 }
 0x23a   : > { %v2577_v41 = vpop.permute.xlu0 %713 }
 0x23b   : > { %951 = vrot.lane.b32.xlu2 %v2577_v41, %s2330_s1  ;;  %v735_v53 = vsub.f32 0.0, %v2577_v41 }
 0x23c   : > { %v934_v54 = vpop.permute.xlu1 %933 }
 0x23d   : > { %909 = vrot.lane.b32.xlu0 %v732_v42, %s2328_s18  ;;  %v967_v57 = vsel %vm820_vm12, %v898_v55, %v934_v54 }
 0x23e   : > { %v1003_v58 = vmul.f32 %v967_v57, %v2630_v56 }
 0x23f   : > { %913 = vrot.lane.b32.xlu1 %v734_v43, %s2328_s18 }
 0x243   : > { %949 = vrot.lane.b32.xlu2 %v2575_v40, %s2330_s1 }
 0x245   : > { %947 = vrot.lane.b32.xlu0 %v2541_v27, %s2330_s1 }
 0x247   : > { %980 = vrot.lane.b32.xlu1 %v2602_v46, %s2325_s21 }
 0x24b   : > { %1025 = vrot.lane.b32.xlu2 %v1001_v47, %s2325_s21 }
 0x24d   : > { %982 = vrot.lane.b32.xlu0 %v2617_v51, %s2325_s21 }
 0x24f   : > { %1027 = vrot.lane.b32.xlu1 %v1002_v52, %s2325_s21 }
 0x255   : > { %915 = vrot.lane.b32.xlu0 %v735_v53, %s2328_s18  ;;  %s2331_s18 = smov 124  }
 0x25d   : > { %1029 = vrot.lane.b32.xlu0 %v1003_v58, %s2325_s21 }
 0x265   : > { %v936_v59 = vpop.permute.xlu2 %935 }
 0x26d   : > { %v906_v60 = vpop.permute.xlu2 %905 }
 0x275   : > { %v942_v61 = vpop.permute.xlu0 %941 }
 0x276   : > { %v971_v62 = vsel %vm820_vm12, %v906_v60, %v942_v61 }
 0x277   : > { %v1007_v63 = vmul.f32 %v971_v62, %v2596_v44  ;;  %v912_v3 = vpop.permute.xlu2 %911 }
 0x279   : > { %1037 = vrot.lane.b32.xlu1 %v1007_v63, %s2325_s21 }
 0x27f   : > { %v900_v0 = vpop.permute.xlu1 %899  ;;  %v944_v4 = vpop.permute.xlu2 %943 }
 0x280   : > { %v968_v1 = vsel %vm820_vm12, %v900_v0, %v936_v59 }
 0x281   : > { %v1004_v2 = vmul.f32 %v968_v1, %v2596_v44 }
 0x283   : > { %1031 = vrot.lane.b32.xlu2 %v1004_v2, %s2325_s21 }
 0x28d   : > { %v946_v9 = vpop.permute.xlu2 %945 }
 0x295   : > { %v952_v17 = vpop.permute.xlu2 %951 }
 0x297   : > { %v938_v5 = vpop.permute.xlu1 %937 }
 0x299   : > { %v902_v6 = vpop.permute.xlu0 %901 }
 0x29a   : > { %v969_v7 = vsel %vm820_vm12, %v902_v6, %v938_v5 }
 0x29b   : > { %v1005_v8 = vmul.f32 %v969_v7, %v2610_v49 }
 0x29d   : > { %1033 = vrot.lane.b32.xlu1 %v1005_v8, %s2325_s21  ;;  %v950_v36 = vpop.permute.xlu2 %949 }
 0x29f   : > { %v908_v10 = vpop.permute.xlu1 %907 }
 0x2a0   : > { %v972_v11 = vsel %vm820_vm12, %v908_v10, %v944_v4 }
 0x2a1   : > { %v1008_v15 = vmul.f32 %v972_v11, %v2610_v49 }
 0x2a3   : > { %1039 = vrot.lane.b32.xlu0 %v1008_v15, %s2325_s21 }
 0x2a5   : > { %v1026_v1 = vpop.permute.xlu2 %1025 }
 0x2a7   : > { %v940_v19 = vpop.permute.xlu0 %939 }
 0x2a9   : > { %v904_v29 = vpop.permute.xlu1 %903 }
 0x2aa   : > { %v970_v59 = vsel %vm820_vm12, %v904_v29, %v940_v19 }
 0x2ab   : > { %v1006_v61 = vmul.f32 %v970_v59, %v2630_v56 }
 0x2af   : > { %v910_v33 = vpop.permute.xlu0 %909 }
 0x2b0   : > { %v973_v35 = vsel %vm820_vm12, %v910_v33, %v946_v9 }
 0x2b1   : > { %v1009_v45 = vmul.f32 %v973_v35, %v2630_v56  ;;  %v914_v47 = vpop.permute.xlu1 %913 }
 0x2b2   : > { %v975_v50 = vsel %vm820_vm12, %v914_v47, %v950_v36 }
 0x2b3   : > { %v1011_v52 = vmul.f32 %v975_v50, %v2610_v49  ;;  %1041 = vrot.lane.b32.xlu0 %v1009_v45, %s2325_s21 }
 0x2b5   : > { %1045 = vrot.lane.b32.xlu1 %v1011_v52, %s2325_s21 }
 0x2b7   : > { %v948_v54 = vpop.permute.xlu0 %947 }
 0x2b8   : > { %v974_v55 = vsel %vm820_vm12, %v912_v3, %v948_v54 }
 0x2b9   : > { %v1010_v57 = vmul.f32 %v974_v55, %v2596_v44  ;;  %v2655_v58 = vpop.permute.xlu1 %980 }
 0x2ba   : > { %v989_v0 = vmul.f32 %v2655_v58, %v2490_v13  ;;  %v992_v35 = vmul.f32 %v2655_v58, %v2527_v23  ;;  %v995_v50 = vmul.f32 %v2655_v58, %v2523_v22 }
 0x2bb   : > { %1043 = vrot.lane.b32.xlu2 %v1010_v57, %s2325_s21  ;;  %762 = vrot.lane.b32.xlu0 %v731_v34, %s2331_s18 }
 0x2bc   : > { %v1061_v2 = vadd.f32 %v1026_v1, %v989_v0 }
 0x2bd   : > { %788 = vrot.lane.b32.xlu1 %v2511_v20, %s2332_s22 }
 0x2be   : > { %v1073_v7 = vpack.c.bf16 %v1061_v2, %v1061_v2 }
 0x2bf   : > { %v2664_v60 = vpop.permute.xlu0 %982 }
 0x2c0   : > { %v990_v62 = vmul.f32 %v2664_v60, %v2498_v16  ;;  %v1108_v9 = vunpack.c.l.b16 %v1073_v7  ;;  %v993_v45 = vmul.f32 %v2664_v60, %v2549_v31  ;;  %v996_v59 = vmul.f32 %v2664_v60, %v2547_v30 }
 0x2c1   : > { %v1028_v63 = vpop.permute.xlu1 %1027 }
 0x2c2   : > { %v1062_v34 = vadd.f32 %v1028_v63, %v990_v62 }
 0x2c3   : > { %1035 = vrot.lane.b32.xlu2 %v1006_v61, %s2325_s21  ;;  %790 = vrot.lane.b32.xlu0 %v2527_v23, %s2332_s22 }
 0x2c4   : > { %v1074_v5 = vpack.c.bf16 %v1062_v34, %v1062_v34 }
 0x2c5   : > { %760 = vrot.lane.b32.xlu1 %v730_v25, %s2331_s18  ;;  %v991_v25 = vmul.f32 %v2539_v26, %v2511_v20 }
 0x2c6   : > { %v1109_v8 = vunpack.c.l.b16 %v1074_v5  ;;  %v994_v5 = vmul.f32 %v2539_v26, %v2567_v38 }
 0x2c7   : > { %v916_v3 = vpop.permute.xlu0 %915 }
 0x2c8   : > { %v976_v4 = vsel %vm820_vm12, %v916_v3, %v952_v17  ;;  %v1111_v15 = vpack.c.b16 %v1109_v8, %v1108_v9 }
 0x2c9   : > { %v1012_v6 = vmul.f32 %v976_v4, %v2630_v56 }
 0x2cb   : > { %752 = vrot.lane.b32.xlu2 %v726_v21, %s2331_s18  ;;  %1047 = vrot.lane.b32.xlu0 %v1012_v6, %s2325_s21  ;;  %s2334_s21 = smov 64  }
 0x2cd   : > { %798 = vrot.lane.b32.xlu1 %v2547_v30, %s2332_s22 }
 0x2cf   : > { %v1030_v10 = vpop.permute.xlu0 %1029 }
 0x2d0   : > { %v1063_v11 = vadd.f32 %v1030_v10, %v991_v25  ;;  %v998_v25 = vmul.f32 %v2655_v58, %v2541_v27 }
 0x2d2   : > { %v1075_v17 = vpack.c.bf16 %v1063_v11, %v1063_v11 }
 0x2d3   : > { %796 = vrot.lane.b32.xlu2 %v2523_v22, %s2332_s22  ;;  %1113 = vrot.lane.b32.xlu0 %v1111_v15, %s2333_s23  ;;  %v997_v15 = vmul.f32 %v2539_v26, %v2563_v37 }
 0x2d4   : > { %v1110_v21 = vunpack.c.l.b16 %v1075_v17 }
 0x2d5   : > { %756 = vrot.lane.b32.xlu1 %v728_v32, %s2331_s18 }
 0x2d6   : > { %v1112_v19 = vpack.c.b16 %v1110_v21, %v1110_v21 }
 0x2db   : > { %754 = vrot.lane.b32.xlu2 %v727_v24, %s2331_s18  ;;  %1115 = vrot.lane.b32.xlu0 %v1112_v19, %s2333_s23  ;;  %v999_v19 = vmul.f32 %v2664_v60, %v2575_v40  ;;  %v1000_v60 = vmul.f32 %v2539_v26, %v2577_v41 }
 0x2dd   : > { %v1032_v33 = vpop.permute.xlu2 %1031 }
 0x2de   : > { %v1064_v36 = vadd.f32 %v1032_v33, %v992_v35 }
 0x2e0   : > { %v1076_v47 = vpack.c.bf16 %v1064_v36, %v1064_v36 }
 0x2e2   : > { %v1159_v55 = vunpack.c.l.b16 %v1076_v47 }
 0x2e3   : > { %792 = vrot.lane.b32.xlu2 %v2549_v31, %s2332_s22 }
 0x2eb   : > { %v1038_v29 = vpop.permute.xlu1 %1037 }
 0x2ec   : > { %v1067_v52 = vadd.f32 %v1038_v29, %v995_v50 }
 0x2ee   : > { %v1079_v63 = vpack.c.bf16 %v1067_v52, %v1067_v52 }
 0x2f0   : > { %v1209_v2 = vunpack.c.l.b16 %v1079_v63 }
 0x30f   : > { %v1034_v32 = vpop.permute.xlu1 %1033 }
 0x310   : > { %v1065_v24 = vadd.f32 %v1034_v32, %v993_v45 }
 0x312   : > { %v1077_v54 = vpack.c.bf16 %v1065_v24, %v1065_v24 }
 0x314   : > { %v1160_v57 = vunpack.c.l.b16 %v1077_v54 }
 0x315   : > { %v1040_v61 = vpop.permute.xlu0 %1039  ;;  %v1044_v62 = vpop.permute.xlu2 %1043 }
 0x316   : > { %v1162_v0 = vpack.c.b16 %v1160_v57, %v1159_v55  ;;  %v1068_v34 = vadd.f32 %v1040_v61, %v996_v59  ;;  %v1070_v10 = vadd.f32 %v1044_v62, %v998_v25 }
 0x318   : > { %v1080_v1 = vpack.c.bf16 %v1068_v34, %v1068_v34  ;;  %1164 = vrot.lane.b32.xlu0 %v1162_v0, %s2333_s23  ;;  %v1082_v33 = vpack.c.bf16 %v1070_v10, %v1070_v10 }
 0x31a   : > { %v1210_v3 = vunpack.c.l.b16 %v1080_v1  ;;  %v1259_v32 = vunpack.c.l.b16 %v1082_v33 }
 0x31c   : > { %v1212_v4 = vpack.c.b16 %v1210_v3, %v1209_v2 }
 0x31d   : > { %v1036_v6 = vpop.permute.xlu2 %1035 }
 0x31e   : > { %v1066_v7 = vadd.f32 %v1036_v6, %v994_v5  ;;  %1214 = vrot.lane.b32.xlu1 %v1212_v4, %s2333_s23 }
 0x320   : > { %v1078_v8 = vpack.c.bf16 %v1066_v7, %v1066_v7 }
 0x322   : > { %v1161_v9 = vunpack.c.l.b16 %v1078_v8 }
 0x324   : > { %v1163_v11 = vpack.c.b16 %v1161_v9, %v1161_v9 }
 0x325   : > { %v1042_v17 = vpop.permute.xlu0 %1041 }
 0x326   : > { %v1069_v21 = vadd.f32 %v1042_v17, %v997_v15  ;;  %750 = vrot.lane.b32.xlu1 %v725_v18, %s2331_s18  ;;  %1166 = vrot.lane.b32.xlu0 %v1163_v11, %s2333_s23  ;;  %v840_v15 = vmul.f32 %v2617_v51, %v2547_v30  ;;  %v839_v17 = vmul.f32 %v2602_v46, %v2523_v22 }
 0x327   : > { %v1046_v29 = vpop.permute.xlu1 %1045 }
 0x328   : > { %v1081_v58 = vpack.c.bf16 %v1069_v21, %v1069_v21  ;;  %v1071_v35 = vadd.f32 %v1046_v29, %v999_v19 }
 0x32a   : > { %v1211_v36 = vunpack.c.l.b16 %v1081_v58  ;;  %v1083_v45 = vpack.c.bf16 %v1071_v35, %v1071_v35 }
 0x32c   : > { %v1213_v47 = vpack.c.b16 %v1211_v36, %v1211_v36  ;;  %v1260_v50 = vunpack.c.l.b16 %v1083_v45 }
 0x32d   : > { %v763_v24 = vpop.permute.xlu0 %762 }
 0x32e   : > { %v1262_v52 = vpack.c.b16 %v1260_v50, %v1259_v32  ;;  %1216 = vrot.lane.b32.xlu2 %v1213_v47, %s2333_s23  ;;  %784 = vrot.lane.b32.xlu0 %v2490_v13, %s2332_s22 }
 0x32f   : > { %v789_v61 = vpop.permute.xlu1 %788 }
 0x335   : > { %v2724_v18 = vpop.permute.xlu0 %790 }
 0x336   : > { %748 = vrot.lane.b32.xlu2 %v724_v14, %s2331_s18  ;;  %766 = vrot.lane.b32.xlu0 %v733_v28, %s2331_s18  ;;  %v753_v14 = vpop.permute.xlu2 %752  ;;  %v835_v28 = vmul.f32 %v2474_v48, %v2511_v20 }
 0x337   : > { %v823_v0 = vsel %vm820_vm12, %v753_v14, %v789_v61  ;;  %v836_v14 = vmul.f32 %v2602_v46, %v2527_v23 }
 0x338   : > { %v847_v26 = vmul.f32 %v823_v0, %v2630_v56 }
 0x33a   : > { %v859_v34 = vadd.f32 %v847_v26, %v835_v28 }
 0x33c   : > { %v871_v2 = vmul.f32 0.35355338, %v859_v34 }
 0x33d   : > { %v1048_v54 = vpop.permute.xlu0 %1047 }
 0x33e   : > { %v1072_v55 = vadd.f32 %v1048_v54, %v1000_v60  ;;  %786 = vrot.lane.b32.xlu2 %v2498_v16, %s2332_s22  ;;  %804 = vrot.lane.b32.xlu0 %v2575_v40, %s2332_s22  ;;  %v883_v3 = vpack.c.bf16 %v871_v2, %v871_v2 }
 0x340   : > { %v1084_v57 = vpack.c.bf16 %v1072_v55, %v1072_v55  ;;  %v1102_v5 = vunpack.c.l.b16 %v883_v3 }
 0x342   : > { %v1261_v59 = vunpack.c.l.b16 %v1084_v57  ;;  %v1104_v6 = vpack.c.b16 %v1102_v5, %v1102_v5 }
 0x344   : > { %v1263_v62 = vpack.c.b16 %v1261_v59, %v1261_v59 }
 0x345   : > { %v1114_v63 = vpop.permute.xlu0 %1113 }
 0x346   : > { %768 = vrot.lane.b32.xlu2 %v734_v43, %s2331_s18  ;;  %1266 = vrot.lane.b32.xlu1 %v1263_v62, %s2333_s23  ;;  %v1125_v4 = vsel %vm1117_vm13, %v1114_v63, 0  ;;  %v837_v62 = vmul.f32 %v2617_v51, %v2549_v31 }
 0x347   : > { %800 = vrot.lane.b32.xlu0 %v2563_v37, %s2332_s22 }
 0x34d   : > { %v1116_v1 = vpop.permute.xlu0 %1115 }
 0x34e   : > { %802 = vrot.lane.b32.xlu1 %v2541_v27, %s2332_s22  ;;  %1264 = vrot.lane.b32.xlu2 %v1262_v52, %s2333_s23  ;;  %v1128_v43 = vsel %vm1117_vm13, %v1116_v1, 0 }
 0x34f   : > { %770 = vrot.lane.b32.xlu0 %v735_v53, %s2331_s18  ;;  %1136 = vmatpush.bf16.xpose.msra.mxu1 %v1128_v43  ;;  %v797_v53 = vpop.permute.xlu2 %796 }
 0x350   : > { %2214 = vmatpush.bf16.xpose.msra.mxu3 %v1128_v43 }
 0x356   : > { %764 = vrot.lane.b32.xlu1 %v732_v42, %s2331_s18  ;;  %758 = vrot.lane.b32.xlu2 %v729_v39, %s2331_s18  ;;  %v761_v42 = vpop.permute.xlu1 %760 }
 0x357   : > { %1137 = vmatpush.bf16.xpose.msra.mxu1 %v1125_v4  ;;  %v755_v7 = vpop.permute.xlu2 %754  ;;  %v827_v9 = vsel %vm820_vm12, %v761_v42, %v797_v53 }
 0x358   : > { %2215 = vmatpush.bf16.xpose.msra.mxu3 %v1125_v4  ;;  %v851_v11 = vmul.f32 %v827_v9, %v2596_v44  ;;  %v824_v54 = vsel %vm820_vm12, %v755_v7, %v2724_v18  ;;  %v834_v4 = vmul.f32 %v2617_v51, %v2498_v16  ;;  %v833_v9 = vmul.f32 %v2602_v46, %v2490_v13 }
 0x359   : > { %v848_v59 = vmul.f32 %v824_v54, %v2596_v44 }
 0x35a   : > { %v863_v33 = vadd.f32 %v851_v11, %v839_v17 }
 0x35b   : > { %v860_v34 = vadd.f32 %v848_v59, %v836_v14  ;;  %v843_v59 = vmul.f32 %v2617_v51, %v2575_v40 }
 0x35c   : > { %v875_v36 = vmul.f32 0.35355338, %v863_v33 }
 0x35d   : > { %v872_v5 = vmul.f32 0.35355338, %v860_v34 }
 0x35e   : > { %794 = vrot.lane.b32.xlu1 %v2567_v38, %s2332_s22  ;;  %806 = vrot.lane.b32.xlu2 %v2577_v41, %s2332_s22  ;;  %v799_v8 = vpop.permute.xlu1 %798  ;;  %v887_v52 = vpack.c.bf16 %v875_v36, %v875_v36 }
 0x35f   : > { %2135 = vmatmul.msk.bf16.vlgmr.msra.gmra.mxu3 %vm1117_vm13, %v1104_v6  ;;  %v793_v25 = vpop.permute.xlu2 %792  ;;  %v828_v39 = vsel %vm820_vm12, %v763_v24, %v799_v8  ;;  %v884_v7 = vpack.c.bf16 %v872_v5, %v872_v5  ;;  %v841_v5 = vmul.f32 %v2474_v48, %v2563_v37 }
 0x360   : > { %v852_v10 = vmul.f32 %v828_v39, %v2610_v49  ;;  %v1201_v61 = vunpack.c.l.b16 %v887_v52 }
 0x361   : > { %v1151_v17 = vunpack.c.l.b16 %v884_v7 }
 0x362   : > { %v864_v21 = vadd.f32 %v852_v10, %v840_v15 }
 0x364   : > { %v876_v35 = vmul.f32 0.35355338, %v864_v21 }
 0x366   : > { %v757_v19 = vpop.permute.xlu1 %756  ;;  %v888_v45 = vpack.c.bf16 %v876_v35, %v876_v35 }
 0x367   : > { %v825_v47 = vsel %vm820_vm12, %v757_v19, %v793_v25 }
 0x368   : > { %v1202_v55 = vunpack.c.l.b16 %v888_v45  ;;  %v849_v57 = vmul.f32 %v825_v47, %v2610_v49 }
 0x36a   : > { %v861_v63 = vadd.f32 %v849_v57, %v837_v62  ;;  %v1204_v0 = vpack.c.b16 %v1202_v55, %v1201_v61 }
 0x36c   : > { %v873_v2 = vmul.f32 0.35355338, %v861_v63 }
 0x36e   : > { %v885_v53 = vpack.c.bf16 %v873_v2, %v873_v2 }
 0x370   : > { %v1152_v11 = vunpack.c.l.b16 %v885_v53 }
 0x372   : > { %v1154_v33 = vpack.c.b16 %v1152_v11, %v1151_v17  ;;  %v838_v17 = vmul.f32 %v2474_v48, %v2567_v38 }
 0x388   : > { %v1217_v29 = vpop.permute.xlu2 %1216 }
 0x389   : > { %v1228_v58 = vsel %vm1117_vm13, %v1217_v29, 0 }
 0x38a   : > { %1236 = vmatpush.bf16.xpose.msrb.mxu3 %v1228_v58  ;;  %v1165_v32 = vpop.permute.xlu0 %1164 }
 0x38b   : > { %v1175_v25 = vsel %vm1117_vm13, %v1165_v32, 0 }
 0x390   : > { %v1215_v50 = vpop.permute.xlu1 %1214  ;;  %v749_v24 = vpop.permute.xlu2 %748 }
 0x391   : > { %v1225_v60 = vsel %vm1117_vm13, %v1215_v50, 0 }
 0x392   : > { %1237 = vmatpush.bf16.xpose.msrb.mxu3 %v1225_v60 }
 0x398   : > { %v751_v26 = vpop.permute.xlu1 %750  ;;  %v1167_v28 = vpop.permute.xlu0 %1166 }
 0x399   : > { %v787_v1 = vpop.permute.xlu2 %786  ;;  %2138 = vmatmul.msk.bf16.vlgmr.msrb.gmra.mxu3 %vm1117_vm13, %v1204_v0  ;;  %v1178_v18 = vsel %vm1117_vm13, %v1167_v28, 0 }
 0x39a   : > { %v822_v43 = vsel %vm820_vm12, %v751_v26, %v787_v1  ;;  %1186 = vmatpush.bf16.xpose.msra.mxu2 %v1178_v18  ;;  %v842_v26 = vmul.f32 %v2602_v46, %v2541_v27 }
 0x39b   : > { %v846_v3 = vmul.f32 %v822_v43, %v2610_v49 }
 0x39d   : > { %v858_v6 = vadd.f32 %v846_v3, %v834_v4 }
 0x39f   : > { %v870_v39 = vmul.f32 0.35355338, %v858_v6 }
 0x3a0   : > { %v785_v42 = vpop.permute.xlu0 %784 }
 0x3a1   : > { %v821_v8 = vsel %vm820_vm12, %v749_v24, %v785_v42  ;;  %v882_v21 = vpack.c.bf16 %v870_v39, %v870_v39  ;;  %v769_v29 = vpop.permute.xlu2 %768 }
 0x3a2   : > { %v845_v10 = vmul.f32 %v821_v8, %v2596_v44  ;;  %1187 = vmatpush.bf16.xpose.msra.mxu2 %v1175_v25 }
 0x3a3   : > { %v1101_v45 = vunpack.c.l.b16 %v882_v21 }
 0x3a4   : > { %v857_v15 = vadd.f32 %v845_v10, %v833_v9 }
 0x3a6   : > { %v869_v19 = vmul.f32 0.35355338, %v857_v15 }
 0x3a8   : > { %v881_v58 = vpack.c.bf16 %v869_v19, %v869_v19  ;;  %v767_v35 = vpop.permute.xlu0 %766 }
 0x3a9   : > { %2136 = vmatmul.msk.bf16.vlgmr.msra.gmra.mxu2 %vm1117_vm13, %v1154_v33  ;;  %v1265_v47 = vpop.permute.xlu2 %1264 }
 0x3aa   : > { %v1100_v36 = vunpack.c.l.b16 %v881_v58  ;;  %v1275_v63 = vsel %vm1117_vm13, %v1265_v47, 0 }
 0x3ac   : > { %v1103_v32 = vpack.c.b16 %v1101_v45, %v1100_v36 }
 0x3ae   : > { %2134 = vmatmul.msk.bf16.vlgmr.msra.gmra.mxu1 %vm1117_vm13, %v1103_v32 }
 0x3b0   : > { %v805_v50 = vpop.permute.xlu0 %804 }
 0x3b1   : > { %v831_v24 = vsel %vm820_vm12, %v769_v29, %v805_v50  ;;  %v759_v57 = vpop.permute.xlu2 %758 }
 0x3b2   : > { %v855_v55 = vmul.f32 %v831_v24, %v2610_v49 }
 0x3b4   : > { %v867_v61 = vadd.f32 %v855_v55, %v843_v59 }
 0x3b6   : > { %v879_v0 = vmul.f32 0.35355338, %v867_v61 }
 0x3b8   : > { %v1267_v52 = vpop.permute.xlu1 %1266  ;;  %v891_v43 = vpack.c.bf16 %v879_v0, %v879_v0 }
 0x3b9   : > { %v801_v60 = vpop.permute.xlu0 %800  ;;  %v1278_v54 = vsel %vm1117_vm13, %v1267_v52, 0  ;;  %v807_v49 = vpop.permute.xlu2 %806 }
 0x3ba   : > { %1286 = vmatpush.bf16.xpose.msrb.mxu0 %v1278_v54  ;;  %v1252_v46 = vunpack.c.l.b16 %v891_v43 }
 0x3c0   : > { %v803_v62 = vpop.permute.xlu1 %802 }
 0x3c1   : > { %v830_v14 = vsel %vm820_vm12, %v767_v35, %v803_v62  ;;  %v771_v34 = vpop.permute.xlu0 %770 }
 0x3c2   : > { %v854_v28 = vmul.f32 %v830_v14, %v2596_v44  ;;  %1287 = vmatpush.bf16.xpose.msrb.mxu0 %v1275_v63  ;;  %v832_v18 = vsel %vm820_vm12, %v771_v34, %v807_v49  ;;  %v844_v44 = vmul.f32 %v2474_v48, %v2577_v41  ;;  %v1090_v14 = vpack.c.bf16 %v2567_v38, %v2567_v38 }
 0x3c3   : > { %v856_v3 = vmul.f32 %v832_v18, %v2630_v56  ;;  %v1092_v34 = vpack.c.bf16 %v2547_v30, %v2547_v30  ;;  %v1093_v30 = vpack.c.bf16 %v2563_v37, %v2563_v37 }
 0x3c4   : > { %v866_v1 = vadd.f32 %v854_v28, %v842_v26  ;;  %v1484_v0 = vunpack.c.l.b16 %v1090_v14  ;;  %v1087_v26 = vpack.c.bf16 %v2511_v20, %v2511_v20  ;;  %v1086_v20 = vpack.c.bf16 %v2498_v16, %v2498_v16 }
 0x3c5   : > { %v868_v7 = vadd.f32 %v856_v3, %v844_v44  ;;  %v1531_v38 = vunpack.c.l.b16 %v1092_v34  ;;  %v1085_v3 = vpack.c.bf16 %v2490_v13, %v2490_v13  ;;  %v1088_v16 = vpack.c.bf16 %v2527_v23, %v2527_v23 }
 0x3c6   : > { %v878_v51 = vmul.f32 0.35355338, %v866_v1  ;;  %v1486_v28 = vpack.c.b16 %v1484_v0, %v1484_v0  ;;  %v1433_v49 = vunpack.c.l.b16 %v1087_v26  ;;  %v1091_v1 = vpack.c.bf16 %v2523_v22, %v2523_v22 }
 0x3c7   : > { %v880_v9 = vmul.f32 0.35355338, %v868_v7  ;;  %v1432_v22 = vunpack.c.l.b16 %v1086_v20  ;;  %v1482_v7 = vunpack.c.l.b16 %v1088_v16 }
 0x3c8   : > { %v890_v2 = vpack.c.bf16 %v878_v51, %v878_v51  ;;  %v765_v4 = vpop.permute.xlu1 %764  ;;  %v1435_v18 = vpack.c.b16 %v1433_v49, %v1433_v49  ;;  %v1530_v43 = vunpack.c.l.b16 %v1091_v1 }
 0x3c9   : > { %v829_v6 = vsel %vm820_vm12, %v765_v4, %v801_v60  ;;  %v892_v58 = vpack.c.bf16 %v880_v9, %v880_v9  ;;  %v1532_v4 = vunpack.c.l.b16 %v1093_v30 }
 0x3ca   : > { %v1251_v53 = vunpack.c.l.b16 %v890_v2  ;;  %v853_v42 = vmul.f32 %v829_v6, %v2630_v56  ;;  %v1533_v2 = vpack.c.b16 %v1531_v38, %v1530_v43 }
 0x3cb   : > { %v1253_v45 = vunpack.c.l.b16 %v892_v58  ;;  %v1534_v44 = vpack.c.b16 %v1532_v4, %v1532_v4  ;;  %v1094_v58 = vpack.c.bf16 %v2541_v27, %v2541_v27 }
 0x3cc   : > { %v865_v8 = vadd.f32 %v853_v42, %v841_v5  ;;  %v1254_v25 = vpack.c.b16 %v1252_v46, %v1251_v53  ;;  %v1431_v5 = vunpack.c.l.b16 %v1085_v3  ;;  %v1089_v53 = vpack.c.bf16 %v2549_v31, %v2549_v31 }
 0x3cd   : > { %v1255_v50 = vpack.c.b16 %v1253_v45, %v1253_v45  ;;  %v1096_v31 = vpack.c.bf16 %v2577_v41, %v2577_v41  ;;  %v1578_v45 = vunpack.c.l.b16 %v1094_v58 }
 0x3ce   : > { %v877_v39 = vmul.f32 0.35355338, %v865_v8  ;;  %2140 = vmatmul.msk.bf16.vlgmr.msrb.gmra.mxu0 %vm1117_vm13, %v1254_v25  ;;  %v1434_v46 = vpack.c.b16 %v1432_v22, %v1431_v5  ;;  %v1483_v37 = vunpack.c.l.b16 %v1089_v53 }
 0x3d0   : > { %v795_v10 = vpop.permute.xlu1 %794  ;;  %v889_v11 = vpack.c.bf16 %v877_v39, %v877_v39  ;;  %v1485_v25 = vpack.c.b16 %v1483_v37, %v1482_v7  ;;  %v1580_v39 = vunpack.c.l.b16 %v1096_v31 }
 0x3d1   : > { %v826_v15 = vsel %vm820_vm12, %v759_v57, %v795_v10 }
 0x3d2   : > { %v850_v21 = vmul.f32 %v826_v15, %v2630_v56  ;;  %v1203_v19 = vunpack.c.l.b16 %v889_v11  ;;  %v1582_v11 = vpack.c.b16 %v1580_v39, %v1580_v39 }
 0x3d4   : > { %v862_v29 = vadd.f32 %v850_v21, %v838_v17  ;;  %v1205_v33 = vpack.c.b16 %v1203_v19, %v1203_v19 }
 0x3d6   : > { %v874_v35 = vmul.f32 0.35355338, %v862_v29  ;;  %2139 = vmatmul.msk.bf16.gmra.mxu3 %vm1117_vm13, %v1205_v33 }
 0x3d8   : > { %v886_v36 = vpack.c.bf16 %v874_v35, %v874_v35  ;;  %v1095_v35 = vpack.c.bf16 %v2575_v40, %v2575_v40 }
 0x3da   : > { %v1153_v32 = vunpack.c.l.b16 %v886_v36 }
 0x3dc   : > { %v1155_v47 = vpack.c.b16 %v1153_v32, %v1153_v32  ;;  %v1579_v32 = vunpack.c.l.b16 %v1095_v35 }
 0x3de   : > { %2137 = vmatmul.msk.bf16.gmra.mxu2 %vm1117_vm13, %v1155_v47  ;;  %2141 = vmatmul.msk.bf16.gmra.mxu0 %vm1117_vm13, %v1255_v50 }
 0x3e2   : > { %v2825_v24 = vpop.f32.mrf.mxu3 }
 0x3e3   : > { %v1306_v29 = vsel %vm1305_vm15, %v2825_v24, -inf }
 0x3ea   : > { %v1146_v48 = vpop.f32.mrf.mxu3 }
 0x41c   : > { %v2827_v56 = vpop.f32.mrf.mxu3 }
 0x41d   : > { %v1318_v63 = vsel %vm1298_vm14, %v2827_v56, -inf }
 0x424   : > { %v2837_v57 = vpop.f32.mrf.mxu3 }
 0x425   : > { %v1321_v62 = vsel %vm1298_vm14, %v2837_v57, -inf }
 0x42b   : > { %v2829_v52 = vpop.f32.mrf.mxu1 }
 0x42c   : > { %v2831_v60 = vpop.f32.mrf.mxu2  ;;  %v1299_v54 = vsel %vm1298_vm14, %v2829_v52, -inf }
 0x42d   : > { %1300 = vmax.xlane.f32.xlu2 %v1299_v54  ;;  %v1309_v55 = vsel %vm1298_vm14, %v2831_v60, -inf  ;;  %v1581_v54 = vpack.c.b16 %v1579_v32, %v1578_v45 }
 0x42e   : > { %1310 = vmax.xlane.f32.xlu0 %v1309_v55  ;;  %v2335_v55 = vmov 0  }
 0x433   : > { %v2839_v59 = vpop.f32.mrf.mxu1 }
 0x434   : > { %v1302_v61 = vsel %vm1298_vm14, %v2839_v59, -inf  ;;  %v2874_v42 = vpop.f32.mrf.mxu2 }
 0x435   : > { %1303 = vmax.xlane.f32.xlu1 %v1302_v61  ;;  %v1312_v33 = vsel %vm1298_vm14, %v2874_v42, -inf  ;;  %v1449_v61 = vsel %vm1447_vm2, 65535, %v2335_v55 }
 0x436   : > { %1322 = vmax.xlane.f32.xlu0 %v1321_v62 }
 0x43d   : > { %1319 = vmax.xlane.f32.xlu1 %v1318_v63 }
 0x445   : > { %1489 = vrot.lane.b32.xlu2 %v1486_v28, %s2334_s21 }
 0x44a   : > { %1438 = vrot.lane.b32.xlu0 %v1435_v18, %s2334_s21 }
 0x44b   : > { %v2857_v51 = vpop.f32.mrf.mxu0 }
 0x44c   : > { %v1327_v17 = vsel %vm1298_vm14, %v2857_v51, -inf }
 0x44d   : > { %1535 = vrot.lane.b32.xlu2 %v1533_v2, %s2334_s21 }
 0x453   : > { %v2866_v6 = vpop.f32.mrf.mxu0 }
 0x454   : > { %v1330_v41 = vsel %vm1298_vm14, %v2866_v6, -inf }
 0x455   : > { %1436 = vrot.lane.b32.xlu2 %v1434_v46, %s2334_s21 }
 0x456   : > { %1537 = vrot.lane.b32.xlu1 %v1534_v44, %s2334_s21 }
 0x459   : > { %v2876_v13 = vpop.f32.mrf.mxu3 }
 0x45a   : > { %v1324_v21 = vsel %vm1305_vm15, %v2876_v13, -inf }
 0x45b   : > { %v2878_v8 = vpop.f32.mrf.mxu0 }
 0x45c   : > { %v1333_v19 = vsel %vm1305_vm15, %v2878_v8, -inf }
 0x45d   : > { %1487 = vrot.lane.b32.xlu2 %v1485_v25, %s2334_s21 }
 0x461   : > { %v2883_v9 = vpop.f32.mrf.mxu2  ;;  %v1246_v23 = vpop.f32.mrf.mxu3 }
 0x463   : > { %v1296_v10 = vpop.f32.mrf.mxu0 }
 0x465   : > { %1585 = vrot.lane.b32.xlu2 %v1582_v11, %s2334_s21 }
 0x469   : > { %v1196_v15 = vpop.f32.mrf.mxu2 }
 0x474   : > { %1328 = vmax.xlane.f32.xlu0 %v1327_v17 }
 0x47c   : > { %1325 = vmax.xlane.f32.xlu0 %v1324_v21 }
 0x480   : > { %1331 = vmax.xlane.f32.xlu1 %v1330_v41  ;;  %v1315_v41 = vsel %vm1305_vm15, %v2883_v9, -inf }
 0x484   : > { %1334 = vmax.xlane.f32.xlu0 %v1333_v19 }
 0x488   : > { %1307 = vmax.xlane.f32.xlu1 %v1306_v29 }
 0x48e   : > { %1313 = vmax.xlane.f32.xlu2 %v1312_v33 }
 0x4a0   : > { %v1301_v36 = vpop.xlane.xlu2 %1300 }
 0x4a1   : > { %v1336_v47 = vsub.f32 %v2829_v52, %v1301_v36  ;;  %v1311_v50 = vpop.xlane.xlu0 %1310 }
 0x4a2   : > { %v1339_v43 = vsub.f32 %v2831_v60, %v1311_v50 }
 0x4a3   : > { %v1348_v48 = vmul.f32 1.442695, %v1336_v47 }
 0x4a5   : > { %2253 = vpow2.f32 %v1348_v48 }
 0x4a6   : > { %1583 = vrot.lane.b32.xlu2 %v1581_v54, %s2334_s21 }
 0x4a8   : > { %v1304_v62 = vpop.xlane.xlu1 %1303  ;;  %v1490_v14 = vpop.permute.xlu2 %1489 }
 0x4a9   : > { %v1337_v27 = vsub.f32 %v2839_v59, %v1304_v62  ;;  %v1499_v63 = vand.u32 %v1490_v14, %v1449_v61  ;;  %v1323_v40 = vpop.xlane.xlu0 %1322 }
 0x4aa   : > { %v1343_v28 = vsub.f32 %v2837_v57, %v1323_v40  ;;  %v1354_v57 = vmul.f32 1.442695, %v1339_v43 }
 0x4ab   : > { %v2254_v0 = vpop.eup %2253  ;;  %v1350_v26 = vmul.f32 1.442695, %v1337_v27  ;;  %1507 = vmatpush.bf16.msrb.mxu2 %v1499_v63 }
 0x4ac   : > { %v1372_v52 = vsel %vm1298_vm14, %v2254_v0, 0.0  ;;  %v1362_v34 = vmul.f32 1.442695, %v1343_v28  ;;  %v1408_v60 = vpack.c.bf16 %v2254_v0, %v2254_v0 }
 0x4ad   : > { %2255 = vpow2.f32 %v1350_v26  ;;  %1373 = vadd.xlane.f32.xlu1 %v1372_v52 }
 0x4ae   : > { %2257 = vpow2.f32 %v1362_v34  ;;  %v1423_v37 = vunpack.c.l.b16 %v1408_v60 }
 0x4b0   : > { %v1320_v49 = vpop.xlane.xlu1 %1319  ;;  %v1536_v1 = vpop.permute.xlu2 %1535 }
 0x4b1   : > { %v1342_v38 = vsub.f32 %v2827_v56, %v1320_v49 }
 0x4b3   : > { %v2256_v18 = vpop.eup %2255  ;;  %v1360_v59 = vmul.f32 1.442695, %v1342_v38 }
 0x4b4   : > { %v1375_v2 = vsel %vm1298_vm14, %v2256_v18, 0.0  ;;  %v2258_v30 = vpop.eup %2257  ;;  %v1409_v22 = vpack.c.bf16 %v2256_v18, %v2256_v18 }
 0x4b5   : > { %2259 = vpow2.f32 %v1360_v59  ;;  %1376 = vadd.xlane.f32.xlu0 %v1375_v2  ;;  %v1393_v5 = vsel %vm1298_vm14, %v2258_v30, 0.0  ;;  %v1415_v15 = vpack.c.bf16 %v2258_v30, %v2258_v30 }
 0x4b6   : > { %2261 = vpow2.f32 %v1354_v57  ;;  %v1424_v53 = vunpack.c.l.b16 %v1409_v22 }
 0x4b7   : > { %v1523_v21 = vunpack.c.l.b16 %v1415_v15 }
 0x4b8   : > { %v1437_v20 = vpop.permute.xlu2 %1436  ;;  %v1426_v25 = vpack.c.b16 %v1424_v53, %v1423_v37 }
 0x4bb   : > { %v2260_v3 = vpop.eup %2259 }
 0x4bc   : > { %v1439_v4 = vpop.permute.xlu0 %1438  ;;  %v1390_v56 = vsel %vm1298_vm14, %v2260_v3, 0.0  ;;  %v2912_v16 = vpop.eup %2261  ;;  %v1414_v31 = vpack.c.bf16 %v2260_v3, %v2260_v3 }
 0x4bd   : > { %v1451_v46 = vand.u32 %v1449_v61, %v1439_v4  ;;  %1394 = vadd.xlane.f32.xlu0 %v1393_v5  ;;  %1391 = vadd.xlane.f32.xlu1 %v1390_v56  ;;  %v1381_v7 = vsel %vm1298_vm14, %v2912_v16, 0.0 }
 0x4be   : > { %v1522_v17 = vunpack.c.l.b16 %v1414_v31 }
 0x4bf   : > { %1459 = vmatpush.bf16.msrb.mxu1 %v1451_v46 }
 0x4c0   : > { %v1488_v44 = vpop.permute.xlu2 %1487  ;;  %v1525_v19 = vpack.c.b16 %v1523_v21, %v1522_v17 }
 0x4c1   : > { %1508 = vmatpush.bf16.msrb.mxu2 %v1488_v44 }
 0x4c3   : > { %1460 = vmatpush.bf16.msrb.mxu1 %v1437_v20  ;;  %v1411_v20 = vpack.c.bf16 %v2912_v16, %v2912_v16 }
 0x4c5   : > { %1382 = vadd.xlane.f32.xlu1 %v1381_v7  ;;  %v1474_v5 = vunpack.c.l.b16 %v1411_v20  ;;  %v1651_v7 = vld [vmem:[%s3061_s7] sm:$0xf] }
 0x4c6   : > { %2142 = vmatmul.msk.bf16.vlgmr.msrb.gmra.mxu1 %vm1298_vm14, %v1426_v25  ;;  %v1706_v25 = vsel %vm1669_vm3, %v1651_v7, 0 }
 0x4c7   : > { %1715 = vmatpush.bf16.msra.mxu2 %v1706_v25 }
 0x4c8   : > { %v1538_v39 = vpop.permute.xlu1 %1537  ;;  %v1586_v23 = vpop.permute.xlu2 %1585 }
 0x4c9   : > { %v1547_v10 = vand.u32 %v1538_v39, %v1449_v61  ;;  %v1595_v11 = vand.u32 %v1586_v23, %v1449_v61  ;;  %v1653_v39 = vld [vmem:[%s3061_s7 + $0x8] sm:$0xf] }
 0x4cb   : > { %1555 = vmatpush.bf16.msra.mxu3 %v1547_v10  ;;  %1603 = vmatpush.bf16.msra.mxu0 %v1595_v11  ;;  %v1741_v10 = vsel %vm1669_vm3, %v1653_v39, 0 }
 0x4cf   : > { %1316 = vmax.xlane.f32.xlu2 %v1315_v41  ;;  %1556 = vmatpush.bf16.msra.mxu3 %v1536_v1 }
 0x4d2   : > { %2146 = vmatmul.msk.bf16.vlgmr.msra.gmra.mxu3 %vm1298_vm14, %v1525_v19 }
 0x4d3   : > { %1750 = vmatpush.bf16.msrb.mxu3 %v1741_v10 }
 0x4e7   : > { %v1329_v29 = vpop.xlane.xlu0 %1328 }
 0x4e8   : > { %v1345_v33 = vsub.f32 %v2857_v51, %v1329_v29 }
 0x4ea   : > { %v1366_v58 = vmul.f32 1.442695, %v1345_v33 }
 0x4ec   : > { %2263 = vpow2.f32 %v1366_v58 }
 0x4ef   : > { %v1326_v35 = vpop.xlane.xlu0 %1325 }
 0x4f0   : > { %v1344_v36 = vsub.f32 %v2876_v13, %v1326_v35 }
 0x4f2   : > { %v2264_v45 = vpop.eup %2263  ;;  %v1364_v32 = vmul.f32 1.442695, %v1344_v36 }
 0x4f3   : > { %v1332_v47 = vpop.xlane.xlu1 %1331  ;;  %v1399_v50 = vsel %vm1298_vm14, %v2264_v45, 0.0  ;;  %v1417_v1 = vpack.c.bf16 %v2264_v45, %v2264_v45 }
 0x4f4   : > { %2265 = vpow2.f32 %v1364_v32  ;;  %v1346_v48 = vsub.f32 %v2866_v6, %v1332_v47  ;;  %1400 = vadd.xlane.f32.xlu1 %v1399_v50 }
 0x4f5   : > { %v1570_v43 = vunpack.c.l.b16 %v1417_v1 }
 0x4f6   : > { %v1368_v54 = vmul.f32 1.442695, %v1346_v48 }
 0x4f7   : > { %v1335_v61 = vpop.xlane.xlu0 %1334 }
 0x4f8   : > { %2267 = vpow2.f32 %v1368_v54  ;;  %v1347_v13 = vsub.f32 %v2878_v8, %v1335_v61 }
 0x4fa   : > { %v2266_v55 = vpop.eup %2265  ;;  %v1370_v6 = vmul.f32 1.442695, %v1347_v13 }
 0x4fb   : > { %v1308_v62 = vpop.xlane.xlu1 %1307  ;;  %v1396_v51 = vsel %vm1305_vm15, %v2266_v55, 0.0  ;;  %v1416_v14 = vpack.c.bf16 %v2266_v55, %v2266_v55 }
 0x4fc   : > { %v1338_v27 = vsub.f32 %v2825_v24, %v1308_v62  ;;  %1397 = vadd.xlane.f32.xlu2 %v1396_v51 }
 0x4fd   : > { %v1524_v63 = vunpack.c.l.b16 %v1416_v14 }
 0x4fe   : > { %v1352_v40 = vmul.f32 1.442695, %v1338_v27  ;;  %v2268_v26 = vpop.eup %2267 }
 0x4ff   : > { %v1526_v0 = vpack.c.b16 %v1524_v63, %v1524_v63  ;;  %v1418_v34 = vpack.c.bf16 %v2268_v26, %v2268_v26  ;;  %v1402_v44 = vsel %vm1298_vm14, %v2268_v26, 0.0 }
 0x500   : > { %2269 = vpow2.f32 %v1352_v40 }
 0x501   : > { %2147 = vmatmul.msk.bf16.gmra.mxu3 %vm1298_vm14, %v1526_v0  ;;  %v1314_v28 = vpop.xlane.xlu2 %1313  ;;  %2271 = vpow2.f32 %v1370_v6  ;;  %v1571_v24 = vunpack.c.l.b16 %v1418_v34 }
 0x502   : > { %v1340_v52 = vsub.f32 %v2874_v42, %v1314_v28 }
 0x503   : > { %v1573_v42 = vpack.c.b16 %v1571_v24, %v1570_v43  ;;  %v1652_v43 = vld [vmem:[%s3061_s7 + $0x4] sm:$0xf] }
 0x504   : > { %v1356_v49 = vmul.f32 1.442695, %v1340_v52 }
 0x506   : > { %v2270_v38 = vpop.eup %2269  ;;  %2273 = vpow2.f32 %v1356_v49  ;;  %v1654_v49 = vld [vmem:[%s3061_s7 + $0xc] sm:$0xf] }
 0x507   : > { %v1378_v8 = vsel %vm1305_vm15, %v2270_v38, 0.0  ;;  %v1410_v18 = vpack.c.bf16 %v2270_v38, %v2270_v38  ;;  %v2272_v57 = vpop.eup %2271  ;;  %v1779_v1 = vsel %vm1669_vm3, %v1654_v49, 0 }
 0x508   : > { %1379 = vadd.xlane.f32.xlu1 %v1378_v8  ;;  %v1405_v46 = vsel %vm1305_vm15, %v2272_v57, 0.0  ;;  %v1419_v53 = vpack.c.bf16 %v2272_v57, %v2272_v57  ;;  %v1671_v57 = vsel %vm1669_vm3, %v1652_v43, 0 }
 0x509   : > { %v1584_v59 = vpop.permute.xlu2 %1583  ;;  %v1425_v2 = vunpack.c.l.b16 %v1410_v18  ;;  %1680 = vmatpush.bf16.msra.mxu1 %v1671_v57 }
 0x50a   : > { %1604 = vmatpush.bf16.msra.mxu0 %v1584_v59  ;;  %v1572_v16 = vunpack.c.l.b16 %v1419_v53 }
 0x50b   : > { %v1427_v30 = vpack.c.b16 %v1425_v2, %v1425_v2 }
 0x50c   : > { %v2274_v3 = vpop.eup %2273  ;;  %v1574_v37 = vpack.c.b16 %v1572_v16, %v1572_v16 }
 0x50d   : > { %v1412_v22 = vpack.c.bf16 %v2274_v3, %v2274_v3  ;;  %2143 = vmatmul.msk.bf16.gmra.mxu1 %vm1298_vm14, %v1427_v30  ;;  %2148 = vmatmul.msk.bf16.vlgmr.msra.gmra.mxu0 %vm1298_vm14, %v1573_v42  ;;  %v1384_v4 = vsel %vm1298_vm14, %v2274_v3, 0.0 }
 0x50e   : > { %1385 = vadd.xlane.f32.xlu0 %v1384_v4  ;;  %1788 = vmatpush.bf16.msrb.mxu0 %v1779_v1 }
 0x50f   : > { %v1475_v56 = vunpack.c.l.b16 %v1412_v22 }
 0x510   : > { %1406 = vadd.xlane.f32.xlu1 %v1405_v46 }
 0x511   : > { %v1477_v60 = vpack.c.b16 %v1475_v56, %v1474_v5 }
 0x513   : > { %2144 = vmatmul.msk.bf16.vlgmr.msrb.gmra.mxu2 %vm1298_vm14, %v1477_v60 }
 0x516   : > { %1403 = vadd.xlane.f32.xlu0 %v1402_v44 }
 0x51d   : > { %2149 = vmatmul.msk.bf16.gmra.mxu0 %vm1298_vm14, %v1574_v37 }
 0x520   : > { %v1374_v15 = vpop.xlane.xlu1 %1373 }
 0x528   : > { %v1377_v21 = vpop.xlane.xlu0 %1376 }
 0x530   : > { %v1392_v33 = vpop.xlane.xlu1 %1391  ;;  %v1395_v36 = vpop.xlane.xlu0 %1394 }
 0x538   : > { %v1383_v34 = vpop.xlane.xlu1 %1382 }
 0x542   : > { %v1317_v31 = vpop.xlane.xlu2 %1316 }
 0x543   : > { %v1341_v23 = vsub.f32 %v2883_v9, %v1317_v31  ;;  %v1462_v17 = vpop.f32.mrf.mxu1 }
 0x545   : > { %v1358_v11 = vmul.f32 1.442695, %v1341_v23 }
 0x547   : > { %2275 = vpow2.f32 %v1358_v11 }
 0x548   : > { %2277 = vrcp.f32 %v1377_v21 }
 0x549   : > { %2279 = vrcp.f32 %v1374_v15 }
 0x54a   : > { %2281 = vrcp.f32 %v1392_v33 }
 0x54b   : > { %v1464_v9 = vpop.f32.mrf.mxu1  ;;  %2283 = vrcp.f32 %v1395_v36 }
 0x54d   : > { %v2276_v41 = vpop.eup %2275 }
 0x54e   : > { %v1387_v19 = vsel %vm1305_vm15, %v2276_v41, 0.0  ;;  %v1413_v29 = vpack.c.bf16 %v2276_v41, %v2276_v41  ;;  %v2278_v45 = vpop.eup %2277 }
 0x54f   : > { %1388 = vadd.xlane.f32.xlu0 %v1387_v19  ;;  %v1628_v47 = vmul.f32 %v2278_v45, %v1464_v9  ;;  %v2280_v50 = vpop.eup %2279 }
 0x550   : > { %v1476_v58 = vunpack.c.l.b16 %v1413_v29  ;;  %v1627_v48 = vmul.f32 %v2280_v50, %v1462_v17  ;;  %v2282_v54 = vpop.eup %2281 }
 0x551   : > { %v1640_v55 = vpack.c.bf16 %v1628_v47, %v1628_v47  ;;  %v2284_v51 = vpop.eup %2283 }
 0x552   : > { %v1478_v35 = vpack.c.b16 %v1476_v58, %v1476_v58  ;;  %v1639_v62 = vpack.c.bf16 %v1627_v48, %v1627_v48 }
 0x553   : > { %v1695_v27 = vunpack.c.l.b16 %v1640_v55 }
 0x554   : > { %2145 = vmatmul.msk.bf16.gmra.mxu2 %vm1298_vm14, %v1478_v35  ;;  %v1694_v40 = vunpack.c.l.b16 %v1639_v62 }
 0x555   : > { %v1558_v32 = vpop.f32.mrf.mxu3 }
 0x556   : > { %v1633_v61 = vmul.f32 %v2282_v54, %v1558_v32  ;;  %v1697_v26 = vpack.c.b16 %v1695_v27, %v1694_v40 }
 0x558   : > { %v1645_v13 = vpack.c.bf16 %v1633_v61, %v1633_v61 }
 0x55a   : > { %v1729_v6 = vunpack.c.l.b16 %v1645_v13 }
 0x55d   : > { %v1560_v14 = vpop.f32.mrf.mxu3 }
 0x55e   : > { %v1634_v63 = vmul.f32 %v2284_v51, %v1560_v14 }
 0x560   : > { %v1646_v0 = vpack.c.bf16 %v1634_v63, %v1634_v63 }
 0x562   : > { %v1730_v28 = vunpack.c.l.b16 %v1646_v0 }
 0x564   : > { %v1732_v52 = vpack.c.b16 %v1730_v28, %v1729_v6  ;;  %2152 = vmatmul.msk.bf16.vlgmr.msra.gmra.mxu2 %vm1117_vm13, %v1697_v26 }
 0x566   : > { %2154 = vmatmul.msk.bf16.vlgmr.msrb.gmra.mxu3 %vm1117_vm13, %v1732_v52 }
 0x567   : > { %v1401_v38 = vpop.xlane.xlu1 %1400 }
 0x56f   : > { %v1398_v24 = vpop.xlane.xlu2 %1397 }
 0x570   : > { %2285 = vrcp.f32 %v1398_v24 }
 0x576   : > { %v2286_v59 = vpop.eup %2285 }
 0x57b   : > { %v1380_v8 = vpop.xlane.xlu1 %1379 }
 0x57c   : > { %2287 = vrcp.f32 %v1380_v8 }
 0x57d   : > { %2289 = vrcp.f32 %v1401_v38 }
 0x581   : > { %v1386_v18 = vpop.xlane.xlu0 %1385 }
 0x582   : > { %v2288_v22 = vpop.eup %2287 }
 0x583   : > { %v2290_v44 = vpop.eup %2289  ;;  %v1407_v23 = vpop.xlane.xlu1 %1406 }
 0x584   : > { %v1563_v2 = vpop.f32.mrf.mxu3 }
 0x585   : > { %v1635_v20 = vmul.f32 %v2286_v59, %v1563_v2 }
 0x587   : > { %v1647_v42 = vpack.c.bf16 %v1635_v20, %v1635_v20 }
 0x589   : > { %v1731_v30 = vunpack.c.l.b16 %v1647_v42  ;;  %v1404_v3 = vpop.xlane.xlu0 %1403 }
 0x58a   : > { %v1467_v4 = vpop.f32.mrf.mxu1  ;;  %v1606_v5 = vpop.f32.mrf.mxu0  ;;  %2291 = vrcp.f32 %v1404_v3  ;;  %v2240_v3 = vld [vmem:[%s3062_s8] ss:$0 sm:$0xff] }
 0x58b   : > { %v1733_v56 = vpack.c.b16 %v1731_v30, %v1731_v30  ;;  %v1629_v46 = vmul.f32 %v2288_v22, %v1467_v4  ;;  %v1636_v37 = vmul.f32 %v2290_v44, %v1606_v5  ;;  %2293 = vrcp.f32 %v1383_v34  ;;  %v2313_v22 = vld [vmem:[%s2442_s28] sm:$0xff] }
 0x58c   : > { %v1565_v60 = vpop.f32.mrf.mxu3  ;;  %2295 = vrcp.f32 %v1407_v23 }
 0x58d   : > { %v1641_v53 = vpack.c.bf16 %v1629_v46, %v1629_v46  ;;  %2155 = vmatmul.msk.bf16.gmra.mxu3 %vm1117_vm13, %v1733_v56  ;;  %v1648_v10 = vpack.c.bf16 %v1636_v37, %v1636_v37  ;;  %2297 = vrcp.f32 %v1386_v18  ;;  %v2314_v37 = vld [vmem:[%s2442_s28 + $0x8] sm:$0xff] }
 0x58f   : > { %v1696_v16 = vunpack.c.l.b16 %v1641_v53  ;;  %v1767_v21 = vunpack.c.l.b16 %v1648_v10 }
 0x590   : > { %v2292_v25 = vpop.eup %2291 }
 0x591   : > { %v1698_v7 = vpack.c.b16 %v1696_v16, %v1696_v16  ;;  %v2294_v29 = vpop.eup %2293 }
 0x592   : > { %v1469_v31 = vpop.f32.mrf.mxu1  ;;  %v1608_v39 = vpop.f32.mrf.mxu0 }
 0x593   : > { %v1637_v11 = vmul.f32 %v2292_v25, %v1608_v39  ;;  %2153 = vmatmul.msk.bf16.gmra.mxu2 %vm1117_vm13, %v1698_v7  ;;  %v2296_v35 = vpop.eup %2295 }
 0x594   : > { %v2298_v36 = vpop.eup %2297 }
 0x595   : > { %v1649_v15 = vpack.c.bf16 %v1637_v11, %v1637_v11 }
 0x596   : > { %v1510_v17 = vpop.f32.mrf.mxu2 }
 0x597   : > { %v1768_v41 = vunpack.c.l.b16 %v1649_v15  ;;  %v1630_v58 = vmul.f32 %v2294_v29, %v1510_v17  ;;  %v2315_v15 = vld [vmem:[%s2442_s28 + $0x10] sm:$0x1] }
 0x599   : > { %v1770_v19 = vpack.c.b16 %v1768_v41, %v1767_v21  ;;  %v1642_v32 = vpack.c.bf16 %v1630_v58, %v1630_v58 }
 0x59a   : > { %v1611_v33 = vpop.f32.mrf.mxu0 }
 0x59b   : > { %2156 = vmatmul.msk.bf16.vlgmr.msrb.gmra.mxu0 %vm1117_vm13, %v1770_v19  ;;  %v1638_v9 = vmul.f32 %v2296_v35, %v1611_v33  ;;  %v1658_v55 = vunpack.c.l.b16 %v1642_v32 }
 0x59d   : > { %v1650_v50 = vpack.c.bf16 %v1638_v9, %v1638_v9 }
 0x59e   : > { %v1512_v45 = vpop.f32.mrf.mxu2 }
 0x59f   : > { %v1631_v47 = vmul.f32 %v2298_v36, %v1512_v45  ;;  %v1769_v62 = vunpack.c.l.b16 %v1650_v50 }
 0x5a1   : > { %v1643_v48 = vpack.c.bf16 %v1631_v47, %v1631_v47  ;;  %v1771_v14 = vpack.c.b16 %v1769_v62, %v1769_v62 }
 0x5a2   : > { %v1613_v54 = vpop.f32.mrf.mxu0 }
 0x5a3   : > { %v1659_v61 = vunpack.c.l.b16 %v1643_v48 }
 0x5a5   : > { %v1661_v51 = vpack.c.b16 %v1659_v61, %v1658_v55 }
 0x5a7   : > { %2150 = vmatmul.msk.bf16.vlgmr.msra.gmra.mxu1 %vm1117_vm13, %v1661_v51  ;;  %v2205_v51 = vld [vmem:[%s3065_s11 + $0x8] sm:$0xff] }
 0x5a8   : > { %1926 = vmatpush.bf16.msrb.mxu1 %v2205_v51 }
 0x5ab   : > { %2157 = vmatmul.msk.bf16.gmra.mxu0 %vm1117_vm13, %v1771_v14 }
 0x5c2   : > { %v1389_v27 = vpop.xlane.xlu0 %1388 }
 0x5c3   : > { %2299 = vrcp.f32 %v1389_v27 }
 0x5c9   : > { %v2300_v13 = vpop.eup %2299 }
 0x5d7   : > { %v1515_v63 = vpop.f32.mrf.mxu2 }
 0x5d8   : > { %v1632_v40 = vmul.f32 %v2300_v13, %v1515_v63  ;;  %v2204_v63 = vld [vmem:[%s3065_s11] sm:$0xff] }
 0x5d9   : > { %1927 = vmatpush.bf16.msrb.mxu1 %v2204_v63 }
 0x5da   : > { %v1644_v0 = vpack.c.bf16 %v1632_v40, %v1632_v40 }
 0x5dc   : > { %v1660_v26 = vunpack.c.l.b16 %v1644_v0 }
 0x5de   : > { %v1662_v6 = vpack.c.b16 %v1660_v26, %v1660_v26 }
 0x5df   : > { %v1517_v28 = vpop.f32.mrf.mxu2 }
 0x5e0   : > { %2151 = vmatmul.msk.bf16.gmra.mxu1 %vm1117_vm13, %v1662_v6 }
 0x5e7   : > { %v1717_v34 = vpop.f32.mrf.mxu2 }
 0x5e9   : > { %v1752_v52 = vpop.f32.mrf.mxu3 }
 0x5ef   : > { %v1719_v1 = vpop.f32.mrf.mxu2 }
 0x5f1   : > { %v1754_v49 = vpop.f32.mrf.mxu3 }
 0x610   : > { %v1757_v38 = vpop.f32.mrf.mxu3 }
 0x616   : > { %v1722_v24 = vpop.f32.mrf.mxu2 }
 0x618   : > { %v1759_v8 = vpop.f32.mrf.mxu3  ;;  %v1790_v18 = vpop.f32.mrf.mxu0 }
 0x61e   : > { %v1724_v43 = vpop.f32.mrf.mxu2 }
 0x620   : > { %v1792_v59 = vpop.f32.mrf.mxu0 }
 0x624   : > { %v1682_v2 = vpop.f32.mrf.mxu1 }
 0x625   : > { %v1718_v57 = vadd.f32 %v1717_v34, %v1682_v2  ;;  %v2241_v2 = vld [vmem:[%s3063_s9] ss:$0 sm:$0xff] }
 0x627   : > { %v1761_v20 = vadd.f32 %v1752_v52, %v1718_v57 }
 0x628   : > { %v1795_v42 = vpop.f32.mrf.mxu0 }
 0x629   : > { %v1799_v30 = vadd.f32 %v1790_v18, %v1761_v20 }
 0x62b   : > { %v1802_v4 = vadd.f32 %v2313_v22, %v1799_v30  ;;  %v2242_v30 = vld [vmem:[%s3064_s10] ss:$0 sm:$0xff] }
 0x62c   : > { %v1684_v5 = vpop.f32.mrf.mxu1 }
 0x62d   : > { %v1720_v56 = vadd.f32 %v1719_v1, %v1684_v5  ;;  %v2970_v46 = vadd.f32 %v2240_v3, %v1802_v4 }
 0x62f   : > { %v1762_v60 = vadd.f32 %v1754_v49, %v1720_v56  ;;  %v1814_v53 = vsel %vm555_vm0, %v2970_v46, 0.0 }
 0x630   : > { %v1797_v44 = vpop.f32.mrf.mxu0  ;;  %1815 = vadd.xlane.f32.xlu2 %v1814_v53 }
 0x631   : > { %v1800_v16 = vadd.f32 %v1792_v59, %v1762_v60 }
 0x633   : > { %v1803_v7 = vadd.f32 %v2314_v37, %v1800_v16 }
 0x635   : > { %v2975_v25 = vadd.f32 %v2240_v3, %v1803_v7 }
 0x637   : > { %v1817_v31 = vsel %vm555_vm0, %v2975_v25, 0.0 }
 0x638   : > { %1818 = vadd.xlane.f32.xlu0 %v1817_v31 }
 0x65d   : > { %v1687_v39 = vpop.f32.mrf.mxu1 }
 0x65e   : > { %v1723_v23 = vadd.f32 %v1722_v24, %v1687_v39 }
 0x660   : > { %v1763_v10 = vadd.f32 %v1757_v38, %v1723_v23 }
 0x662   : > { %v1801_v11 = vadd.f32 %v1795_v42, %v1763_v10 }
 0x664   : > { %v1804_v17 = vadd.f32 %v2315_v15, %v1801_v11 }
 0x665   : > { %v1689_v21 = vpop.f32.mrf.mxu1 }
 0x666   : > { %v2980_v41 = vadd.f32 %v2240_v3, %v1804_v17 }
 0x668   : > { %v1820_v19 = vsel %vm562_vm1, %v2980_v41, 0.0 }
 0x669   : > { %1821 = vadd.xlane.f32.xlu1 %v1820_v19 }
 0x6a3   : > { %v1816_v29 = vpop.xlane.xlu2 %1815 }
 0x6a4   : > { %v1823_v33 = vmul.f32 %v1816_v29, %v2450_v12  ;;  %v2212_v29 = vld [vmem:[%s3067_s13 + $0x30] sm:$0xff] }
 0x6a6   : > { %v1826_v58 = vsub.f32 %v2970_v46, %v1823_v33  ;;  %v2211_v33 = vld [vmem:[%s3067_s13 + $0x28] sm:$0xff] }
 0x6a8   : > { %v1829_v35 = vmul.f32 %v1826_v58, %v1826_v58 }
 0x6aa   : > { %v1832_v9 = vsel %vm555_vm0, %v1829_v35, 0.0  ;;  %v2209_v35 = vld [vmem:[%s3067_s13 + $0x18] sm:$0xff] }
 0x6ab   : > { %v1819_v36 = vpop.xlane.xlu0 %1818  ;;  %1833 = vadd.xlane.f32.xlu2 %v1832_v9  ;;  %v2208_v9 = vld [vmem:[%s3067_s13 + $0x10] sm:$0xff] }
 0x6ac   : > { %v1824_v45 = vmul.f32 %v1819_v36, %v2450_v12  ;;  %v2207_v36 = vld [vmem:[%s3067_s13 + $0x8] sm:$0xff] }
 0x6ae   : > { %v1827_v32 = vsub.f32 %v2975_v25, %v1824_v45  ;;  %v2243_v45 = vld [vmem:[%s3066_s12] ss:$0 sm:$0xff] }
 0x6b0   : > { %v1830_v47 = vmul.f32 %v1827_v32, %v1827_v32 }
 0x6b2   : > { %v1835_v50 = vsel %vm555_vm0, %v1830_v47, 0.0  ;;  %v2206_v47 = vld [vmem:[%s3067_s13] sm:$0xff] }
 0x6b3   : > { %1836 = vadd.xlane.f32.xlu0 %v1835_v50 }
 0x6dc   : > { %v1822_v48 = vpop.xlane.xlu1 %1821 }
 0x6dd   : > { %v1825_v54 = vmul.f32 %v1822_v48, %v2450_v12 }
 0x6df   : > { %v1828_v55 = vsub.f32 %v2980_v41, %v1825_v54 }
 0x6e1   : > { %v1831_v61 = vmul.f32 %v1828_v55, %v1828_v55 }
 0x6e3   : > { %v1838_v62 = vsel %vm562_vm1, %v1831_v61, 0.0 }
 0x6e4   : > { %1839 = vadd.xlane.f32.xlu1 %v1838_v62 }
 0x71e   : > { %v1834_v14 = vpop.xlane.xlu2 %1833 }
 0x71f   : > { %v1841_v27 = vmul.f32 %v1834_v14, %v2450_v12 }
 0x721   : > { %v1844_v13 = vadd.f32 1e-05, %v1841_v27 }
 0x723   : > { %2301 = vrsqrt.f32 %v1844_v13  ;;  %vm1853_vm5 = vweird.f32 %v1844_v13 }
 0x726   : > { %v1837_v40 = vpop.xlane.xlu0 %1836 }
 0x727   : > { %v1842_v0 = vmul.f32 %v1837_v40, %v2450_v12 }
 0x729   : > { %v2302_v26 = vpop.eup %2301  ;;  %v1845_v6 = vadd.f32 1e-05, %v1842_v0 }
 0x72a   : > { %v1848_v28 = vmul.f32 %v2302_v26, %v1844_v13  ;;  %vm1854_vm4 = vweird.f32 %v2302_v26 }
 0x72b   : > { %2303 = vrsqrt.f32 %v1845_v6  ;;  %vm1855_vm6 = vmor %vm1853_vm5, %vm1854_vm4  ;;  %vm1863_vm8 = vweird.f32 %v1845_v6 }
 0x72c   : > { %v1849_v52 = vmul.f32 %v2302_v26, %v1848_v28 }
 0x72e   : > { %v1850_v34 = vmul.f32 0.5, %v1849_v52 }
 0x730   : > { %v1851_v49 = vsub.f32 1.5, %v1850_v34 }
 0x731   : > { %v2304_v1 = vpop.eup %2303 }
 0x732   : > { %v1852_v38 = vmul.f32 %v2302_v26, %v1851_v49  ;;  %v1858_v24 = vmul.f32 %v2304_v1, %v1845_v6  ;;  %vm1864_vm7 = vweird.f32 %v2304_v1 }
 0x733   : > { %vm1865_vm9 = vmor %vm1863_vm8, %vm1864_vm7 }
 0x734   : > { %v1859_v8 = vmul.f32 %v2304_v1, %v1858_v24  ;;  %v1856_v18 = vsel %vm1855_vm6, %v2302_v26, %v1852_v38 }
 0x735   : > { %v1877_v57 = vmul.f32 %v1856_v18, %v1826_v58  ;;  %v2210_v58 = vld [vmem:[%s3067_s13 + $0x20] sm:$0xff] }
 0x736   : > { %v1860_v43 = vmul.f32 0.5, %v1859_v8 }
 0x737   : > { %v1883_v3 = vmul.f32 %v2241_v2, %v1877_v57 }
 0x738   : > { %v1861_v59 = vsub.f32 1.5, %v1860_v43 }
 0x739   : > { %v1889_v5 = vadd.f32 %v2242_v30, %v1883_v3 }
 0x73a   : > { %v1862_v20 = vmul.f32 %v2304_v1, %v1861_v59 }
 0x73c   : > { %v1866_v42 = vsel %vm1865_vm9, %v2304_v1, %v1862_v20 }
 0x73d   : > { %v1878_v22 = vmul.f32 %v1866_v42, %v1827_v32 }
 0x73f   : > { %v1884_v4 = vmul.f32 %v2241_v2, %v1878_v22 }
 0x741   : > { %v1890_v56 = vadd.f32 %v2242_v30, %v1884_v4 }
 0x743   : > { %v1896_v60 = vpack.c.bf16 %v1890_v56, %v1889_v5  ;;  %v2244_v56 = vld [vmem:[%s3068_s14] ss:$0 sm:$0xff] }
 0x745   : > { %2166 = vmatmul.msk.bf16.vlgmr.msrb.gmra.mxu1 %vm555_vm0, %v1896_v60 }
 0x757   : > { %v1840_v53 = vpop.xlane.xlu1 %1839 }
 0x758   : > { %v1843_v44 = vmul.f32 %v1840_v53, %v2450_v12  ;;  %v2213_v12 = vld [vmem:[%s3067_s13 + $0x38] sm:$0xff] }
 0x759   : > { %2031 = vmatpush.bf16.msrb.mxu2 %v2213_v12 }
 0x75a   : > { %v1846_v16 = vadd.f32 1e-05, %v1843_v44 }
 0x75c   : > { %2305 = vrsqrt.f32 %v1846_v16  ;;  %vm1873_vm11 = vweird.f32 %v1846_v16 }
 0x75d   : > { %2032 = vmatpush.bf16.msrb.mxu2 %v2212_v29 }
 0x761   : > { %2033 = vmatpush.bf16.msrb.mxu2 %v2211_v33 }
 0x762   : > { %v2306_v37 = vpop.eup %2305 }
 0x763   : > { %v1868_v7 = vmul.f32 %v2306_v37, %v1846_v16  ;;  %vm1874_vm10 = vweird.f32 %v2306_v37 }
 0x764   : > { %vm1875_vm12 = vmor %vm1873_vm11, %vm1874_vm10 }
 0x765   : > { %v1869_v31 = vmul.f32 %v2306_v37, %v1868_v7  ;;  %2034 = vmatpush.bf16.msrb.mxu2 %v2210_v58 }
 0x767   : > { %v1870_v39 = vmul.f32 0.5, %v1869_v31 }
 0x769   : > { %v1871_v23 = vsub.f32 1.5, %v1870_v39  ;;  %2035 = vmatpush.bf16.msrb.mxu2 %v2209_v35 }
 0x76b   : > { %v1872_v10 = vmul.f32 %v2306_v37, %v1871_v23 }
 0x76d   : > { %v1876_v11 = vsel %vm1875_vm12, %v2306_v37, %v1872_v10  ;;  %2036 = vmatpush.bf16.msrb.mxu2 %v2208_v9 }
 0x76e   : > { %v1879_v15 = vmul.f32 %v1876_v11, %v1828_v55 }
 0x770   : > { %v1885_v17 = vmul.f32 %v2241_v2, %v1879_v15 }
 0x771   : > { %2037 = vmatpush.bf16.msrb.mxu2 %v2207_v36 }
 0x772   : > { %v1891_v21 = vadd.f32 %v2242_v30, %v1885_v17 }
 0x774   : > { %v1897_v19 = vpack.c.bf16 %v1891_v21, %v1891_v21 }
 0x775   : > { %2038 = vmatpush.bf16.msrb.mxu2 %v2206_v47 }
 0x776   : > { %2167 = vmatmul.msk.bf16.gmra.mxu1 %vm555_vm0, %v1897_v19 }
 0x7c2   : > { %v1929_v32 = vpop.f32.mrf.mxu1 }
 0x7c3   : > { %v1930_v50 = vadd.f32 %v2243_v45, %v1929_v32 }
 0x7c5   : > { %v1938_v48 = vmul.f32 %v1930_v50, %v1930_v50 }
 0x7c7   : > { %v1941_v54 = vmul.f32 %v1938_v48, %v1930_v50 }
 0x7c9   : > { %v1944_v55 = vmul.f32 0.044715, %v1941_v54 }
 0x7ca   : > { %v1931_v61 = vpop.f32.mrf.mxu1 }
 0x7cb   : > { %v1947_v62 = vadd.f32 %v1944_v55, %v1930_v50  ;;  %v1932_v51 = vadd.f32 %v2243_v45, %v1931_v61 }
 0x7cd   : > { %v1950_v14 = vmul.f32 0.7978846, %v1947_v62  ;;  %v1939_v27 = vmul.f32 %v1932_v51, %v1932_v51 }
 0x7cf   : > { %v1942_v13 = vmul.f32 %v1939_v27, %v1932_v51  ;;  %2307 = vtanh.f32 %v1950_v14 }
 0x7d1   : > { %v1945_v63 = vmul.f32 0.044715, %v1942_v13 }
 0x7d3   : > { %v1948_v40 = vadd.f32 %v1945_v63, %v1932_v51 }
 0x7d5   : > { %v1951_v0 = vmul.f32 0.7978846, %v1948_v40  ;;  %v2308_v26 = vpop.eup %2307 }
 0x7d6   : > { %v1956_v6 = vadd.f32 1.0, %v2308_v26 }
 0x7d7   : > { %2309 = vtanh.f32 %v1951_v0 }
 0x7d8   : > { %v1959_v52 = vmul.f32 0.5, %v1956_v6 }
 0x7da   : > { %v1962_v1 = vmul.f32 %v1959_v52, %v1930_v50 }
 0x7dd   : > { %v2310_v28 = vpop.eup %2309 }
 0x7de   : > { %v1957_v34 = vadd.f32 1.0, %v2310_v28 }
 0x7e0   : > { %v1960_v49 = vmul.f32 0.5, %v1957_v34 }
 0x7e2   : > { %v1963_v38 = vmul.f32 %v1960_v49, %v1932_v51 }
 0x7e4   : > { %v1981_v24 = vpack.c.bf16 %v1963_v38, %v1962_v1 }
 0x7e6   : > { %2039 = vmatmul.bf16.vlgmr.msrb.gmra.mxu2 %v1981_v24 }
 0x7f3   : > { %v1934_v8 = vpop.f32.mrf.mxu1 }
 0x7f4   : > { %v1935_v18 = vadd.f32 %v2243_v45, %v1934_v8 }
 0x7f6   : > { %v1940_v43 = vmul.f32 %v1935_v18, %v1935_v18 }
 0x7f8   : > { %v1943_v59 = vmul.f32 %v1940_v43, %v1935_v18 }
 0x7fa   : > { %v1946_v2 = vmul.f32 0.044715, %v1943_v59 }
 0x7fb   : > { %v1936_v57 = vpop.f32.mrf.mxu1 }
 0x7fc   : > { %v1949_v20 = vadd.f32 %v1946_v2, %v1935_v18 }
 0x7fe   : > { %v1952_v42 = vmul.f32 0.7978846, %v1949_v20 }
 0x800   : > { %2311 = vtanh.f32 %v1952_v42 }
 0x806   : > { %v2312_v30 = vpop.eup %2311 }
 0x807   : > { %v1958_v3 = vadd.f32 1.0, %v2312_v30 }
 0x809   : > { %v1961_v22 = vmul.f32 0.5, %v1958_v3 }
 0x80b   : > { %v1964_v4 = vmul.f32 %v1961_v22, %v1935_v18 }
 0x80d   : > { %v1982_v5 = vpack.c.bf16 %v1964_v4, %v1964_v4 }
 0x80f   : > { %2044 = vmatmul.bf16.gmra.mxu2 %v1982_v5 }
 0x869   : > { %v2040_v60 = vpop.f32.mrf.mxu2 }
 0x86a   : > { %v2049_v53 = vadd.f32 %v2040_v60, %v2970_v46 }
 0x86c   : > { %v2056_v44 = vadd.f32 %v2244_v56, %v2049_v53 }
 0x86e   : > { %2059 = vst.msk [vmem:[%s548_s26] sm:$0xff] %vm555_vm0, %v2056_v44 }
 0x871   : > { %v2042_v16 = vpop.f32.mrf.mxu2 }
 0x872   : > { %v2050_v37 = vadd.f32 %v2042_v16, %v2975_v25 }
 0x874   : > { %v2057_v7 = vadd.f32 %v2244_v56, %v2050_v37 }
 0x876   : > { %2060 = vst.msk [vmem:[%s548_s26 + $0x8] sm:$0xff] %vm555_vm0, %v2057_v7 }
 0x892   : > { %v2045_v31 = vpop.f32.mrf.mxu2 }
 0x893   : > { %v2051_v39 = vadd.f32 %v2045_v31, %v2980_v41 }
 0x895   : > { %v2058_v23 = vadd.f32 %v2244_v56, %v2051_v39 }
 0x897   : > { %2061 = vst.msk [vmem:[%s548_s26 + $0x10] sm:$0x1] %vm562_vm1, %v2058_v23 }
 0x89a   : > { %v2047_v46 = vpop.f32.mrf.mxu2 }
 0x89b PF: > { %s27_s24 = sadd.s32 1, %s2322_s24  }
 0x89c   : > { %p24_p4 = scmp.ge.s32.totalorder %s27_s24, 4  }
 0x89e   :  { %26 = sbr.rel (!%p24_p4) target bundleno = 3 (0x3), region = 118 }

</bundles_post_ra>
